<compile_context>
chip_gen: v7x
topology: tpu7x:2x2x1
jax: 0.10.0
libtpu: 0.0.40
codegen_flags: <defaults>
</compile_context>

<pallas_src>
import functools

import jax
import jax.numpy as jnp
from jax.experimental import pallas as pl
from jax.experimental.pallas import tpu as pltpu

O_PAD = 128  # lane-dense classifier width (real output_dim=10 sliced in wrapper)


def mnist_rnn_kernel(x_ref, w_ih_ref, w_hh_ref, b_ref, w_cls_ref, b_cls_ref,
                     out_ref):
    """x: (T, tb, D) f32; w_ih: (D, 4H) bf16; w_hh: (H, 4H) bf16; b: (1, 4H) f32;
    w_cls: (H, 128) bf16; b_cls: (1, 128) f32; out: (tb, 128) f32."""
    T, tb, D = x_ref.shape
    H = w_hh_ref.shape[0]

    # --- Hoisted input projection: one big MXU matmul + bias fold. ---
    # Collapsing (T, tb) -> T*tb is layout-free because tb % 8 == 0.
    x_flat = x_ref[...].reshape(T * tb, D).astype(jnp.bfloat16)
    gates_x = jnp.dot(x_flat, w_ih_ref[...],
                      preferred_element_type=jnp.float32) + b_ref[...]
    # gates_x rows are time-major: step t occupies rows [t*tb, (t+1)*tb).

    w_hh = w_hh_ref[...]

    h = jnp.zeros((tb, H), jnp.float32)
    c = jnp.zeros((tb, H), jnp.float32)

    # --- Fully unrolled recurrence (T is a compile-time constant). ---
    for t in range(T):
        gates = gates_x[t * tb:(t + 1) * tb, :] + jnp.dot(
            h.astype(jnp.bfloat16), w_hh, preferred_element_type=jnp.float32)
        # PyTorch LSTM gate order i, f, g, o; H=128 => lane-aligned slices.
        i_g = jax.nn.sigmoid(gates[:, 0 * H:1 * H])
        f_g = jax.nn.sigmoid(gates[:, 1 * H:2 * H])
        g_g = jnp.tanh(gates[:, 2 * H:3 * H])
        o_g = jax.nn.sigmoid(gates[:, 3 * H:4 * H])
        c = f_g * c + i_g * g_g
        h = o_g * jnp.tanh(c)

    # TODO(synk): nn.Dropout(0.4) is identity at inference; training-mode
    # stochastic dropout (pltpu.prng_random_bits mask) is not implemented.

    # Lane-dense (128-wide) classifier store; wrapper slices back to 10.
    out_ref[...] = jnp.dot(h.astype(jnp.bfloat16), w_cls_ref[...],
                           preferred_element_type=jnp.float32) + b_cls_ref[...]


@functools.partial(jax.jit, static_argnames=("block_b",))
def mnist_rnn_forward(x, params, *, block_b=128):
    """x: (B, T, D) float32 -> logits (B, O) float32."""
    w_ih, w_hh, b, w_cls, b_cls = params
    B, T, D = x.shape
    H = w_hh.shape[0]
    O = w_cls.shape[1]
    G = 4 * H

    # Lane-dense classifier: pad the O-class output to 128 lanes.
    w_cls_p = jnp.zeros((H, O_PAD), jnp.float32).at[:, :O].set(w_cls)
    b_cls_p = jnp.zeros((1, O_PAD), jnp.float32).at[:, :O].set(b_cls)

    # Batch tile: multiple of 8 sublanes; pad batch to a whole number of tiles.
    block_b = max(8, (min(block_b, B) + 7) // 8 * 8)
    b_padded = pl.cdiv(B, block_b) * block_b
    if b_padded != B:
        x = jnp.concatenate(
            [x, jnp.zeros((b_padded - B, T, D), x.dtype)], axis=0)

    # Time-major layout for the kernel (see module docstring).
    x_tbd = jnp.transpose(x, (1, 0, 2))  # (T, b_padded, D)

    # bf16 MXU operands; biases stay f32 (added after f32 accumulation).
    w_ih_bf = w_ih.astype(jnp.bfloat16)
    w_hh_bf = w_hh.astype(jnp.bfloat16)
    w_cls_bf = w_cls_p.astype(jnp.bfloat16)

    grid = (b_padded // block_b,)
    out = pl.pallas_call(
        mnist_rnn_kernel,
        out_shape=jax.ShapeDtypeStruct((b_padded, O_PAD), jnp.float32),
        grid=grid,
        in_specs=[
            pl.BlockSpec((T, block_b, D), lambda i: (0, i, 0)),  # x batch tile
            pl.BlockSpec((D, G), lambda i: (0, 0)),              # w_ih (full)
            pl.BlockSpec((H, G), lambda i: (0, 0)),              # w_hh (full)
            pl.BlockSpec((1, G), lambda i: (0, 0)),              # b    (full)
            pl.BlockSpec((H, O_PAD), lambda i: (0, 0)),          # w_cls (full)
            pl.BlockSpec((1, O_PAD), lambda i: (0, 0)),          # b_cls (full)
        ],
        out_specs=pl.BlockSpec((block_b, O_PAD), lambda i: (i, 0)),
        compiler_params=pltpu.CompilerParams(
            dimension_semantics=("parallel",)),
    )(x_tbd, w_ih_bf, w_hh_bf, b, w_cls_bf, b_cls_p)

    return out[:B, :O]


def init_params(key, input_dim, hidden_dim, output_dim):
    """Deterministic init matching PyTorch LSTM/Linear uniform ranges."""
    k1, k2, k3, k4, k5, k6 = jax.random.split(key, 6)
    bound_rnn = 1.0 / jnp.sqrt(hidden_dim)
    # LSTM weights stored pre-transposed: (in, 4H) / (H, 4H) so matmuls are
    # feature-last inside the kernel; gate order i, f, g, o.
    w_ih = jax.random.uniform(k1, (input_dim, 4 * hidden_dim), jnp.float32,
                              -bound_rnn, bound_rnn)
    w_hh = jax.random.uniform(k2, (hidden_dim, 4 * hidden_dim), jnp.float32,
                              -bound_rnn, bound_rnn)
    b_ih = jax.random.uniform(k3, (4 * hidden_dim,), jnp.float32,
                              -bound_rnn, bound_rnn)
    b_hh = jax.random.uniform(k4, (4 * hidden_dim,), jnp.float32,
                              -bound_rnn, bound_rnn)
    b = (b_ih + b_hh).reshape(1, 4 * hidden_dim)

    bound_cls = 1.0 / jnp.sqrt(hidden_dim)
    w_cls = jax.random.uniform(k5, (hidden_dim, output_dim), jnp.float32,
                               -bound_cls, bound_cls)
    b_cls = jax.random.uniform(k6, (output_dim,), jnp.float32,
                               -bound_cls, bound_cls).reshape(1, output_dim)
    return (w_ih, w_hh, b, w_cls, b_cls)


def reference_forward(x, params):
    """Pure-JAX reference using the same mixed-precision recipe as the kernel
    (bf16 MXU operands, f32 accumulation / elementwise)."""
    w_ih, w_hh, b, w_cls, b_cls = params
    B, T, D = x.shape
    H = w_hh.shape[0]
    w_ih_bf = w_ih.astype(jnp.bfloat16)
    w_hh_bf = w_hh.astype(jnp.bfloat16)
    w_cls_bf = w_cls.astype(jnp.bfloat16)
    h = jnp.zeros((B, H), jnp.float32)
    c = jnp.zeros((B, H), jnp.float32)
    for t in range(T):
        x_t = x[:, t, :].astype(jnp.bfloat16)
        gates = (jnp.dot(x_t, w_ih_bf, preferred_element_type=jnp.float32)
                 + jnp.dot(h.astype(jnp.bfloat16), w_hh_bf,
                           preferred_element_type=jnp.float32)
                 + b)
        i_g = jax.nn.sigmoid(gates[:, 0 * H:1 * H])
        f_g = jax.nn.sigmoid(gates[:, 1 * H:2 * H])
        g_g = jnp.tanh(gates[:, 2 * H:3 * H])
        o_g = jax.nn.sigmoid(gates[:, 3 * H:4 * H])
        c = f_g * c + i_g * g_g
        h = o_g * jnp.tanh(c)
    return (jnp.dot(h.astype(jnp.bfloat16), w_cls_bf,
                    preferred_element_type=jnp.float32) + b_cls)


if __name__ == "__main__":
    # Module-default sizes (MNIST rows as a sequence): input_dim=28 per row,
    # seq T=28 rows, hidden_dim=128, 10 classes; small batch, block_b=8 so the
    # batch grid actually iterates (2 steps).
    B, T, D, H, O = 16, 28, 28, 128, 10

    key = jax.random.PRNGKey(0)
    k_x, k_p = jax.random.split(key)
    x = jax.random.normal(k_x, (B, T, D), jnp.float32)
    params = init_params(k_p, D, H, O)

    logits = mnist_rnn_forward(x, params, block_b=8)
    jax.block_until_ready(logits)

    ref = reference_forward(x, params)
    assert logits.shape == (B, O)
    max_diff = jnp.max(jnp.abs(logits - ref))
    assert jnp.allclose(logits, ref, atol=2e-3, rtol=2e-3), (
        f"Pallas output mismatch vs reference: max|diff|={max_diff}")

    print("KERNEL_OK")
</pallas_src>

<mosaic_0001>
module attributes {stable_mosaic.version = 11 : i64} {
  func.func @mnist_rnn_kernel(%arg0: i32, %arg1: memref<28x8x28xf32, #tpu.memory_space<vmem>>, %arg2: memref<28x512xbf16, #tpu.memory_space<vmem>>, %arg3: memref<128x512xbf16, #tpu.memory_space<vmem>>, %arg4: memref<1x512xf32, #tpu.memory_space<vmem>>, %arg5: memref<128x128xbf16, #tpu.memory_space<vmem>>, %arg6: memref<1x128xf32, #tpu.memory_space<vmem>>, %arg7: memref<8x128xf32, #tpu.memory_space<vmem>>) attributes {dimension_semantics = [#tpu.dimension_semantics<parallel>], iteration_bounds = array<i64: 2>, scalar_prefetch = 0 : i64, scratch_operands = 0 : i64, tpu.core_type = #tpu.core_type<tc>, window_params = [{transform_indices = @transform_0, window_bounds = array<i64: 28, 8, 28>}, {pipeline_mode = #tpu.pipeline_mode<synchronous>, transform_indices = @transform_1, window_bounds = array<i64: 28, 512>}, {pipeline_mode = #tpu.pipeline_mode<synchronous>, transform_indices = @transform_2, window_bounds = array<i64: 128, 512>}, {pipeline_mode = #tpu.pipeline_mode<synchronous>, transform_indices = @transform_3, window_bounds = array<i64: 1, 512>}, {pipeline_mode = #tpu.pipeline_mode<synchronous>, transform_indices = @transform_4, window_bounds = array<i64: 128, 128>}, {pipeline_mode = #tpu.pipeline_mode<synchronous>, transform_indices = @transform_5, window_bounds = array<i64: 1, 128>}, {transform_indices = @transform_6, window_bounds = array<i64: 8, 128>}]} {
    %c0 = arith.constant 0 : index
    %c0_0 = arith.constant 0 : index
    %c0_1 = arith.constant 0 : index
    %0 = vector.load %arg1[%c0, %c0_0, %c0_1] : memref<28x8x28xf32, #tpu.memory_space<vmem>>, vector<28x8x28xf32>
    %1 = vector.shape_cast %0 : vector<28x8x28xf32> to vector<224x28xf32>
    %2 = arith.truncf %1 : vector<224x28xf32> to vector<224x28xbf16>
    %c0_2 = arith.constant 0 : index
    %c0_3 = arith.constant 0 : index
    %3 = vector.load %arg2[%c0_2, %c0_3] : memref<28x512xbf16, #tpu.memory_space<vmem>>, vector<28x512xbf16>
    %cst = arith.constant dense<0.000000e+00> : vector<224x512xf32>
    %4 = tpu.matmul %2, %3, %cst {dimension_numbers = #tpu.dot_dimension_numbers<[1], [0], [0], [1], [0, 0, 1, 1], [], []>} : vector<224x28xbf16>, vector<28x512xbf16>, vector<224x512xf32> -> vector<224x512xf32>
    %c0_4 = arith.constant 0 : index
    %c0_5 = arith.constant 0 : index
    %5 = vector.load %arg4[%c0_4, %c0_5] : memref<1x512xf32, #tpu.memory_space<vmem>>, vector<1x512xf32>
    %6 = vector.broadcast %5 : vector<1x512xf32> to vector<224x512xf32>
    %7 = arith.addf %4, %6 : vector<224x512xf32>
    %c0_6 = arith.constant 0 : index
    %c0_7 = arith.constant 0 : index
    %8 = vector.load %arg3[%c0_6, %c0_7] : memref<128x512xbf16, #tpu.memory_space<vmem>>, vector<128x512xbf16>
    %cst_8 = arith.constant 0.000000e+00 : f32
    %9 = vector.broadcast %cst_8 : f32 to vector<8x128xf32>
    %cst_9 = arith.constant 0.000000e+00 : f32
    %10 = vector.broadcast %cst_9 : f32 to vector<8x128xf32>
    %11 = vector.extract_strided_slice %7 {offsets = [0, 0], sizes = [8, 512], strides = [1, 1]} : vector<224x512xf32> to vector<8x512xf32>
    %12 = arith.truncf %9 : vector<8x128xf32> to vector<8x128xbf16>
    %cst_10 = arith.constant dense<0.000000e+00> : vector<8x512xf32>
    %13 = tpu.matmul %12, %8, %cst_10 {dimension_numbers = #tpu.dot_dimension_numbers<[1], [0], [0], [1], [0, 0, 1, 1], [], []>} : vector<8x128xbf16>, vector<128x512xbf16>, vector<8x512xf32> -> vector<8x512xf32>
    %14 = arith.addf %11, %13 : vector<8x512xf32>
    %15 = vector.extract_strided_slice %14 {offsets = [0, 0], sizes = [8, 128], strides = [1, 1]} : vector<8x512xf32> to vector<8x128xf32>
    %16 = arith.negf %15 : vector<8x128xf32>
    %17 = math.exp %16 : vector<8x128xf32>
    %cst_11 = arith.constant 1.000000e+00 : f32
    %18 = vector.broadcast %cst_11 : f32 to vector<8x128xf32>
    %19 = arith.addf %18, %17 : vector<8x128xf32>
    %20 = arith.divf %18, %19 : vector<8x128xf32>
    %21 = vector.extract_strided_slice %14 {offsets = [0, 128], sizes = [8, 128], strides = [1, 1]} : vector<8x512xf32> to vector<8x128xf32>
    %22 = arith.negf %21 : vector<8x128xf32>
    %23 = math.exp %22 : vector<8x128xf32>
    %cst_12 = arith.constant 1.000000e+00 : f32
    %24 = vector.broadcast %cst_12 : f32 to vector<8x128xf32>
    %25 = arith.addf %24, %23 : vector<8x128xf32>
    %26 = arith.divf %24, %25 : vector<8x128xf32>
    %27 = vector.extract_strided_slice %14 {offsets = [0, 256], sizes = [8, 128], strides = [1, 1]} : vector<8x512xf32> to vector<8x128xf32>
    %28 = math.tanh %27 : vector<8x128xf32>
    %29 = vector.extract_strided_slice %14 {offsets = [0, 384], sizes = [8, 128], strides = [1, 1]} : vector<8x512xf32> to vector<8x128xf32>
    %30 = arith.negf %29 : vector<8x128xf32>
    %31 = math.exp %30 : vector<8x128xf32>
    %cst_13 = arith.constant 1.000000e+00 : f32
    %32 = vector.broadcast %cst_13 : f32 to vector<8x128xf32>
    %33 = arith.addf %32, %31 : vector<8x128xf32>
    %34 = arith.divf %32, %33 : vector<8x128xf32>
    %35 = arith.mulf %26, %10 : vector<8x128xf32>
    %36 = arith.mulf %20, %28 : vector<8x128xf32>
    %37 = arith.addf %35, %36 : vector<8x128xf32>
    %38 = math.tanh %37 : vector<8x128xf32>
    %39 = arith.mulf %34, %38 : vector<8x128xf32>
    %40 = vector.extract_strided_slice %7 {offsets = [8, 0], sizes = [8, 512], strides = [1, 1]} : vector<224x512xf32> to vector<8x512xf32>
    %41 = arith.truncf %39 : vector<8x128xf32> to vector<8x128xbf16>
    %cst_14 = arith.constant dense<0.000000e+00> : vector<8x512xf32>
    %42 = tpu.matmul %41, %8, %cst_14 {dimension_numbers = #tpu.dot_dimension_numbers<[1], [0], [0], [1], [0, 0, 1, 1], [], []>} : vector<8x128xbf16>, vector<128x512xbf16>, vector<8x512xf32> -> vector<8x512xf32>
    %43 = arith.addf %40, %42 : vector<8x512xf32>
    %44 = vector.extract_strided_slice %43 {offsets = [0, 0], sizes = [8, 128], strides = [1, 1]} : vector<8x512xf32> to vector<8x128xf32>
    %45 = arith.negf %44 : vector<8x128xf32>
    %46 = math.exp %45 : vector<8x128xf32>
    %cst_15 = arith.constant 1.000000e+00 : f32
    %47 = vector.broadcast %cst_15 : f32 to vector<8x128xf32>
    %48 = arith.addf %47, %46 : vector<8x128xf32>
    %49 = arith.divf %47, %48 : vector<8x128xf32>
    %50 = vector.extract_strided_slice %43 {offsets = [0, 128], sizes = [8, 128], strides = [1, 1]} : vector<8x512xf32> to vector<8x128xf32>
    %51 = arith.negf %50 : vector<8x128xf32>
    %52 = math.exp %51 : vector<8x128xf32>
    %cst_16 = arith.constant 1.000000e+00 : f32
    %53 = vector.broadcast %cst_16 : f32 to vector<8x128xf32>
    %54 = arith.addf %53, %52 : vector<8x128xf32>
    %55 = arith.divf %53, %54 : vector<8x128xf32>
    %56 = vector.extract_strided_slice %43 {offsets = [0, 256], sizes = [8, 128], strides = [1, 1]} : vector<8x512xf32> to vector<8x128xf32>
    %57 = math.tanh %56 : vector<8x128xf32>
    %58 = vector.extract_strided_slice %43 {offsets = [0, 384], sizes = [8, 128], strides = [1, 1]} : vector<8x512xf32> to vector<8x128xf32>
    %59 = arith.negf %58 : vector<8x128xf32>
    %60 = math.exp %59 : vector<8x128xf32>
    %cst_17 = arith.constant 1.000000e+00 : f32
    %61 = vector.broadcast %cst_17 : f32 to vector<8x128xf32>
    %62 = arith.addf %61, %60 : vector<8x128xf32>
    %63 = arith.divf %61, %62 : vector<8x128xf32>
    %64 = arith.mulf %55, %37 : vector<8x128xf32>
    %65 = arith.mulf %49, %57 : vector<8x128xf32>
    %66 = arith.addf %64, %65 : vector<8x128xf32>
    %67 = math.tanh %66 : vector<8x128xf32>
    %68 = arith.mulf %63, %67 : vector<8x128xf32>
    %69 = vector.extract_strided_slice %7 {offsets = [16, 0], sizes = [8, 512], strides = [1, 1]} : vector<224x512xf32> to vector<8x512xf32>
    %70 = arith.truncf %68 : vector<8x128xf32> to vector<8x128xbf16>
    %cst_18 = arith.constant dense<0.000000e+00> : vector<8x512xf32>
    %71 = tpu.matmul %70, %8, %cst_18 {dimension_numbers = #tpu.dot_dimension_numbers<[1], [0], [0], [1], [0, 0, 1, 1], [], []>} : vector<8x128xbf16>, vector<128x512xbf16>, vector<8x512xf32> -> vector<8x512xf32>
    %72 = arith.addf %69, %71 : vector<8x512xf32>
    %73 = vector.extract_strided_slice %72 {offsets = [0, 0], sizes = [8, 128], strides = [1, 1]} : vector<8x512xf32> to vector<8x128xf32>
    %74 = arith.negf %73 : vector<8x128xf32>
    %75 = math.exp %74 : vector<8x128xf32>
    %cst_19 = arith.constant 1.000000e+00 : f32
    %76 = vector.broadcast %cst_19 : f32 to vector<8x128xf32>
    %77 = arith.addf %76, %75 : vector<8x128xf32>
    %78 = arith.divf %76, %77 : vector<8x128xf32>
    %79 = vector.extract_strided_slice %72 {offsets = [0, 128], sizes = [8, 128], strides = [1, 1]} : vector<8x512xf32> to vector<8x128xf32>
    %80 = arith.negf %79 : vector<8x128xf32>
    %81 = math.exp %80 : vector<8x128xf32>
    %cst_20 = arith.constant 1.000000e+00 : f32
    %82 = vector.broadcast %cst_20 : f32 to vector<8x128xf32>
    %83 = arith.addf %82, %81 : vector<8x128xf32>
    %84 = arith.divf %82, %83 : vector<8x128xf32>
    %85 = vector.extract_strided_slice %72 {offsets = [0, 256], sizes = [8, 128], strides = [1, 1]} : vector<8x512xf32> to vector<8x128xf32>
    %86 = math.tanh %85 : vector<8x128xf32>
    %87 = vector.extract_strided_slice %72 {offsets = [0, 384], sizes = [8, 128], strides = [1, 1]} : vector<8x512xf32> to vector<8x128xf32>
    %88 = arith.negf %87 : vector<8x128xf32>
    %89 = math.exp %88 : vector<8x128xf32>
    %cst_21 = arith.constant 1.000000e+00 : f32
    %90 = vector.broadcast %cst_21 : f32 to vector<8x128xf32>
    %91 = arith.addf %90, %89 : vector<8x128xf32>
    %92 = arith.divf %90, %91 : vector<8x128xf32>
    %93 = arith.mulf %84, %66 : vector<8x128xf32>
    %94 = arith.mulf %78, %86 : vector<8x128xf32>
    %95 = arith.addf %93, %94 : vector<8x128xf32>
    %96 = math.tanh %95 : vector<8x128xf32>
    %97 = arith.mulf %92, %96 : vector<8x128xf32>
    %98 = vector.extract_strided_slice %7 {offsets = [24, 0], sizes = [8, 512], strides = [1, 1]} : vector<224x512xf32> to vector<8x512xf32>
    %99 = arith.truncf %97 : vector<8x128xf32> to vector<8x128xbf16>
    %cst_22 = arith.constant dense<0.000000e+00> : vector<8x512xf32>
    %100 = tpu.matmul %99, %8, %cst_22 {dimension_numbers = #tpu.dot_dimension_numbers<[1], [0], [0], [1], [0, 0, 1, 1], [], []>} : vector<8x128xbf16>, vector<128x512xbf16>, vector<8x512xf32> -> vector<8x512xf32>
    %101 = arith.addf %98, %100 : vector<8x512xf32>
    %102 = vector.extract_strided_slice %101 {offsets = [0, 0], sizes = [8, 128], strides = [1, 1]} : vector<8x512xf32> to vector<8x128xf32>
    %103 = arith.negf %102 : vector<8x128xf32>
    %104 = math.exp %103 : vector<8x128xf32>
    %cst_23 = arith.constant 1.000000e+00 : f32
    %105 = vector.broadcast %cst_23 : f32 to vector<8x128xf32>
    %106 = arith.addf %105, %104 : vector<8x128xf32>
    %107 = arith.divf %105, %106 : vector<8x128xf32>
    %108 = vector.extract_strided_slice %101 {offsets = [0, 128], sizes = [8, 128], strides = [1, 1]} : vector<8x512xf32> to vector<8x128xf32>
    %109 = arith.negf %108 : vector<8x128xf32>
    %110 = math.exp %109 : vector<8x128xf32>
    %cst_24 = arith.constant 1.000000e+00 : f32
    %111 = vector.broadcast %cst_24 : f32 to vector<8x128xf32>
    %112 = arith.addf %111, %110 : vector<8x128xf32>
    %113 = arith.divf %111, %112 : vector<8x128xf32>
    %114 = vector.extract_strided_slice %101 {offsets = [0, 256], sizes = [8, 128], strides = [1, 1]} : vector<8x512xf32> to vector<8x128xf32>
    %115 = math.tanh %114 : vector<8x128xf32>
    %116 = vector.extract_strided_slice %101 {offsets = [0, 384], sizes = [8, 128], strides = [1, 1]} : vector<8x512xf32> to vector<8x128xf32>
    %117 = arith.negf %116 : vector<8x128xf32>
    %118 = math.exp %117 : vector<8x128xf32>
    %cst_25 = arith.constant 1.000000e+00 : f32
    %119 = vector.broadcast %cst_25 : f32 to vector<8x128xf32>
    %120 = arith.addf %119, %118 : vector<8x128xf32>
    %121 = arith.divf %119, %120 : vector<8x128xf32>
    %122 = arith.mulf %113, %95 : vector<8x128xf32>
    %123 = arith.mulf %107, %115 : vector<8x128xf32>
    %124 = arith.addf %122, %123 : vector<8x128xf32>
    %125 = math.tanh %124 : vector<8x128xf32>
    %126 = arith.mulf %121, %125 : vector<8x128xf32>
    %127 = vector.extract_strided_slice %7 {offsets = [32, 0], sizes = [8, 512], strides = [1, 1]} : vector<224x512xf32> to vector<8x512xf32>
    %128 = arith.truncf %126 : vector<8x128xf32> to vector<8x128xbf16>
    %cst_26 = arith.constant dense<0.000000e+00> : vector<8x512xf32>
    %129 = tpu.matmul %128, %8, %cst_26 {dimension_numbers = #tpu.dot_dimension_numbers<[1], [0], [0], [1], [0, 0, 1, 1], [], []>} : vector<8x128xbf16>, vector<128x512xbf16>, vector<8x512xf32> -> vector<8x512xf32>
    %130 = arith.addf %127, %129 : vector<8x512xf32>
    %131 = vector.extract_strided_slice %130 {offsets = [0, 0], sizes = [8, 128], strides = [1, 1]} : vector<8x512xf32> to vector<8x128xf32>
    %132 = arith.negf %131 : vector<8x128xf32>
    %133 = math.exp %132 : vector<8x128xf32>
    %cst_27 = arith.constant 1.000000e+00 : f32
    %134 = vector.broadcast %cst_27 : f32 to vector<8x128xf32>
    %135 = arith.addf %134, %133 : vector<8x128xf32>
    %136 = arith.divf %134, %135 : vector<8x128xf32>
    %137 = vector.extract_strided_slice %130 {offsets = [0, 128], sizes = [8, 128], strides = [1, 1]} : vector<8x512xf32> to vector<8x128xf32>
    %138 = arith.negf %137 : vector<8x128xf32>
    %139 = math.exp %138 : vector<8x128xf32>
    %cst_28 = arith.constant 1.000000e+00 : f32
    %140 = vector.broadcast %cst_28 : f32 to vector<8x128xf32>
    %141 = arith.addf %140, %139 : vector<8x128xf32>
    %142 = arith.divf %140, %141 : vector<8x128xf32>
    %143 = vector.extract_strided_slice %130 {offsets = [0, 256], sizes = [8, 128], strides = [1, 1]} : vector<8x512xf32> to vector<8x128xf32>
    %144 = math.tanh %143 : vector<8x128xf32>
    %145 = vector.extract_strided_slice %130 {offsets = [0, 384], sizes = [8, 128], strides = [1, 1]} : vector<8x512xf32> to vector<8x128xf32>
    %146 = arith.negf %145 : vector<8x128xf32>
    %147 = math.exp %146 : vector<8x128xf32>
    %cst_29 = arith.constant 1.000000e+00 : f32
    %148 = vector.broadcast %cst_29 : f32 to vector<8x128xf32>
    %149 = arith.addf %148, %147 : vector<8x128xf32>
    %150 = arith.divf %148, %149 : vector<8x128xf32>
    %151 = arith.mulf %142, %124 : vector<8x128xf32>
    %152 = arith.mulf %136, %144 : vector<8x128xf32>
    %153 = arith.addf %151, %152 : vector<8x128xf32>
    %154 = math.tanh %153 : vector<8x128xf32>
    %155 = arith.mulf %150, %154 : vector<8x128xf32>
    %156 = vector.extract_strided_slice %7 {offsets = [40, 0], sizes = [8, 512], strides = [1, 1]} : vector<224x512xf32> to vector<8x512xf32>
    %157 = arith.truncf %155 : vector<8x128xf32> to vector<8x128xbf16>
    %cst_30 = arith.constant dense<0.000000e+00> : vector<8x512xf32>
    %158 = tpu.matmul %157, %8, %cst_30 {dimension_numbers = #tpu.dot_dimension_numbers<[1], [0], [0], [1], [0, 0, 1, 1], [], []>} : vector<8x128xbf16>, vector<128x512xbf16>, vector<8x512xf32> -> vector<8x512xf32>
    %159 = arith.addf %156, %158 : vector<8x512xf32>
    %160 = vector.extract_strided_slice %159 {offsets = [0, 0], sizes = [8, 128], strides = [1, 1]} : vector<8x512xf32> to vector<8x128xf32>
    %161 = arith.negf %160 : vector<8x128xf32>
    %162 = math.exp %161 : vector<8x128xf32>
    %cst_31 = arith.constant 1.000000e+00 : f32
    %163 = vector.broadcast %cst_31 : f32 to vector<8x128xf32>
    %164 = arith.addf %163, %162 : vector<8x128xf32>
    %165 = arith.divf %163, %164 : vector<8x128xf32>
    %166 = vector.extract_strided_slice %159 {offsets = [0, 128], sizes = [8, 128], strides = [1, 1]} : vector<8x512xf32> to vector<8x128xf32>
    %167 = arith.negf %166 : vector<8x128xf32>
    %168 = math.exp %167 : vector<8x128xf32>
    %cst_32 = arith.constant 1.000000e+00 : f32
    %169 = vector.broadcast %cst_32 : f32 to vector<8x128xf32>
    %170 = arith.addf %169, %168 : vector<8x128xf32>
    %171 = arith.divf %169, %170 : vector<8x128xf32>
    %172 = vector.extract_strided_slice %159 {offsets = [0, 256], sizes = [8, 128], strides = [1, 1]} : vector<8x512xf32> to vector<8x128xf32>
    %173 = math.tanh %172 : vector<8x128xf32>
    %174 = vector.extract_strided_slice %159 {offsets = [0, 384], sizes = [8, 128], strides = [1, 1]} : vector<8x512xf32> to vector<8x128xf32>
    %175 = arith.negf %174 : vector<8x128xf32>
    %176 = math.exp %175 : vector<8x128xf32>
    %cst_33 = arith.constant 1.000000e+00 : f32
    %177 = vector.broadcast %cst_33 : f32 to vector<8x128xf32>
    %178 = arith.addf %177, %176 : vector<8x128xf32>
    %179 = arith.divf %177, %178 : vector<8x128xf32>
    %180 = arith.mulf %171, %153 : vector<8x128xf32>
    %181 = arith.mulf %165, %173 : vector<8x128xf32>
    %182 = arith.addf %180, %181 : vector<8x128xf32>
    %183 = math.tanh %182 : vector<8x128xf32>
    %184 = arith.mulf %179, %183 : vector<8x128xf32>
    %185 = vector.extract_strided_slice %7 {offsets = [48, 0], sizes = [8, 512], strides = [1, 1]} : vector<224x512xf32> to vector<8x512xf32>
    %186 = arith.truncf %184 : vector<8x128xf32> to vector<8x128xbf16>
    %cst_34 = arith.constant dense<0.000000e+00> : vector<8x512xf32>
    %187 = tpu.matmul %186, %8, %cst_34 {dimension_numbers = #tpu.dot_dimension_numbers<[1], [0], [0], [1], [0, 0, 1, 1], [], []>} : vector<8x128xbf16>, vector<128x512xbf16>, vector<8x512xf32> -> vector<8x512xf32>
    %188 = arith.addf %185, %187 : vector<8x512xf32>
    %189 = vector.extract_strided_slice %188 {offsets = [0, 0], sizes = [8, 128], strides = [1, 1]} : vector<8x512xf32> to vector<8x128xf32>
    %190 = arith.negf %189 : vector<8x128xf32>
    %191 = math.exp %190 : vector<8x128xf32>
    %cst_35 = arith.constant 1.000000e+00 : f32
    %192 = vector.broadcast %cst_35 : f32 to vector<8x128xf32>
    %193 = arith.addf %192, %191 : vector<8x128xf32>
    %194 = arith.divf %192, %193 : vector<8x128xf32>
    %195 = vector.extract_strided_slice %188 {offsets = [0, 128], sizes = [8, 128], strides = [1, 1]} : vector<8x512xf32> to vector<8x128xf32>
    %196 = arith.negf %195 : vector<8x128xf32>
    %197 = math.exp %196 : vector<8x128xf32>
    %cst_36 = arith.constant 1.000000e+00 : f32
    %198 = vector.broadcast %cst_36 : f32 to vector<8x128xf32>
    %199 = arith.addf %198, %197 : vector<8x128xf32>
    %200 = arith.divf %198, %199 : vector<8x128xf32>
    %201 = vector.extract_strided_slice %188 {offsets = [0, 256], sizes = [8, 128], strides = [1, 1]} : vector<8x512xf32> to vector<8x128xf32>
    %202 = math.tanh %201 : vector<8x128xf32>
    %203 = vector.extract_strided_slice %188 {offsets = [0, 384], sizes = [8, 128], strides = [1, 1]} : vector<8x512xf32> to vector<8x128xf32>
    %204 = arith.negf %203 : vector<8x128xf32>
    %205 = math.exp %204 : vector<8x128xf32>
    %cst_37 = arith.constant 1.000000e+00 : f32
    %206 = vector.broadcast %cst_37 : f32 to vector<8x128xf32>
    %207 = arith.addf %206, %205 : vector<8x128xf32>
    %208 = arith.divf %206, %207 : vector<8x128xf32>
    %209 = arith.mulf %200, %182 : vector<8x128xf32>
    %210 = arith.mulf %194, %202 : vector<8x128xf32>
    %211 = arith.addf %209, %210 : vector<8x128xf32>
    %212 = math.tanh %211 : vector<8x128xf32>
    %213 = arith.mulf %208, %212 : vector<8x128xf32>
    %214 = vector.extract_strided_slice %7 {offsets = [56, 0], sizes = [8, 512], strides = [1, 1]} : vector<224x512xf32> to vector<8x512xf32>
    %215 = arith.truncf %213 : vector<8x128xf32> to vector<8x128xbf16>
    %cst_38 = arith.constant dense<0.000000e+00> : vector<8x512xf32>
    %216 = tpu.matmul %215, %8, %cst_38 {dimension_numbers = #tpu.dot_dimension_numbers<[1], [0], [0], [1], [0, 0, 1, 1], [], []>} : vector<8x128xbf16>, vector<128x512xbf16>, vector<8x512xf32> -> vector<8x512xf32>
    %217 = arith.addf %214, %216 : vector<8x512xf32>
    %218 = vector.extract_strided_slice %217 {offsets = [0, 0], sizes = [8, 128], strides = [1, 1]} : vector<8x512xf32> to vector<8x128xf32>
    %219 = arith.negf %218 : vector<8x128xf32>
    %220 = math.exp %219 : vector<8x128xf32>
    %cst_39 = arith.constant 1.000000e+00 : f32
    %221 = vector.broadcast %cst_39 : f32 to vector<8x128xf32>
    %222 = arith.addf %221, %220 : vector<8x128xf32>
    %223 = arith.divf %221, %222 : vector<8x128xf32>
    %224 = vector.extract_strided_slice %217 {offsets = [0, 128], sizes = [8, 128], strides = [1, 1]} : vector<8x512xf32> to vector<8x128xf32>
    %225 = arith.negf %224 : vector<8x128xf32>
    %226 = math.exp %225 : vector<8x128xf32>
    %cst_40 = arith.constant 1.000000e+00 : f32
    %227 = vector.broadcast %cst_40 : f32 to vector<8x128xf32>
    %228 = arith.addf %227, %226 : vector<8x128xf32>
    %229 = arith.divf %227, %228 : vector<8x128xf32>
    %230 = vector.extract_strided_slice %217 {offsets = [0, 256], sizes = [8, 128], strides = [1, 1]} : vector<8x512xf32> to vector<8x128xf32>
    %231 = math.tanh %230 : vector<8x128xf32>
    %232 = vector.extract_strided_slice %217 {offsets = [0, 384], sizes = [8, 128], strides = [1, 1]} : vector<8x512xf32> to vector<8x128xf32>
    %233 = arith.negf %232 : vector<8x128xf32>
    %234 = math.exp %233 : vector<8x128xf32>
    %cst_41 = arith.constant 1.000000e+00 : f32
    %235 = vector.broadcast %cst_41 : f32 to vector<8x128xf32>
    %236 = arith.addf %235, %234 : vector<8x128xf32>
    %237 = arith.divf %235, %236 : vector<8x128xf32>
    %238 = arith.mulf %229, %211 : vector<8x128xf32>
    %239 = arith.mulf %223, %231 : vector<8x128xf32>
    %240 = arith.addf %238, %239 : vector<8x128xf32>
    %241 = math.tanh %240 : vector<8x128xf32>
    %242 = arith.mulf %237, %241 : vector<8x128xf32>
    %243 = vector.extract_strided_slice %7 {offsets = [64, 0], sizes = [8, 512], strides = [1, 1]} : vector<224x512xf32> to vector<8x512xf32>
    %244 = arith.truncf %242 : vector<8x128xf32> to vector<8x128xbf16>
    %cst_42 = arith.constant dense<0.000000e+00> : vector<8x512xf32>
    %245 = tpu.matmul %244, %8, %cst_42 {dimension_numbers = #tpu.dot_dimension_numbers<[1], [0], [0], [1], [0, 0, 1, 1], [], []>} : vector<8x128xbf16>, vector<128x512xbf16>, vector<8x512xf32> -> vector<8x512xf32>
    %246 = arith.addf %243, %245 : vector<8x512xf32>
    %247 = vector.extract_strided_slice %246 {offsets = [0, 0], sizes = [8, 128], strides = [1, 1]} : vector<8x512xf32> to vector<8x128xf32>
    %248 = arith.negf %247 : vector<8x128xf32>
    %249 = math.exp %248 : vector<8x128xf32>
    %cst_43 = arith.constant 1.000000e+00 : f32
    %250 = vector.broadcast %cst_43 : f32 to vector<8x128xf32>
    %251 = arith.addf %250, %249 : vector<8x128xf32>
    %252 = arith.divf %250, %251 : vector<8x128xf32>
    %253 = vector.extract_strided_slice %246 {offsets = [0, 128], sizes = [8, 128], strides = [1, 1]} : vector<8x512xf32> to vector<8x128xf32>
    %254 = arith.negf %253 : vector<8x128xf32>
    %255 = math.exp %254 : vector<8x128xf32>
    %cst_44 = arith.constant 1.000000e+00 : f32
    %256 = vector.broadcast %cst_44 : f32 to vector<8x128xf32>
    %257 = arith.addf %256, %255 : vector<8x128xf32>
    %258 = arith.divf %256, %257 : vector<8x128xf32>
    %259 = vector.extract_strided_slice %246 {offsets = [0, 256], sizes = [8, 128], strides = [1, 1]} : vector<8x512xf32> to vector<8x128xf32>
    %260 = math.tanh %259 : vector<8x128xf32>
    %261 = vector.extract_strided_slice %246 {offsets = [0, 384], sizes = [8, 128], strides = [1, 1]} : vector<8x512xf32> to vector<8x128xf32>
    %262 = arith.negf %261 : vector<8x128xf32>
    %263 = math.exp %262 : vector<8x128xf32>
    %cst_45 = arith.constant 1.000000e+00 : f32
    %264 = vector.broadcast %cst_45 : f32 to vector<8x128xf32>
    %265 = arith.addf %264, %263 : vector<8x128xf32>
    %266 = arith.divf %264, %265 : vector<8x128xf32>
    %267 = arith.mulf %258, %240 : vector<8x128xf32>
    %268 = arith.mulf %252, %260 : vector<8x128xf32>
    %269 = arith.addf %267, %268 : vector<8x128xf32>
    %270 = math.tanh %269 : vector<8x128xf32>
    %271 = arith.mulf %266, %270 : vector<8x128xf32>
    %272 = vector.extract_strided_slice %7 {offsets = [72, 0], sizes = [8, 512], strides = [1, 1]} : vector<224x512xf32> to vector<8x512xf32>
    %273 = arith.truncf %271 : vector<8x128xf32> to vector<8x128xbf16>
    %cst_46 = arith.constant dense<0.000000e+00> : vector<8x512xf32>
    %274 = tpu.matmul %273, %8, %cst_46 {dimension_numbers = #tpu.dot_dimension_numbers<[1], [0], [0], [1], [0, 0, 1, 1], [], []>} : vector<8x128xbf16>, vector<128x512xbf16>, vector<8x512xf32> -> vector<8x512xf32>
    %275 = arith.addf %272, %274 : vector<8x512xf32>
    %276 = vector.extract_strided_slice %275 {offsets = [0, 0], sizes = [8, 128], strides = [1, 1]} : vector<8x512xf32> to vector<8x128xf32>
    %277 = arith.negf %276 : vector<8x128xf32>
    %278 = math.exp %277 : vector<8x128xf32>
    %cst_47 = arith.constant 1.000000e+00 : f32
    %279 = vector.broadcast %cst_47 : f32 to vector<8x128xf32>
    %280 = arith.addf %279, %278 : vector<8x128xf32>
    %281 = arith.divf %279, %280 : vector<8x128xf32>
    %282 = vector.extract_strided_slice %275 {offsets = [0, 128], sizes = [8, 128], strides = [1, 1]} : vector<8x512xf32> to vector<8x128xf32>
    %283 = arith.negf %282 : vector<8x128xf32>
    %284 = math.exp %283 : vector<8x128xf32>
    %cst_48 = arith.constant 1.000000e+00 : f32
    %285 = vector.broadcast %cst_48 : f32 to vector<8x128xf32>
    %286 = arith.addf %285, %284 : vector<8x128xf32>
    %287 = arith.divf %285, %286 : vector<8x128xf32>
    %288 = vector.extract_strided_slice %275 {offsets = [0, 256], sizes = [8, 128], strides = [1, 1]} : vector<8x512xf32> to vector<8x128xf32>
    %289 = math.tanh %288 : vector<8x128xf32>
    %290 = vector.extract_strided_slice %275 {offsets = [0, 384], sizes = [8, 128], strides = [1, 1]} : vector<8x512xf32> to vector<8x128xf32>
    %291 = arith.negf %290 : vector<8x128xf32>
    %292 = math.exp %291 : vector<8x128xf32>
    %cst_49 = arith.constant 1.000000e+00 : f32
    %293 = vector.broadcast %cst_49 : f32 to vector<8x128xf32>
    %294 = arith.addf %293, %292 : vector<8x128xf32>
    %295 = arith.divf %293, %294 : vector<8x128xf32>
    %296 = arith.mulf %287, %269 : vector<8x128xf32>
    %297 = arith.mulf %281, %289 : vector<8x128xf32>
    %298 = arith.addf %296, %297 : vector<8x128xf32>
    %299 = math.tanh %298 : vector<8x128xf32>
    %300 = arith.mulf %295, %299 : vector<8x128xf32>
    %301 = vector.extract_strided_slice %7 {offsets = [80, 0], sizes = [8, 512], strides = [1, 1]} : vector<224x512xf32> to vector<8x512xf32>
    %302 = arith.truncf %300 : vector<8x128xf32> to vector<8x128xbf16>
    %cst_50 = arith.constant dense<0.000000e+00> : vector<8x512xf32>
    %303 = tpu.matmul %302, %8, %cst_50 {dimension_numbers = #tpu.dot_dimension_numbers<[1], [0], [0], [1], [0, 0, 1, 1], [], []>} : vector<8x128xbf16>, vector<128x512xbf16>, vector<8x512xf32> -> vector<8x512xf32>
    %304 = arith.addf %301, %303 : vector<8x512xf32>
    %305 = vector.extract_strided_slice %304 {offsets = [0, 0], sizes = [8, 128], strides = [1, 1]} : vector<8x512xf32> to vector<8x128xf32>
    %306 = arith.negf %305 : vector<8x128xf32>
    %307 = math.exp %306 : vector<8x128xf32>
    %cst_51 = arith.constant 1.000000e+00 : f32
    %308 = vector.broadcast %cst_51 : f32 to vector<8x128xf32>
    %309 = arith.addf %308, %307 : vector<8x128xf32>
    %310 = arith.divf %308, %309 : vector<8x128xf32>
    %311 = vector.extract_strided_slice %304 {offsets = [0, 128], sizes = [8, 128], strides = [1, 1]} : vector<8x512xf32> to vector<8x128xf32>
    %312 = arith.negf %311 : vector<8x128xf32>
    %313 = math.exp %312 : vector<8x128xf32>
    %cst_52 = arith.constant 1.000000e+00 : f32
    %314 = vector.broadcast %cst_52 : f32 to vector<8x128xf32>
    %315 = arith.addf %314, %313 : vector<8x128xf32>
    %316 = arith.divf %314, %315 : vector<8x128xf32>
    %317 = vector.extract_strided_slice %304 {offsets = [0, 256], sizes = [8, 128], strides = [1, 1]} : vector<8x512xf32> to vector<8x128xf32>
    %318 = math.tanh %317 : vector<8x128xf32>
    %319 = vector.extract_strided_slice %304 {offsets = [0, 384], sizes = [8, 128], strides = [1, 1]} : vector<8x512xf32> to vector<8x128xf32>
    %320 = arith.negf %319 : vector<8x128xf32>
    %321 = math.exp %320 : vector<8x128xf32>
    %cst_53 = arith.constant 1.000000e+00 : f32
    %322 = vector.broadcast %cst_53 : f32 to vector<8x128xf32>
    %323 = arith.addf %322, %321 : vector<8x128xf32>
    %324 = arith.divf %322, %323 : vector<8x128xf32>
    %325 = arith.mulf %316, %298 : vector<8x128xf32>
    %326 = arith.mulf %310, %318 : vector<8x128xf32>
    %327 = arith.addf %325, %326 : vector<8x128xf32>
    %328 = math.tanh %327 : vector<8x128xf32>
    %329 = arith.mulf %324, %328 : vector<8x128xf32>
    %330 = vector.extract_strided_slice %7 {offsets = [88, 0], sizes = [8, 512], strides = [1, 1]} : vector<224x512xf32> to vector<8x512xf32>
    %331 = arith.truncf %329 : vector<8x128xf32> to vector<8x128xbf16>
    %cst_54 = arith.constant dense<0.000000e+00> : vector<8x512xf32>
    %332 = tpu.matmul %331, %8, %cst_54 {dimension_numbers = #tpu.dot_dimension_numbers<[1], [0], [0], [1], [0, 0, 1, 1], [], []>} : vector<8x128xbf16>, vector<128x512xbf16>, vector<8x512xf32> -> vector<8x512xf32>
    %333 = arith.addf %330, %332 : vector<8x512xf32>
    %334 = vector.extract_strided_slice %333 {offsets = [0, 0], sizes = [8, 128], strides = [1, 1]} : vector<8x512xf32> to vector<8x128xf32>
    %335 = arith.negf %334 : vector<8x128xf32>
    %336 = math.exp %335 : vector<8x128xf32>
    %cst_55 = arith.constant 1.000000e+00 : f32
    %337 = vector.broadcast %cst_55 : f32 to vector<8x128xf32>
    %338 = arith.addf %337, %336 : vector<8x128xf32>
    %339 = arith.divf %337, %338 : vector<8x128xf32>
    %340 = vector.extract_strided_slice %333 {offsets = [0, 128], sizes = [8, 128], strides = [1, 1]} : vector<8x512xf32> to vector<8x128xf32>
    %341 = arith.negf %340 : vector<8x128xf32>
    %342 = math.exp %341 : vector<8x128xf32>
    %cst_56 = arith.constant 1.000000e+00 : f32
    %343 = vector.broadcast %cst_56 : f32 to vector<8x128xf32>
    %344 = arith.addf %343, %342 : vector<8x128xf32>
    %345 = arith.divf %343, %344 : vector<8x128xf32>
    %346 = vector.extract_strided_slice %333 {offsets = [0, 256], sizes = [8, 128], strides = [1, 1]} : vector<8x512xf32> to vector<8x128xf32>
    %347 = math.tanh %346 : vector<8x128xf32>
    %348 = vector.extract_strided_slice %333 {offsets = [0, 384], sizes = [8, 128], strides = [1, 1]} : vector<8x512xf32> to vector<8x128xf32>
    %349 = arith.negf %348 : vector<8x128xf32>
    %350 = math.exp %349 : vector<8x128xf32>
    %cst_57 = arith.constant 1.000000e+00 : f32
    %351 = vector.broadcast %cst_57 : f32 to vector<8x128xf32>
    %352 = arith.addf %351, %350 : vector<8x128xf32>
    %353 = arith.divf %351, %352 : vector<8x128xf32>
    %354 = arith.mulf %345, %327 : vector<8x128xf32>
    %355 = arith.mulf %339, %347 : vector<8x128xf32>
    %356 = arith.addf %354, %355 : vector<8x128xf32>
    %357 = math.tanh %356 : vector<8x128xf32>
    %358 = arith.mulf %353, %357 : vector<8x128xf32>
    %359 = vector.extract_strided_slice %7 {offsets = [96, 0], sizes = [8, 512], strides = [1, 1]} : vector<224x512xf32> to vector<8x512xf32>
    %360 = arith.truncf %358 : vector<8x128xf32> to vector<8x128xbf16>
    %cst_58 = arith.constant dense<0.000000e+00> : vector<8x512xf32>
    %361 = tpu.matmul %360, %8, %cst_58 {dimension_numbers = #tpu.dot_dimension_numbers<[1], [0], [0], [1], [0, 0, 1, 1], [], []>} : vector<8x128xbf16>, vector<128x512xbf16>, vector<8x512xf32> -> vector<8x512xf32>
    %362 = arith.addf %359, %361 : vector<8x512xf32>
    %363 = vector.extract_strided_slice %362 {offsets = [0, 0], sizes = [8, 128], strides = [1, 1]} : vector<8x512xf32> to vector<8x128xf32>
    %364 = arith.negf %363 : vector<8x128xf32>
    %365 = math.exp %364 : vector<8x128xf32>
    %cst_59 = arith.constant 1.000000e+00 : f32
    %366 = vector.broadcast %cst_59 : f32 to vector<8x128xf32>
    %367 = arith.addf %366, %365 : vector<8x128xf32>
    %368 = arith.divf %366, %367 : vector<8x128xf32>
    %369 = vector.extract_strided_slice %362 {offsets = [0, 128], sizes = [8, 128], strides = [1, 1]} : vector<8x512xf32> to vector<8x128xf32>
    %370 = arith.negf %369 : vector<8x128xf32>
    %371 = math.exp %370 : vector<8x128xf32>
    %cst_60 = arith.constant 1.000000e+00 : f32
    %372 = vector.broadcast %cst_60 : f32 to vector<8x128xf32>
    %373 = arith.addf %372, %371 : vector<8x128xf32>
    %374 = arith.divf %372, %373 : vector<8x128xf32>
    %375 = vector.extract_strided_slice %362 {offsets = [0, 256], sizes = [8, 128], strides = [1, 1]} : vector<8x512xf32> to vector<8x128xf32>
    %376 = math.tanh %375 : vector<8x128xf32>
    %377 = vector.extract_strided_slice %362 {offsets = [0, 384], sizes = [8, 128], strides = [1, 1]} : vector<8x512xf32> to vector<8x128xf32>
    %378 = arith.negf %377 : vector<8x128xf32>
    %379 = math.exp %378 : vector<8x128xf32>
    %cst_61 = arith.constant 1.000000e+00 : f32
    %380 = vector.broadcast %cst_61 : f32 to vector<8x128xf32>
    %381 = arith.addf %380, %379 : vector<8x128xf32>
    %382 = arith.divf %380, %381 : vector<8x128xf32>
    %383 = arith.mulf %374, %356 : vector<8x128xf32>
    %384 = arith.mulf %368, %376 : vector<8x128xf32>
    %385 = arith.addf %383, %384 : vector<8x128xf32>
    %386 = math.tanh %385 : vector<8x128xf32>
    %387 = arith.mulf %382, %386 : vector<8x128xf32>
    %388 = vector.extract_strided_slice %7 {offsets = [104, 0], sizes = [8, 512], strides = [1, 1]} : vector<224x512xf32> to vector<8x512xf32>
    %389 = arith.truncf %387 : vector<8x128xf32> to vector<8x128xbf16>
    %cst_62 = arith.constant dense<0.000000e+00> : vector<8x512xf32>
    %390 = tpu.matmul %389, %8, %cst_62 {dimension_numbers = #tpu.dot_dimension_numbers<[1], [0], [0], [1], [0, 0, 1, 1], [], []>} : vector<8x128xbf16>, vector<128x512xbf16>, vector<8x512xf32> -> vector<8x512xf32>
    %391 = arith.addf %388, %390 : vector<8x512xf32>
    %392 = vector.extract_strided_slice %391 {offsets = [0, 0], sizes = [8, 128], strides = [1, 1]} : vector<8x512xf32> to vector<8x128xf32>
    %393 = arith.negf %392 : vector<8x128xf32>
    %394 = math.exp %393 : vector<8x128xf32>
    %cst_63 = arith.constant 1.000000e+00 : f32
    %395 = vector.broadcast %cst_63 : f32 to vector<8x128xf32>
    %396 = arith.addf %395, %394 : vector<8x128xf32>
    %397 = arith.divf %395, %396 : vector<8x128xf32>
    %398 = vector.extract_strided_slice %391 {offsets = [0, 128], sizes = [8, 128], strides = [1, 1]} : vector<8x512xf32> to vector<8x128xf32>
    %399 = arith.negf %398 : vector<8x128xf32>
    %400 = math.exp %399 : vector<8x128xf32>
    %cst_64 = arith.constant 1.000000e+00 : f32
    %401 = vector.broadcast %cst_64 : f32 to vector<8x128xf32>
    %402 = arith.addf %401, %400 : vector<8x128xf32>
    %403 = arith.divf %401, %402 : vector<8x128xf32>
    %404 = vector.extract_strided_slice %391 {offsets = [0, 256], sizes = [8, 128], strides = [1, 1]} : vector<8x512xf32> to vector<8x128xf32>
    %405 = math.tanh %404 : vector<8x128xf32>
    %406 = vector.extract_strided_slice %391 {offsets = [0, 384], sizes = [8, 128], strides = [1, 1]} : vector<8x512xf32> to vector<8x128xf32>
    %407 = arith.negf %406 : vector<8x128xf32>
    %408 = math.exp %407 : vector<8x128xf32>
    %cst_65 = arith.constant 1.000000e+00 : f32
    %409 = vector.broadcast %cst_65 : f32 to vector<8x128xf32>
    %410 = arith.addf %409, %408 : vector<8x128xf32>
    %411 = arith.divf %409, %410 : vector<8x128xf32>
    %412 = arith.mulf %403, %385 : vector<8x128xf32>
    %413 = arith.mulf %397, %405 : vector<8x128xf32>
    %414 = arith.addf %412, %413 : vector<8x128xf32>
    %415 = math.tanh %414 : vector<8x128xf32>
    %416 = arith.mulf %411, %415 : vector<8x128xf32>
    %417 = vector.extract_strided_slice %7 {offsets = [112, 0], sizes = [8, 512], strides = [1, 1]} : vector<224x512xf32> to vector<8x512xf32>
    %418 = arith.truncf %416 : vector<8x128xf32> to vector<8x128xbf16>
    %cst_66 = arith.constant dense<0.000000e+00> : vector<8x512xf32>
    %419 = tpu.matmul %418, %8, %cst_66 {dimension_numbers = #tpu.dot_dimension_numbers<[1], [0], [0], [1], [0, 0, 1, 1], [], []>} : vector<8x128xbf16>, vector<128x512xbf16>, vector<8x512xf32> -> vector<8x512xf32>
    %420 = arith.addf %417, %419 : vector<8x512xf32>
    %421 = vector.extract_strided_slice %420 {offsets = [0, 0], sizes = [8, 128], strides = [1, 1]} : vector<8x512xf32> to vector<8x128xf32>
    %422 = arith.negf %421 : vector<8x128xf32>
    %423 = math.exp %422 : vector<8x128xf32>
    %cst_67 = arith.constant 1.000000e+00 : f32
    %424 = vector.broadcast %cst_67 : f32 to vector<8x128xf32>
    %425 = arith.addf %424, %423 : vector<8x128xf32>
    %426 = arith.divf %424, %425 : vector<8x128xf32>
    %427 = vector.extract_strided_slice %420 {offsets = [0, 128], sizes = [8, 128], strides = [1, 1]} : vector<8x512xf32> to vector<8x128xf32>
    %428 = arith.negf %427 : vector<8x128xf32>
    %429 = math.exp %428 : vector<8x128xf32>
    %cst_68 = arith.constant 1.000000e+00 : f32
    %430 = vector.broadcast %cst_68 : f32 to vector<8x128xf32>
    %431 = arith.addf %430, %429 : vector<8x128xf32>
    %432 = arith.divf %430, %431 : vector<8x128xf32>
    %433 = vector.extract_strided_slice %420 {offsets = [0, 256], sizes = [8, 128], strides = [1, 1]} : vector<8x512xf32> to vector<8x128xf32>
    %434 = math.tanh %433 : vector<8x128xf32>
    %435 = vector.extract_strided_slice %420 {offsets = [0, 384], sizes = [8, 128], strides = [1, 1]} : vector<8x512xf32> to vector<8x128xf32>
    %436 = arith.negf %435 : vector<8x128xf32>
    %437 = math.exp %436 : vector<8x128xf32>
    %cst_69 = arith.constant 1.000000e+00 : f32
    %438 = vector.broadcast %cst_69 : f32 to vector<8x128xf32>
    %439 = arith.addf %438, %437 : vector<8x128xf32>
    %440 = arith.divf %438, %439 : vector<8x128xf32>
    %441 = arith.mulf %432, %414 : vector<8x128xf32>
    %442 = arith.mulf %426, %434 : vector<8x128xf32>
    %443 = arith.addf %441, %442 : vector<8x128xf32>
    %444 = math.tanh %443 : vector<8x128xf32>
    %445 = arith.mulf %440, %444 : vector<8x128xf32>
    %446 = vector.extract_strided_slice %7 {offsets = [120, 0], sizes = [8, 512], strides = [1, 1]} : vector<224x512xf32> to vector<8x512xf32>
    %447 = arith.truncf %445 : vector<8x128xf32> to vector<8x128xbf16>
    %cst_70 = arith.constant dense<0.000000e+00> : vector<8x512xf32>
    %448 = tpu.matmul %447, %8, %cst_70 {dimension_numbers = #tpu.dot_dimension_numbers<[1], [0], [0], [1], [0, 0, 1, 1], [], []>} : vector<8x128xbf16>, vector<128x512xbf16>, vector<8x512xf32> -> vector<8x512xf32>
    %449 = arith.addf %446, %448 : vector<8x512xf32>
    %450 = vector.extract_strided_slice %449 {offsets = [0, 0], sizes = [8, 128], strides = [1, 1]} : vector<8x512xf32> to vector<8x128xf32>
    %451 = arith.negf %450 : vector<8x128xf32>
    %452 = math.exp %451 : vector<8x128xf32>
    %cst_71 = arith.constant 1.000000e+00 : f32
    %453 = vector.broadcast %cst_71 : f32 to vector<8x128xf32>
    %454 = arith.addf %453, %452 : vector<8x128xf32>
    %455 = arith.divf %453, %454 : vector<8x128xf32>
    %456 = vector.extract_strided_slice %449 {offsets = [0, 128], sizes = [8, 128], strides = [1, 1]} : vector<8x512xf32> to vector<8x128xf32>
    %457 = arith.negf %456 : vector<8x128xf32>
    %458 = math.exp %457 : vector<8x128xf32>
    %cst_72 = arith.constant 1.000000e+00 : f32
    %459 = vector.broadcast %cst_72 : f32 to vector<8x128xf32>
    %460 = arith.addf %459, %458 : vector<8x128xf32>
    %461 = arith.divf %459, %460 : vector<8x128xf32>
    %462 = vector.extract_strided_slice %449 {offsets = [0, 256], sizes = [8, 128], strides = [1, 1]} : vector<8x512xf32> to vector<8x128xf32>
    %463 = math.tanh %462 : vector<8x128xf32>
    %464 = vector.extract_strided_slice %449 {offsets = [0, 384], sizes = [8, 128], strides = [1, 1]} : vector<8x512xf32> to vector<8x128xf32>
    %465 = arith.negf %464 : vector<8x128xf32>
    %466 = math.exp %465 : vector<8x128xf32>
    %cst_73 = arith.constant 1.000000e+00 : f32
    %467 = vector.broadcast %cst_73 : f32 to vector<8x128xf32>
    %468 = arith.addf %467, %466 : vector<8x128xf32>
    %469 = arith.divf %467, %468 : vector<8x128xf32>
    %470 = arith.mulf %461, %443 : vector<8x128xf32>
    %471 = arith.mulf %455, %463 : vector<8x128xf32>
    %472 = arith.addf %470, %471 : vector<8x128xf32>
    %473 = math.tanh %472 : vector<8x128xf32>
    %474 = arith.mulf %469, %473 : vector<8x128xf32>
    %475 = vector.extract_strided_slice %7 {offsets = [128, 0], sizes = [8, 512], strides = [1, 1]} : vector<224x512xf32> to vector<8x512xf32>
    %476 = arith.truncf %474 : vector<8x128xf32> to vector<8x128xbf16>
    %cst_74 = arith.constant dense<0.000000e+00> : vector<8x512xf32>
    %477 = tpu.matmul %476, %8, %cst_74 {dimension_numbers = #tpu.dot_dimension_numbers<[1], [0], [0], [1], [0, 0, 1, 1], [], []>} : vector<8x128xbf16>, vector<128x512xbf16>, vector<8x512xf32> -> vector<8x512xf32>
    %478 = arith.addf %475, %477 : vector<8x512xf32>
    %479 = vector.extract_strided_slice %478 {offsets = [0, 0], sizes = [8, 128], strides = [1, 1]} : vector<8x512xf32> to vector<8x128xf32>
    %480 = arith.negf %479 : vector<8x128xf32>
    %481 = math.exp %480 : vector<8x128xf32>
    %cst_75 = arith.constant 1.000000e+00 : f32
    %482 = vector.broadcast %cst_75 : f32 to vector<8x128xf32>
    %483 = arith.addf %482, %481 : vector<8x128xf32>
    %484 = arith.divf %482, %483 : vector<8x128xf32>
    %485 = vector.extract_strided_slice %478 {offsets = [0, 128], sizes = [8, 128], strides = [1, 1]} : vector<8x512xf32> to vector<8x128xf32>
    %486 = arith.negf %485 : vector<8x128xf32>
    %487 = math.exp %486 : vector<8x128xf32>
    %cst_76 = arith.constant 1.000000e+00 : f32
    %488 = vector.broadcast %cst_76 : f32 to vector<8x128xf32>
    %489 = arith.addf %488, %487 : vector<8x128xf32>
    %490 = arith.divf %488, %489 : vector<8x128xf32>
    %491 = vector.extract_strided_slice %478 {offsets = [0, 256], sizes = [8, 128], strides = [1, 1]} : vector<8x512xf32> to vector<8x128xf32>
    %492 = math.tanh %491 : vector<8x128xf32>
    %493 = vector.extract_strided_slice %478 {offsets = [0, 384], sizes = [8, 128], strides = [1, 1]} : vector<8x512xf32> to vector<8x128xf32>
    %494 = arith.negf %493 : vector<8x128xf32>
    %495 = math.exp %494 : vector<8x128xf32>
    %cst_77 = arith.constant 1.000000e+00 : f32
    %496 = vector.broadcast %cst_77 : f32 to vector<8x128xf32>
    %497 = arith.addf %496, %495 : vector<8x128xf32>
    %498 = arith.divf %496, %497 : vector<8x128xf32>
    %499 = arith.mulf %490, %472 : vector<8x128xf32>
    %500 = arith.mulf %484, %492 : vector<8x128xf32>
    %501 = arith.addf %499, %500 : vector<8x128xf32>
    %502 = math.tanh %501 : vector<8x128xf32>
    %503 = arith.mulf %498, %502 : vector<8x128xf32>
    %504 = vector.extract_strided_slice %7 {offsets = [136, 0], sizes = [8, 512], strides = [1, 1]} : vector<224x512xf32> to vector<8x512xf32>
    %505 = arith.truncf %503 : vector<8x128xf32> to vector<8x128xbf16>
    %cst_78 = arith.constant dense<0.000000e+00> : vector<8x512xf32>
    %506 = tpu.matmul %505, %8, %cst_78 {dimension_numbers = #tpu.dot_dimension_numbers<[1], [0], [0], [1], [0, 0, 1, 1], [], []>} : vector<8x128xbf16>, vector<128x512xbf16>, vector<8x512xf32> -> vector<8x512xf32>
    %507 = arith.addf %504, %506 : vector<8x512xf32>
    %508 = vector.extract_strided_slice %507 {offsets = [0, 0], sizes = [8, 128], strides = [1, 1]} : vector<8x512xf32> to vector<8x128xf32>
    %509 = arith.negf %508 : vector<8x128xf32>
    %510 = math.exp %509 : vector<8x128xf32>
    %cst_79 = arith.constant 1.000000e+00 : f32
    %511 = vector.broadcast %cst_79 : f32 to vector<8x128xf32>
    %512 = arith.addf %511, %510 : vector<8x128xf32>
    %513 = arith.divf %511, %512 : vector<8x128xf32>
    %514 = vector.extract_strided_slice %507 {offsets = [0, 128], sizes = [8, 128], strides = [1, 1]} : vector<8x512xf32> to vector<8x128xf32>
    %515 = arith.negf %514 : vector<8x128xf32>
    %516 = math.exp %515 : vector<8x128xf32>
    %cst_80 = arith.constant 1.000000e+00 : f32
    %517 = vector.broadcast %cst_80 : f32 to vector<8x128xf32>
    %518 = arith.addf %517, %516 : vector<8x128xf32>
    %519 = arith.divf %517, %518 : vector<8x128xf32>
    %520 = vector.extract_strided_slice %507 {offsets = [0, 256], sizes = [8, 128], strides = [1, 1]} : vector<8x512xf32> to vector<8x128xf32>
    %521 = math.tanh %520 : vector<8x128xf32>
    %522 = vector.extract_strided_slice %507 {offsets = [0, 384], sizes = [8, 128], strides = [1, 1]} : vector<8x512xf32> to vector<8x128xf32>
    %523 = arith.negf %522 : vector<8x128xf32>
    %524 = math.exp %523 : vector<8x128xf32>
    %cst_81 = arith.constant 1.000000e+00 : f32
    %525 = vector.broadcast %cst_81 : f32 to vector<8x128xf32>
    %526 = arith.addf %525, %524 : vector<8x128xf32>
    %527 = arith.divf %525, %526 : vector<8x128xf32>
    %528 = arith.mulf %519, %501 : vector<8x128xf32>
    %529 = arith.mulf %513, %521 : vector<8x128xf32>
    %530 = arith.addf %528, %529 : vector<8x128xf32>
    %531 = math.tanh %530 : vector<8x128xf32>
    %532 = arith.mulf %527, %531 : vector<8x128xf32>
    %533 = vector.extract_strided_slice %7 {offsets = [144, 0], sizes = [8, 512], strides = [1, 1]} : vector<224x512xf32> to vector<8x512xf32>
    %534 = arith.truncf %532 : vector<8x128xf32> to vector<8x128xbf16>
    %cst_82 = arith.constant dense<0.000000e+00> : vector<8x512xf32>
    %535 = tpu.matmul %534, %8, %cst_82 {dimension_numbers = #tpu.dot_dimension_numbers<[1], [0], [0], [1], [0, 0, 1, 1], [], []>} : vector<8x128xbf16>, vector<128x512xbf16>, vector<8x512xf32> -> vector<8x512xf32>
    %536 = arith.addf %533, %535 : vector<8x512xf32>
    %537 = vector.extract_strided_slice %536 {offsets = [0, 0], sizes = [8, 128], strides = [1, 1]} : vector<8x512xf32> to vector<8x128xf32>
    %538 = arith.negf %537 : vector<8x128xf32>
    %539 = math.exp %538 : vector<8x128xf32>
    %cst_83 = arith.constant 1.000000e+00 : f32
    %540 = vector.broadcast %cst_83 : f32 to vector<8x128xf32>
    %541 = arith.addf %540, %539 : vector<8x128xf32>
    %542 = arith.divf %540, %541 : vector<8x128xf32>
    %543 = vector.extract_strided_slice %536 {offsets = [0, 128], sizes = [8, 128], strides = [1, 1]} : vector<8x512xf32> to vector<8x128xf32>
    %544 = arith.negf %543 : vector<8x128xf32>
    %545 = math.exp %544 : vector<8x128xf32>
    %cst_84 = arith.constant 1.000000e+00 : f32
    %546 = vector.broadcast %cst_84 : f32 to vector<8x128xf32>
    %547 = arith.addf %546, %545 : vector<8x128xf32>
    %548 = arith.divf %546, %547 : vector<8x128xf32>
    %549 = vector.extract_strided_slice %536 {offsets = [0, 256], sizes = [8, 128], strides = [1, 1]} : vector<8x512xf32> to vector<8x128xf32>
    %550 = math.tanh %549 : vector<8x128xf32>
    %551 = vector.extract_strided_slice %536 {offsets = [0, 384], sizes = [8, 128], strides = [1, 1]} : vector<8x512xf32> to vector<8x128xf32>
    %552 = arith.negf %551 : vector<8x128xf32>
    %553 = math.exp %552 : vector<8x128xf32>
    %cst_85 = arith.constant 1.000000e+00 : f32
    %554 = vector.broadcast %cst_85 : f32 to vector<8x128xf32>
    %555 = arith.addf %554, %553 : vector<8x128xf32>
    %556 = arith.divf %554, %555 : vector<8x128xf32>
    %557 = arith.mulf %548, %530 : vector<8x128xf32>
    %558 = arith.mulf %542, %550 : vector<8x128xf32>
    %559 = arith.addf %557, %558 : vector<8x128xf32>
    %560 = math.tanh %559 : vector<8x128xf32>
    %561 = arith.mulf %556, %560 : vector<8x128xf32>
    %562 = vector.extract_strided_slice %7 {offsets = [152, 0], sizes = [8, 512], strides = [1, 1]} : vector<224x512xf32> to vector<8x512xf32>
    %563 = arith.truncf %561 : vector<8x128xf32> to vector<8x128xbf16>
    %cst_86 = arith.constant dense<0.000000e+00> : vector<8x512xf32>
    %564 = tpu.matmul %563, %8, %cst_86 {dimension_numbers = #tpu.dot_dimension_numbers<[1], [0], [0], [1], [0, 0, 1, 1], [], []>} : vector<8x128xbf16>, vector<128x512xbf16>, vector<8x512xf32> -> vector<8x512xf32>
    %565 = arith.addf %562, %564 : vector<8x512xf32>
    %566 = vector.extract_strided_slice %565 {offsets = [0, 0], sizes = [8, 128], strides = [1, 1]} : vector<8x512xf32> to vector<8x128xf32>
    %567 = arith.negf %566 : vector<8x128xf32>
    %568 = math.exp %567 : vector<8x128xf32>
    %cst_87 = arith.constant 1.000000e+00 : f32
    %569 = vector.broadcast %cst_87 : f32 to vector<8x128xf32>
    %570 = arith.addf %569, %568 : vector<8x128xf32>
    %571 = arith.divf %569, %570 : vector<8x128xf32>
    %572 = vector.extract_strided_slice %565 {offsets = [0, 128], sizes = [8, 128], strides = [1, 1]} : vector<8x512xf32> to vector<8x128xf32>
    %573 = arith.negf %572 : vector<8x128xf32>
    %574 = math.exp %573 : vector<8x128xf32>
    %cst_88 = arith.constant 1.000000e+00 : f32
    %575 = vector.broadcast %cst_88 : f32 to vector<8x128xf32>
    %576 = arith.addf %575, %574 : vector<8x128xf32>
    %577 = arith.divf %575, %576 : vector<8x128xf32>
    %578 = vector.extract_strided_slice %565 {offsets = [0, 256], sizes = [8, 128], strides = [1, 1]} : vector<8x512xf32> to vector<8x128xf32>
    %579 = math.tanh %578 : vector<8x128xf32>
    %580 = vector.extract_strided_slice %565 {offsets = [0, 384], sizes = [8, 128], strides = [1, 1]} : vector<8x512xf32> to vector<8x128xf32>
    %581 = arith.negf %580 : vector<8x128xf32>
    %582 = math.exp %581 : vector<8x128xf32>
    %cst_89 = arith.constant 1.000000e+00 : f32
    %583 = vector.broadcast %cst_89 : f32 to vector<8x128xf32>
    %584 = arith.addf %583, %582 : vector<8x128xf32>
    %585 = arith.divf %583, %584 : vector<8x128xf32>
    %586 = arith.mulf %577, %559 : vector<8x128xf32>
    %587 = arith.mulf %571, %579 : vector<8x128xf32>
    %588 = arith.addf %586, %587 : vector<8x128xf32>
    %589 = math.tanh %588 : vector<8x128xf32>
    %590 = arith.mulf %585, %589 : vector<8x128xf32>
    %591 = vector.extract_strided_slice %7 {offsets = [160, 0], sizes = [8, 512], strides = [1, 1]} : vector<224x512xf32> to vector<8x512xf32>
    %592 = arith.truncf %590 : vector<8x128xf32> to vector<8x128xbf16>
    %cst_90 = arith.constant dense<0.000000e+00> : vector<8x512xf32>
    %593 = tpu.matmul %592, %8, %cst_90 {dimension_numbers = #tpu.dot_dimension_numbers<[1], [0], [0], [1], [0, 0, 1, 1], [], []>} : vector<8x128xbf16>, vector<128x512xbf16>, vector<8x512xf32> -> vector<8x512xf32>
    %594 = arith.addf %591, %593 : vector<8x512xf32>
    %595 = vector.extract_strided_slice %594 {offsets = [0, 0], sizes = [8, 128], strides = [1, 1]} : vector<8x512xf32> to vector<8x128xf32>
    %596 = arith.negf %595 : vector<8x128xf32>
    %597 = math.exp %596 : vector<8x128xf32>
    %cst_91 = arith.constant 1.000000e+00 : f32
    %598 = vector.broadcast %cst_91 : f32 to vector<8x128xf32>
    %599 = arith.addf %598, %597 : vector<8x128xf32>
    %600 = arith.divf %598, %599 : vector<8x128xf32>
    %601 = vector.extract_strided_slice %594 {offsets = [0, 128], sizes = [8, 128], strides = [1, 1]} : vector<8x512xf32> to vector<8x128xf32>
    %602 = arith.negf %601 : vector<8x128xf32>
    %603 = math.exp %602 : vector<8x128xf32>
    %cst_92 = arith.constant 1.000000e+00 : f32
    %604 = vector.broadcast %cst_92 : f32 to vector<8x128xf32>
    %605 = arith.addf %604, %603 : vector<8x128xf32>
    %606 = arith.divf %604, %605 : vector<8x128xf32>
    %607 = vector.extract_strided_slice %594 {offsets = [0, 256], sizes = [8, 128], strides = [1, 1]} : vector<8x512xf32> to vector<8x128xf32>
    %608 = math.tanh %607 : vector<8x128xf32>
    %609 = vector.extract_strided_slice %594 {offsets = [0, 384], sizes = [8, 128], strides = [1, 1]} : vector<8x512xf32> to vector<8x128xf32>
    %610 = arith.negf %609 : vector<8x128xf32>
    %611 = math.exp %610 : vector<8x128xf32>
    %cst_93 = arith.constant 1.000000e+00 : f32
    %612 = vector.broadcast %cst_93 : f32 to vector<8x128xf32>
    %613 = arith.addf %612, %611 : vector<8x128xf32>
    %614 = arith.divf %612, %613 : vector<8x128xf32>
    %615 = arith.mulf %606, %588 : vector<8x128xf32>
    %616 = arith.mulf %600, %608 : vector<8x128xf32>
    %617 = arith.addf %615, %616 : vector<8x128xf32>
    %618 = math.tanh %617 : vector<8x128xf32>
    %619 = arith.mulf %614, %618 : vector<8x128xf32>
    %620 = vector.extract_strided_slice %7 {offsets = [168, 0], sizes = [8, 512], strides = [1, 1]} : vector<224x512xf32> to vector<8x512xf32>
    %621 = arith.truncf %619 : vector<8x128xf32> to vector<8x128xbf16>
    %cst_94 = arith.constant dense<0.000000e+00> : vector<8x512xf32>
    %622 = tpu.matmul %621, %8, %cst_94 {dimension_numbers = #tpu.dot_dimension_numbers<[1], [0], [0], [1], [0, 0, 1, 1], [], []>} : vector<8x128xbf16>, vector<128x512xbf16>, vector<8x512xf32> -> vector<8x512xf32>
    %623 = arith.addf %620, %622 : vector<8x512xf32>
    %624 = vector.extract_strided_slice %623 {offsets = [0, 0], sizes = [8, 128], strides = [1, 1]} : vector<8x512xf32> to vector<8x128xf32>
    %625 = arith.negf %624 : vector<8x128xf32>
    %626 = math.exp %625 : vector<8x128xf32>
    %cst_95 = arith.constant 1.000000e+00 : f32
    %627 = vector.broadcast %cst_95 : f32 to vector<8x128xf32>
    %628 = arith.addf %627, %626 : vector<8x128xf32>
    %629 = arith.divf %627, %628 : vector<8x128xf32>
    %630 = vector.extract_strided_slice %623 {offsets = [0, 128], sizes = [8, 128], strides = [1, 1]} : vector<8x512xf32> to vector<8x128xf32>
    %631 = arith.negf %630 : vector<8x128xf32>
    %632 = math.exp %631 : vector<8x128xf32>
    %cst_96 = arith.constant 1.000000e+00 : f32
    %633 = vector.broadcast %cst_96 : f32 to vector<8x128xf32>
    %634 = arith.addf %633, %632 : vector<8x128xf32>
    %635 = arith.divf %633, %634 : vector<8x128xf32>
    %636 = vector.extract_strided_slice %623 {offsets = [0, 256], sizes = [8, 128], strides = [1, 1]} : vector<8x512xf32> to vector<8x128xf32>
    %637 = math.tanh %636 : vector<8x128xf32>
    %638 = vector.extract_strided_slice %623 {offsets = [0, 384], sizes = [8, 128], strides = [1, 1]} : vector<8x512xf32> to vector<8x128xf32>
    %639 = arith.negf %638 : vector<8x128xf32>
    %640 = math.exp %639 : vector<8x128xf32>
    %cst_97 = arith.constant 1.000000e+00 : f32
    %641 = vector.broadcast %cst_97 : f32 to vector<8x128xf32>
    %642 = arith.addf %641, %640 : vector<8x128xf32>
    %643 = arith.divf %641, %642 : vector<8x128xf32>
    %644 = arith.mulf %635, %617 : vector<8x128xf32>
    %645 = arith.mulf %629, %637 : vector<8x128xf32>
    %646 = arith.addf %644, %645 : vector<8x128xf32>
    %647 = math.tanh %646 : vector<8x128xf32>
    %648 = arith.mulf %643, %647 : vector<8x128xf32>
    %649 = vector.extract_strided_slice %7 {offsets = [176, 0], sizes = [8, 512], strides = [1, 1]} : vector<224x512xf32> to vector<8x512xf32>
    %650 = arith.truncf %648 : vector<8x128xf32> to vector<8x128xbf16>
    %cst_98 = arith.constant dense<0.000000e+00> : vector<8x512xf32>
    %651 = tpu.matmul %650, %8, %cst_98 {dimension_numbers = #tpu.dot_dimension_numbers<[1], [0], [0], [1], [0, 0, 1, 1], [], []>} : vector<8x128xbf16>, vector<128x512xbf16>, vector<8x512xf32> -> vector<8x512xf32>
    %652 = arith.addf %649, %651 : vector<8x512xf32>
    %653 = vector.extract_strided_slice %652 {offsets = [0, 0], sizes = [8, 128], strides = [1, 1]} : vector<8x512xf32> to vector<8x128xf32>
    %654 = arith.negf %653 : vector<8x128xf32>
    %655 = math.exp %654 : vector<8x128xf32>
    %cst_99 = arith.constant 1.000000e+00 : f32
    %656 = vector.broadcast %cst_99 : f32 to vector<8x128xf32>
    %657 = arith.addf %656, %655 : vector<8x128xf32>
    %658 = arith.divf %656, %657 : vector<8x128xf32>
    %659 = vector.extract_strided_slice %652 {offsets = [0, 128], sizes = [8, 128], strides = [1, 1]} : vector<8x512xf32> to vector<8x128xf32>
    %660 = arith.negf %659 : vector<8x128xf32>
    %661 = math.exp %660 : vector<8x128xf32>
    %cst_100 = arith.constant 1.000000e+00 : f32
    %662 = vector.broadcast %cst_100 : f32 to vector<8x128xf32>
    %663 = arith.addf %662, %661 : vector<8x128xf32>
    %664 = arith.divf %662, %663 : vector<8x128xf32>
    %665 = vector.extract_strided_slice %652 {offsets = [0, 256], sizes = [8, 128], strides = [1, 1]} : vector<8x512xf32> to vector<8x128xf32>
    %666 = math.tanh %665 : vector<8x128xf32>
    %667 = vector.extract_strided_slice %652 {offsets = [0, 384], sizes = [8, 128], strides = [1, 1]} : vector<8x512xf32> to vector<8x128xf32>
    %668 = arith.negf %667 : vector<8x128xf32>
    %669 = math.exp %668 : vector<8x128xf32>
    %cst_101 = arith.constant 1.000000e+00 : f32
    %670 = vector.broadcast %cst_101 : f32 to vector<8x128xf32>
    %671 = arith.addf %670, %669 : vector<8x128xf32>
    %672 = arith.divf %670, %671 : vector<8x128xf32>
    %673 = arith.mulf %664, %646 : vector<8x128xf32>
    %674 = arith.mulf %658, %666 : vector<8x128xf32>
    %675 = arith.addf %673, %674 : vector<8x128xf32>
    %676 = math.tanh %675 : vector<8x128xf32>
    %677 = arith.mulf %672, %676 : vector<8x128xf32>
    %678 = vector.extract_strided_slice %7 {offsets = [184, 0], sizes = [8, 512], strides = [1, 1]} : vector<224x512xf32> to vector<8x512xf32>
    %679 = arith.truncf %677 : vector<8x128xf32> to vector<8x128xbf16>
    %cst_102 = arith.constant dense<0.000000e+00> : vector<8x512xf32>
    %680 = tpu.matmul %679, %8, %cst_102 {dimension_numbers = #tpu.dot_dimension_numbers<[1], [0], [0], [1], [0, 0, 1, 1], [], []>} : vector<8x128xbf16>, vector<128x512xbf16>, vector<8x512xf32> -> vector<8x512xf32>
    %681 = arith.addf %678, %680 : vector<8x512xf32>
    %682 = vector.extract_strided_slice %681 {offsets = [0, 0], sizes = [8, 128], strides = [1, 1]} : vector<8x512xf32> to vector<8x128xf32>
    %683 = arith.negf %682 : vector<8x128xf32>
    %684 = math.exp %683 : vector<8x128xf32>
    %cst_103 = arith.constant 1.000000e+00 : f32
    %685 = vector.broadcast %cst_103 : f32 to vector<8x128xf32>
    %686 = arith.addf %685, %684 : vector<8x128xf32>
    %687 = arith.divf %685, %686 : vector<8x128xf32>
    %688 = vector.extract_strided_slice %681 {offsets = [0, 128], sizes = [8, 128], strides = [1, 1]} : vector<8x512xf32> to vector<8x128xf32>
    %689 = arith.negf %688 : vector<8x128xf32>
    %690 = math.exp %689 : vector<8x128xf32>
    %cst_104 = arith.constant 1.000000e+00 : f32
    %691 = vector.broadcast %cst_104 : f32 to vector<8x128xf32>
    %692 = arith.addf %691, %690 : vector<8x128xf32>
    %693 = arith.divf %691, %692 : vector<8x128xf32>
    %694 = vector.extract_strided_slice %681 {offsets = [0, 256], sizes = [8, 128], strides = [1, 1]} : vector<8x512xf32> to vector<8x128xf32>
    %695 = math.tanh %694 : vector<8x128xf32>
    %696 = vector.extract_strided_slice %681 {offsets = [0, 384], sizes = [8, 128], strides = [1, 1]} : vector<8x512xf32> to vector<8x128xf32>
    %697 = arith.negf %696 : vector<8x128xf32>
    %698 = math.exp %697 : vector<8x128xf32>
    %cst_105 = arith.constant 1.000000e+00 : f32
    %699 = vector.broadcast %cst_105 : f32 to vector<8x128xf32>
    %700 = arith.addf %699, %698 : vector<8x128xf32>
    %701 = arith.divf %699, %700 : vector<8x128xf32>
    %702 = arith.mulf %693, %675 : vector<8x128xf32>
    %703 = arith.mulf %687, %695 : vector<8x128xf32>
    %704 = arith.addf %702, %703 : vector<8x128xf32>
    %705 = math.tanh %704 : vector<8x128xf32>
    %706 = arith.mulf %701, %705 : vector<8x128xf32>
    %707 = vector.extract_strided_slice %7 {offsets = [192, 0], sizes = [8, 512], strides = [1, 1]} : vector<224x512xf32> to vector<8x512xf32>
    %708 = arith.truncf %706 : vector<8x128xf32> to vector<8x128xbf16>
    %cst_106 = arith.constant dense<0.000000e+00> : vector<8x512xf32>
    %709 = tpu.matmul %708, %8, %cst_106 {dimension_numbers = #tpu.dot_dimension_numbers<[1], [0], [0], [1], [0, 0, 1, 1], [], []>} : vector<8x128xbf16>, vector<128x512xbf16>, vector<8x512xf32> -> vector<8x512xf32>
    %710 = arith.addf %707, %709 : vector<8x512xf32>
    %711 = vector.extract_strided_slice %710 {offsets = [0, 0], sizes = [8, 128], strides = [1, 1]} : vector<8x512xf32> to vector<8x128xf32>
    %712 = arith.negf %711 : vector<8x128xf32>
    %713 = math.exp %712 : vector<8x128xf32>
    %cst_107 = arith.constant 1.000000e+00 : f32
    %714 = vector.broadcast %cst_107 : f32 to vector<8x128xf32>
    %715 = arith.addf %714, %713 : vector<8x128xf32>
    %716 = arith.divf %714, %715 : vector<8x128xf32>
    %717 = vector.extract_strided_slice %710 {offsets = [0, 128], sizes = [8, 128], strides = [1, 1]} : vector<8x512xf32> to vector<8x128xf32>
    %718 = arith.negf %717 : vector<8x128xf32>
    %719 = math.exp %718 : vector<8x128xf32>
    %cst_108 = arith.constant 1.000000e+00 : f32
    %720 = vector.broadcast %cst_108 : f32 to vector<8x128xf32>
    %721 = arith.addf %720, %719 : vector<8x128xf32>
    %722 = arith.divf %720, %721 : vector<8x128xf32>
    %723 = vector.extract_strided_slice %710 {offsets = [0, 256], sizes = [8, 128], strides = [1, 1]} : vector<8x512xf32> to vector<8x128xf32>
    %724 = math.tanh %723 : vector<8x128xf32>
    %725 = vector.extract_strided_slice %710 {offsets = [0, 384], sizes = [8, 128], strides = [1, 1]} : vector<8x512xf32> to vector<8x128xf32>
    %726 = arith.negf %725 : vector<8x128xf32>
    %727 = math.exp %726 : vector<8x128xf32>
    %cst_109 = arith.constant 1.000000e+00 : f32
    %728 = vector.broadcast %cst_109 : f32 to vector<8x128xf32>
    %729 = arith.addf %728, %727 : vector<8x128xf32>
    %730 = arith.divf %728, %729 : vector<8x128xf32>
    %731 = arith.mulf %722, %704 : vector<8x128xf32>
    %732 = arith.mulf %716, %724 : vector<8x128xf32>
    %733 = arith.addf %731, %732 : vector<8x128xf32>
    %734 = math.tanh %733 : vector<8x128xf32>
    %735 = arith.mulf %730, %734 : vector<8x128xf32>
    %736 = vector.extract_strided_slice %7 {offsets = [200, 0], sizes = [8, 512], strides = [1, 1]} : vector<224x512xf32> to vector<8x512xf32>
    %737 = arith.truncf %735 : vector<8x128xf32> to vector<8x128xbf16>
    %cst_110 = arith.constant dense<0.000000e+00> : vector<8x512xf32>
    %738 = tpu.matmul %737, %8, %cst_110 {dimension_numbers = #tpu.dot_dimension_numbers<[1], [0], [0], [1], [0, 0, 1, 1], [], []>} : vector<8x128xbf16>, vector<128x512xbf16>, vector<8x512xf32> -> vector<8x512xf32>
    %739 = arith.addf %736, %738 : vector<8x512xf32>
    %740 = vector.extract_strided_slice %739 {offsets = [0, 0], sizes = [8, 128], strides = [1, 1]} : vector<8x512xf32> to vector<8x128xf32>
    %741 = arith.negf %740 : vector<8x128xf32>
    %742 = math.exp %741 : vector<8x128xf32>
    %cst_111 = arith.constant 1.000000e+00 : f32
    %743 = vector.broadcast %cst_111 : f32 to vector<8x128xf32>
    %744 = arith.addf %743, %742 : vector<8x128xf32>
    %745 = arith.divf %743, %744 : vector<8x128xf32>
    %746 = vector.extract_strided_slice %739 {offsets = [0, 128], sizes = [8, 128], strides = [1, 1]} : vector<8x512xf32> to vector<8x128xf32>
    %747 = arith.negf %746 : vector<8x128xf32>
    %748 = math.exp %747 : vector<8x128xf32>
    %cst_112 = arith.constant 1.000000e+00 : f32
    %749 = vector.broadcast %cst_112 : f32 to vector<8x128xf32>
    %750 = arith.addf %749, %748 : vector<8x128xf32>
    %751 = arith.divf %749, %750 : vector<8x128xf32>
    %752 = vector.extract_strided_slice %739 {offsets = [0, 256], sizes = [8, 128], strides = [1, 1]} : vector<8x512xf32> to vector<8x128xf32>
    %753 = math.tanh %752 : vector<8x128xf32>
    %754 = vector.extract_strided_slice %739 {offsets = [0, 384], sizes = [8, 128], strides = [1, 1]} : vector<8x512xf32> to vector<8x128xf32>
    %755 = arith.negf %754 : vector<8x128xf32>
    %756 = math.exp %755 : vector<8x128xf32>
    %cst_113 = arith.constant 1.000000e+00 : f32
    %757 = vector.broadcast %cst_113 : f32 to vector<8x128xf32>
    %758 = arith.addf %757, %756 : vector<8x128xf32>
    %759 = arith.divf %757, %758 : vector<8x128xf32>
    %760 = arith.mulf %751, %733 : vector<8x128xf32>
    %761 = arith.mulf %745, %753 : vector<8x128xf32>
    %762 = arith.addf %760, %761 : vector<8x128xf32>
    %763 = math.tanh %762 : vector<8x128xf32>
    %764 = arith.mulf %759, %763 : vector<8x128xf32>
    %765 = vector.extract_strided_slice %7 {offsets = [208, 0], sizes = [8, 512], strides = [1, 1]} : vector<224x512xf32> to vector<8x512xf32>
    %766 = arith.truncf %764 : vector<8x128xf32> to vector<8x128xbf16>
    %cst_114 = arith.constant dense<0.000000e+00> : vector<8x512xf32>
    %767 = tpu.matmul %766, %8, %cst_114 {dimension_numbers = #tpu.dot_dimension_numbers<[1], [0], [0], [1], [0, 0, 1, 1], [], []>} : vector<8x128xbf16>, vector<128x512xbf16>, vector<8x512xf32> -> vector<8x512xf32>
    %768 = arith.addf %765, %767 : vector<8x512xf32>
    %769 = vector.extract_strided_slice %768 {offsets = [0, 0], sizes = [8, 128], strides = [1, 1]} : vector<8x512xf32> to vector<8x128xf32>
    %770 = arith.negf %769 : vector<8x128xf32>
    %771 = math.exp %770 : vector<8x128xf32>
    %cst_115 = arith.constant 1.000000e+00 : f32
    %772 = vector.broadcast %cst_115 : f32 to vector<8x128xf32>
    %773 = arith.addf %772, %771 : vector<8x128xf32>
    %774 = arith.divf %772, %773 : vector<8x128xf32>
    %775 = vector.extract_strided_slice %768 {offsets = [0, 128], sizes = [8, 128], strides = [1, 1]} : vector<8x512xf32> to vector<8x128xf32>
    %776 = arith.negf %775 : vector<8x128xf32>
    %777 = math.exp %776 : vector<8x128xf32>
    %cst_116 = arith.constant 1.000000e+00 : f32
    %778 = vector.broadcast %cst_116 : f32 to vector<8x128xf32>
    %779 = arith.addf %778, %777 : vector<8x128xf32>
    %780 = arith.divf %778, %779 : vector<8x128xf32>
    %781 = vector.extract_strided_slice %768 {offsets = [0, 256], sizes = [8, 128], strides = [1, 1]} : vector<8x512xf32> to vector<8x128xf32>
    %782 = math.tanh %781 : vector<8x128xf32>
    %783 = vector.extract_strided_slice %768 {offsets = [0, 384], sizes = [8, 128], strides = [1, 1]} : vector<8x512xf32> to vector<8x128xf32>
    %784 = arith.negf %783 : vector<8x128xf32>
    %785 = math.exp %784 : vector<8x128xf32>
    %cst_117 = arith.constant 1.000000e+00 : f32
    %786 = vector.broadcast %cst_117 : f32 to vector<8x128xf32>
    %787 = arith.addf %786, %785 : vector<8x128xf32>
    %788 = arith.divf %786, %787 : vector<8x128xf32>
    %789 = arith.mulf %780, %762 : vector<8x128xf32>
    %790 = arith.mulf %774, %782 : vector<8x128xf32>
    %791 = arith.addf %789, %790 : vector<8x128xf32>
    %792 = math.tanh %791 : vector<8x128xf32>
    %793 = arith.mulf %788, %792 : vector<8x128xf32>
    %794 = vector.extract_strided_slice %7 {offsets = [216, 0], sizes = [8, 512], strides = [1, 1]} : vector<224x512xf32> to vector<8x512xf32>
    %795 = arith.truncf %793 : vector<8x128xf32> to vector<8x128xbf16>
    %cst_118 = arith.constant dense<0.000000e+00> : vector<8x512xf32>
    %796 = tpu.matmul %795, %8, %cst_118 {dimension_numbers = #tpu.dot_dimension_numbers<[1], [0], [0], [1], [0, 0, 1, 1], [], []>} : vector<8x128xbf16>, vector<128x512xbf16>, vector<8x512xf32> -> vector<8x512xf32>
    %797 = arith.addf %794, %796 : vector<8x512xf32>
    %798 = vector.extract_strided_slice %797 {offsets = [0, 0], sizes = [8, 128], strides = [1, 1]} : vector<8x512xf32> to vector<8x128xf32>
    %799 = arith.negf %798 : vector<8x128xf32>
    %800 = math.exp %799 : vector<8x128xf32>
    %cst_119 = arith.constant 1.000000e+00 : f32
    %801 = vector.broadcast %cst_119 : f32 to vector<8x128xf32>
    %802 = arith.addf %801, %800 : vector<8x128xf32>
    %803 = arith.divf %801, %802 : vector<8x128xf32>
    %804 = vector.extract_strided_slice %797 {offsets = [0, 128], sizes = [8, 128], strides = [1, 1]} : vector<8x512xf32> to vector<8x128xf32>
    %805 = arith.negf %804 : vector<8x128xf32>
    %806 = math.exp %805 : vector<8x128xf32>
    %cst_120 = arith.constant 1.000000e+00 : f32
    %807 = vector.broadcast %cst_120 : f32 to vector<8x128xf32>
    %808 = arith.addf %807, %806 : vector<8x128xf32>
    %809 = arith.divf %807, %808 : vector<8x128xf32>
    %810 = vector.extract_strided_slice %797 {offsets = [0, 256], sizes = [8, 128], strides = [1, 1]} : vector<8x512xf32> to vector<8x128xf32>
    %811 = math.tanh %810 : vector<8x128xf32>
    %812 = vector.extract_strided_slice %797 {offsets = [0, 384], sizes = [8, 128], strides = [1, 1]} : vector<8x512xf32> to vector<8x128xf32>
    %813 = arith.negf %812 : vector<8x128xf32>
    %814 = math.exp %813 : vector<8x128xf32>
    %cst_121 = arith.constant 1.000000e+00 : f32
    %815 = vector.broadcast %cst_121 : f32 to vector<8x128xf32>
    %816 = arith.addf %815, %814 : vector<8x128xf32>
    %817 = arith.divf %815, %816 : vector<8x128xf32>
    %818 = arith.mulf %809, %791 : vector<8x128xf32>
    %819 = arith.mulf %803, %811 : vector<8x128xf32>
    %820 = arith.addf %818, %819 : vector<8x128xf32>
    %821 = math.tanh %820 : vector<8x128xf32>
    %822 = arith.mulf %817, %821 : vector<8x128xf32>
    %823 = arith.truncf %822 : vector<8x128xf32> to vector<8x128xbf16>
    %c0_122 = arith.constant 0 : index
    %c0_123 = arith.constant 0 : index
    %824 = vector.load %arg5[%c0_122, %c0_123] : memref<128x128xbf16, #tpu.memory_space<vmem>>, vector<128x128xbf16>
    %cst_124 = arith.constant dense<0.000000e+00> : vector<8x128xf32>
    %825 = tpu.matmul %823, %824, %cst_124 {dimension_numbers = #tpu.dot_dimension_numbers<[1], [0], [0], [1], [0, 0, 1, 1], [], []>} : vector<8x128xbf16>, vector<128x128xbf16>, vector<8x128xf32> -> vector<8x128xf32>
    %c0_125 = arith.constant 0 : index
    %c0_126 = arith.constant 0 : index
    %826 = vector.load %arg6[%c0_125, %c0_126] : memref<1x128xf32, #tpu.memory_space<vmem>>, vector<1x128xf32>
    %827 = vector.broadcast %826 : vector<1x128xf32> to vector<8x128xf32>
    %828 = arith.addf %825, %827 : vector<8x128xf32>
    %c0_127 = arith.constant 0 : index
    %c0_128 = arith.constant 0 : index
    %829 = vector.load %arg7[%c0_127, %c0_128] : memref<8x128xf32, #tpu.memory_space<vmem>>, vector<8x128xf32>
    tpu.vector_store %arg7[%c0_127, %c0_128], %828 {strides = array<i32>} : memref<8x128xf32, #tpu.memory_space<vmem>>, vector<8x128xf32>,
    return
  }
  func.func @transform_0(%arg0: i32) -> (i32, i32, i32) {
    %c0_i32 = arith.constant 0 : i32
    %c0_i32_0 = arith.constant 0 : i32
    %c0_i32_1 = arith.constant 0 : i32
    return %c0_i32, %arg0, %c0_i32_0 : i32, i32, i32
  }
  func.func @transform_1(%arg0: i32) -> (i32, i32) {
    %c0_i32 = arith.constant 0 : i32
    %c0_i32_0 = arith.constant 0 : i32
    %c0_i32_1 = arith.constant 0 : i32
    return %c0_i32, %c0_i32_0 : i32, i32
  }
  func.func @transform_2(%arg0: i32) -> (i32, i32) {
    %c0_i32 = arith.constant 0 : i32
    %c0_i32_0 = arith.constant 0 : i32
    %c0_i32_1 = arith.constant 0 : i32
    return %c0_i32, %c0_i32_0 : i32, i32
  }
  func.func @transform_3(%arg0: i32) -> (i32, i32) {
    %c0_i32 = arith.constant 0 : i32
    %c0_i32_0 = arith.constant 0 : i32
    %c0_i32_1 = arith.constant 0 : i32
    return %c0_i32, %c0_i32_0 : i32, i32
  }
  func.func @transform_4(%arg0: i32) -> (i32, i32) {
    %c0_i32 = arith.constant 0 : i32
    %c0_i32_0 = arith.constant 0 : i32
    %c0_i32_1 = arith.constant 0 : i32
    return %c0_i32, %c0_i32_0 : i32, i32
  }
  func.func @transform_5(%arg0: i32) -> (i32, i32) {
    %c0_i32 = arith.constant 0 : i32
    %c0_i32_0 = arith.constant 0 : i32
    %c0_i32_1 = arith.constant 0 : i32
    return %c0_i32, %c0_i32_0 : i32, i32
  }
  func.func @transform_6(%arg0: i32) -> (i32, i32) {
    %c0_i32 = arith.constant 0 : i32
    %c0_i32_0 = arith.constant 0 : i32
    return %arg0, %c0_i32 : i32, i32
  }
}

</mosaic_0001>

<bundles_post_ra>
// kernel: mnist_rnn_forward.1
= control target key start
LH: loop header
LB: loop body
LE: loop exit
PB: predicated region body
PF: predicated region fallthrough
CT: control target
= control target key end

     0   :  { %11 = vsyncpa [#allocation4], 0  ;;  %s8032_s0 = inlined_call_operand.vmem [shape: f32[28,16,28], index: 0, kind: input, shape index: {}]   ;;  %s8033_s1 = inlined_call_operand.vmem [shape: bf16[28,512], index: 1, kind: input, shape index: {}]   ;;  %s8034_s2 = inlined_call_operand.vmem [shape: bf16[128,512], index: 2, kind: input, shape index: {}]   ;;  %s8035_s3 = inlined_call_operand.vmem [shape: f32[1,512], index: 3, kind: input, shape index: {}]   ;;  %s8036_s4 = inlined_call_operand.vmem [shape: bf16[128,128], index: 4, kind: input, shape index: {}]   ;;  %s8037_s5 = inlined_call_operand.vmem [shape: f32[1,128], index: 5, kind: input, shape index: {}]   ;;  %s8038_s6 = inlined_call_operand.hbm [shape: f32[16,128], index: 6, kind: output, shape index: {}]  }
   0x1   :  { %13 = vsyncpa [#allocation4 + $0x1], 0  ;;  %s5391_s21 = smov 0   ;;  %s5393_s22 = smov 0  }
   0x2   :  { %s5395_s23 = smov 0   ;;  %s5397_s24 = smov 0  }
   0x3 LB: > { %s4393_s25 = sadd.s32 4294967295, %s5350_s24   ;;  %s4394_s26 = sadd.s32 4294967294, %s5350_s24   ;;  %s5350_s24 = sphi %s5397_s24, %s8245_s24   ;;  %s5346_s23 = sphi %s5395_s23, %s8244_s23   ;;  %s5342_s22 = sphi %s5393_s22, %s8243_s22   ;;  %s5338_s21 = sphi %s5391_s21, %s8242_s21  }
   0x4   : > { %s5414_s27 = sadd.s32 1, %s5350_s24   ;;  %s26_s28 = sadd.s32 1, %s5346_s23 }
   0x5   : > { %s23_s29 = ssub.s32 %s5350_s24, %s5414_s27  ;;  %p33_p0 = scmp.ne.s32.totalorder %s5346_s23, %s5342_s22 }
   0x6   : > { %p24_p1 = scmp.eq.s32.totalorder %s23_s29, 0  ;;  %p34_p2 = scmp.eq.s32.totalorder %s5350_s24, 0 }
   0x7   : > { %p168_p3 = scmp.eq.s32.totalorder %s4393_s25, 1  ;;  %p173_p4 = scmp.ne.s32.totalorder %s5342_s22, %s5338_s21 }
   0x8   : > { %s5427_s30 = scalar_select %p24_p1, %s5346_s23, %s26_s28  }
   0x9   : > { %p35_p5 = por %p34_p2, %p33_p0  ;;  %p5429_p6 = por %p168_p3, %p33_p0 }
   0xa   : > { %p174_p7 = scmp.eq.s32.totalorder %s4394_s26, 1  ;;  %p4396_p9 = scmp.ge.s32.totalorder %s5350_s24, 2 }
   0xc   : > { %p5433_p8 = por %p174_p7, %p173_p4  ;;  %205 = sbr.rel (%p4396_p9) target bundleno = 37 (0x25), region = 36 }
  0x13   : > { %208 = sbr.rel (!%p35_p5) target bundleno = 37 (0x25), region = 40  ;;  %s210_s9 = sand.u32 (%p35_p5), 1, %s5346_s23  }
  0x14   : > { %s4397_s10 = sshll.u32 (%p35_p5), %s5350_s24, 3  ;;  %s4600_s11 = smul.u32 (%p35_p5), 224, %s210_s9 }
  0x15   : > { %s5445_s14 = scalar_lea.vmem (%p35_p5), %s8032_s0, %s4397_s10 }
  0x16   : > { %v296_v0 = vld [vmem:[%s5445_s14] sm:$0xff] (%p35_p5)  ;;  %v298_v1 = vld [vmem:[%s5445_s14 + $0x10] sm:$0xff] (%p35_p5)  ;;  %s5453_s15 = scalar_lea.vmem (%p35_p5), [#allocation2], %s4600_s11 }
  0x17   : > { %v300_v2 = vld [vmem:[%s5445_s14 + $0x20] sm:$0xff] (%p35_p5)  ;;  %v302_v3 = vld [vmem:[%s5445_s14 + $0x30] sm:$0xff] (%p35_p5)  ;;  %297 = vst [vmem:[%s5453_s15] sm:$0xff] (%p35_p5), %v296_v0  ;;  %299 = vst [vmem:[%s5453_s15 + $0x8] sm:$0xff] (%p35_p5), %v298_v1 }
  0x18   : > { %v304_v4 = vld [vmem:[%s5445_s14 + $0x40] sm:$0xff] (%p35_p5)  ;;  %v306_v5 = vld [vmem:[%s5445_s14 + $0x50] sm:$0xff] (%p35_p5)  ;;  %301 = vst [vmem:[%s5453_s15 + $0x10] sm:$0xff] (%p35_p5), %v300_v2  ;;  %303 = vst [vmem:[%s5453_s15 + $0x18] sm:$0xff] (%p35_p5), %v302_v3 }
  0x19   : > { %305 = vst [vmem:[%s5453_s15 + $0x20] sm:$0xff] (%p35_p5), %v304_v4  ;;  %307 = vst [vmem:[%s5453_s15 + $0x28] sm:$0xff] (%p35_p5), %v306_v5  ;;  %v308_v6 = vld [vmem:[%s5445_s14 + $0x60] sm:$0xff] (%p35_p5)  ;;  %v310_v7 = vld [vmem:[%s5445_s14 + $0x70] sm:$0xff] (%p35_p5) }
  0x1a   : > { %v312_v8 = vld [vmem:[%s5445_s14 + $0x80] sm:$0xff]  ;;  %309 = vst [vmem:[%s5453_s15 + $0x30] sm:$0xff] %v308_v6  ;;  %311 = vst [vmem:[%s5453_s15 + $0x38] sm:$0xff] %v310_v7  ;;  %v314_v9 = vld [vmem:[%s5445_s14 + $0x90] sm:$0xff] }
  0x1b   : > { %313 = vst [vmem:[%s5453_s15 + $0x40] sm:$0xff] %v312_v8  ;;  %v316_v10 = vld [vmem:[%s5445_s14 + $0xa0] sm:$0xff]  ;;  %v318_v11 = vld [vmem:[%s5445_s14 + $0xb0] sm:$0xff]  ;;  %315 = vst [vmem:[%s5453_s15 + $0x48] sm:$0xff] %v314_v9 }
  0x1c   : > { %317 = vst [vmem:[%s5453_s15 + $0x50] sm:$0xff] %v316_v10  ;;  %319 = vst [vmem:[%s5453_s15 + $0x58] sm:$0xff] %v318_v11  ;;  %v320_v12 = vld [vmem:[%s5445_s14 + $0xc0] sm:$0xff]  ;;  %v322_v13 = vld [vmem:[%s5445_s14 + $0xd0] sm:$0xff] }
  0x1d   : > { %v324_v14 = vld [vmem:[%s5445_s14 + $0xe0] sm:$0xff]  ;;  %321 = vst [vmem:[%s5453_s15 + $0x60] sm:$0xff] %v320_v12  ;;  %323 = vst [vmem:[%s5453_s15 + $0x68] sm:$0xff] %v322_v13  ;;  %v326_v15 = vld [vmem:[%s5445_s14 + $0xf0] sm:$0xff] }
  0x1e   : > { %325 = vst [vmem:[%s5453_s15 + $0x70] sm:$0xff] %v324_v14  ;;  %v328_v16 = vld [vmem:[%s5445_s14 + $0x100] sm:$0xff]  ;;  %v330_v17 = vld [vmem:[%s5445_s14 + $0x110] sm:$0xff]  ;;  %327 = vst [vmem:[%s5453_s15 + $0x78] sm:$0xff] %v326_v15 }
  0x1f   : > { %329 = vst [vmem:[%s5453_s15 + $0x80] sm:$0xff] %v328_v16  ;;  %331 = vst [vmem:[%s5453_s15 + $0x88] sm:$0xff] %v330_v17  ;;  %v332_v18 = vld [vmem:[%s5445_s14 + $0x120] sm:$0xff]  ;;  %v334_v19 = vld [vmem:[%s5445_s14 + $0x130] sm:$0xff] }
  0x20   : > { %v336_v20 = vld [vmem:[%s5445_s14 + $0x140] sm:$0xff]  ;;  %333 = vst [vmem:[%s5453_s15 + $0x90] sm:$0xff] %v332_v18  ;;  %335 = vst [vmem:[%s5453_s15 + $0x98] sm:$0xff] %v334_v19  ;;  %v338_v21 = vld [vmem:[%s5445_s14 + $0x150] sm:$0xff] }
  0x21   : > { %337 = vst [vmem:[%s5453_s15 + $0xa0] sm:$0xff] %v336_v20  ;;  %v340_v22 = vld [vmem:[%s5445_s14 + $0x160] sm:$0xff]  ;;  %v342_v23 = vld [vmem:[%s5445_s14 + $0x170] sm:$0xff]  ;;  %339 = vst [vmem:[%s5453_s15 + $0xa8] sm:$0xff] %v338_v21 }
  0x22   : > { %341 = vst [vmem:[%s5453_s15 + $0xb0] sm:$0xff] %v340_v22  ;;  %343 = vst [vmem:[%s5453_s15 + $0xb8] sm:$0xff] %v342_v23  ;;  %v344_v24 = vld [vmem:[%s5445_s14 + $0x180] sm:$0xff]  ;;  %v346_v25 = vld [vmem:[%s5445_s14 + $0x190] sm:$0xff] }
  0x23   : > { %v348_v26 = vld [vmem:[%s5445_s14 + $0x1a0] sm:$0xff]  ;;  %345 = vst [vmem:[%s5453_s15 + $0xc0] sm:$0xff] %v344_v24  ;;  %347 = vst [vmem:[%s5453_s15 + $0xc8] sm:$0xff] %v346_v25  ;;  %v350_v27 = vld [vmem:[%s5445_s14 + $0x1b0] sm:$0xff] }
  0x24   : > { %349 = vst [vmem:[%s5453_s15 + $0xd0] sm:$0xff] %v348_v26  ;;  %351 = vst [vmem:[%s5453_s15 + $0xd8] sm:$0xff] %v350_v27 }
  0x25 PF: > { %p4398_p10 = scmp.ge.s32.totalorder %s5350_s24, 1  ;;  %p356_p11 = scmp.lt.s32.totalorder %s5350_s24, 3 }
  0x27   : > { %p357_p12 = pnand %p4398_p10, %p356_p11 }
  0x29   : > { %360 = sbr.rel (%p357_p12) target bundleno = 7679 (0x1dff), region = 78 }
  0x30   : > { %v4644_v28 = vld [vmem:[%s8033_s1 + $0x4] ss:$16 sps:$4 sm:$0xff]   ;;  %vm544_vm0 = vcmask 1045504   ;;  %v4646_v29 = vld [vmem:[%s8033_s1] ss:$16 sps:$4 sm:$0xff]   ;;  %v8039_v30 = vmov 0  }
  0x31   : > { %589 = vmatprep.mubr.bf16.mxu0 %v8039_v30  ;;  %709 = vmatprep.mubr.bf16.mxu1 %v8039_v30  ;;  %s5516_s20 = sand.u32 1, %s5342_s22   ;;  %v4647_v31 = vld [vmem:[%s8033_s1 + $0x24] ss:$16 sps:$4 sm:$0x3f]   ;;  %v4652_v34 = vld [vmem:[%s8033_s1 + $0xc] ss:$16 sps:$4 sm:$0xff]  }
  0x32   : > { %557 = vmatprep.subr.bf16.mxu0 %v4644_v28  ;;  %4596 = vmatprep.subr.bf16.mxu1 %v4644_v28  ;;  %v4649_v32 = vld [vmem:[%s8033_s1 + $0x20] ss:$16 sps:$4 sm:$0x3f]   ;;  %s4601_s10 = smul.u32 224, %s5516_s20  ;;  %vm501_vm1 = vcmask 228352   ;;  %vm5354_vm2 = vmmov 0  }
  0x33   : > { %558 = vmatpush1.bf16.msra.mxu0 %v4646_v29  ;;  %4598 = vmatpush1.bf16.msra.mxu1 %v4646_v29  ;;  %v546_v33 = vsel %vm544_vm0, %v4649_v32, 0  ;;  %v4650_v40 = vld [vmem:[%s8033_s1 + $0x8] ss:$16 sps:$4 sm:$0xff]   ;;  %v4653_v42 = vld [vmem:[%s8033_s1 + $0x2c] ss:$16 sps:$4 sm:$0x3f]  }
  0x34   : > { %4408 = vmatprep.subr.msk.bf16.mxu0 %vm544_vm0, %v4647_v31  ;;  %4597 = vmatprep.subr.msk.bf16.mxu1 %vm544_vm0, %v4647_v31  ;;  %s5531_s13 = scalar_lea.vmem [#allocation2], %s4601_s10  ;;  %v4655_v43 = vld [vmem:[%s8033_s1 + $0x28] ss:$16 sps:$4 sm:$0x3f]   ;;  %v5556_v46 = vld [vmem:[%s8034_s2 + $0x4] ss:$16 sps:$4 sm:$0xff]  }
  0x35   : > { %v393_v35 = vld [vmem:[%s5531_s13] sm:$0xff]  ;;  %v394_v36 = vld [vmem:[%s5531_s13 + $0x8] sm:$0xff]  ;;  %v395_v44 = vld [vmem:[%s5531_s13 + $0x10] sm:$0xff]  ;;  %v552_v50 = vsel %vm544_vm0, %v4655_v43, 0  ;;  %s4399_s12 = sshll.u32 %s5516_s20, 3  ;;  %s4564_s16 = sshll.u32 %s4393_s25, 7 }
  0x36   : > { %v417_v37 = vld [vmem:[%s5531_s13 + $0xc0] sm:$0xff]  ;;  %v421_v38 = vpack.c.bf16 %v394_v36, %v393_v35  ;;  %v418_v39 = vld [vmem:[%s5531_s13 + $0xc8] sm:$0xff]  ;;  %v396_v45 = vld [vmem:[%s5531_s13 + $0x18] sm:$0xff]  ;;  %s391_s17 = scalar_lea.vmem [#allocation3], %s4399_s12  ;;  %s7988_s26 = scalar_lea.hbm %s8038_s6, %s4564_s16 }
  0x37   : > { %560 = vmatpush1.bf16.msra.mxu0 %v546_v33  ;;  %4599 = vmatpush1.bf16.msra.mxu1 %v546_v33  ;;  %v5540_v41 = vpack.c.bf16 %v418_v39, %v417_v37  ;;  %v419_v47 = vld [vmem:[%s5531_s13 + $0xd0] sm:$0xff]  ;;  %v420_v48 = vld [vmem:[%s5531_s13 + $0xd8] sm:$0xff]  ;;  %v422_v53 = vpack.c.bf16 %v396_v45, %v395_v44  ;;  %v397_v57 = vld [vmem:[%s5531_s13 + $0x20] sm:$0xff]  ;;  %s4329_s18 = sshll.u32 %s391_s17, 4  ;;  %s4316_s28 = scalar_lea.sflag [#allocation4], %s5516_s20  ;;  %s7990_s18 = int_to_ptr.vmem [resolvable:$true] %s4329_s18 }
  0x38   : > { %730 = vmatprep.subr.bf16.mxu1 %v4652_v34  ;;  %v5564_v49 = vld [vmem:[%s8034_s2] ss:$16 sps:$4 sm:$0xff]   ;;  %v5572_v51 = vld [vmem:[%s8034_s2 + $0xc] ss:$16 sps:$4 sm:$0xff]   ;;  %1095 = vmatprep.subr.bf16.mxu0 %v5556_v46  ;;  %v5578_v52 = vld [vmem:[%s8034_s2 + $0x24] ss:$16 sps:$4 sm:$0xff]   ;;  %v5580_v54 = vpack.c.bf16 %v420_v48, %v419_v47 }
  0x39   : > { %v5588_v55 = vld [vmem:[%s8034_s2 + $0x20] ss:$16 sps:$4 sm:$0xff]   ;;  %v5593_v56 = vld [vmem:[%s8034_s2 + $0x44] ss:$16 sps:$4 sm:$0xff]   ;;  %v398_v58 = vld [vmem:[%s5531_s13 + $0x28] sm:$0xff]  ;;  %s5288_s25 = scalar_lea.vmem %s7990_s18, 128 }
  0x3a   : > { %4409 = vmatmul.mubr.msk.bf16.vlgmr.msra.gmra.mrb[0].mxu0 %vm501_vm1, %v421_v38  ;;  %4421 = vmatmul.mubr.msk.bf16.vlgmr.msra.gmra.mrb[0].mxu1 %vm501_vm1, %v5540_v41  ;;  %v5606_v59 = vld [vmem:[%s8034_s2 + $0x40] ss:$16 sps:$4 sm:$0xff]   ;;  %v5612_v60 = vld [vmem:[%s8034_s2 + $0x64] ss:$16 sps:$4 sm:$0xff]   ;;  %v423_v61 = vpack.c.bf16 %v398_v58, %v397_v57  ;;  %v5617_v62 = vld [vmem:[%s8034_s2 + $0x8] ss:$16 sps:$4 sm:$0xff]   ;;  %p5289_p13 = scmp.ne.s32.totalorder %s7990_s18, %s5288_s25 }
  0x3b   : > { %731 = vmatpush1.bf16.msra.mxu1 %v4650_v40  ;;  %599 = vmatprep.mubr.bf16.mxu0 %v8039_v30  ;;  %v5622_v63 = vld [vmem:[%s8034_s2 + $0x2c] ss:$16 sps:$4 sm:$0xff]   ;;  %v399_v0 = vld [vmem:[%s5531_s13 + $0x30] sm:$0xff]  ;;  %v5645_v4 = vld [vmem:[%s8034_s2 + $0x28] ss:$16 sps:$4 sm:$0xff]   ;;  %s5355_s29 = smov [#allocation3]  }
  0x3c   : > { %719 = vmatprep.mubr.bf16.mxu1 %v8039_v30  ;;  %4423 = vmatprep.subr.msk.bf16.mxu1 %vm544_vm0, %v4653_v42  ;;  %v5630_v1 = vld [vmem:[%s8034_s2 + $0x60] ss:$16 sps:$4 sm:$0xff]   ;;  %v400_v2 = vld [vmem:[%s5531_s13 + $0x38] sm:$0xff]  ;;  %v5638_v3 = vld [vmem:[%s8034_s2 + $0x84] ss:$16 sps:$4 sm:$0xff]   ;;  %p5290_p0 = pnand %p5289_p13, %p5429_p6  ;;  %s5292_s9 = sshll.u32 %s5355_s29, 4  ;;  %s5293_s9 = int_to_ptr.vmem [resolvable:$false] %s5292_s9 }
  0x3d   : > { %1096 = vmatpush1.bf16.msra.mxu0 %v5564_v49  ;;  %v5652_v5 = vld [vmem:[%s8034_s2 + $0x4c] ss:$16 sps:$4 sm:$0xff]   ;;  %v5658_v6 = vld [vmem:[%s8034_s2 + $0x80] ss:$16 sps:$4 sm:$0xff]   ;;  %v424_v7 = vpack.c.bf16 %v400_v2, %v399_v0  ;;  %v5665_v8 = vld [vmem:[%s8034_s2 + $0x48] ss:$16 sps:$4 sm:$0xff]   ;;  %p5295_p2 = scmp.lt.s32.totalorder %s7990_s18, %s5293_s9 }
  0x3e   : > { %1097 = vmatprep.subr.bf16.mxu0 %v5578_v52  ;;  %v5671_v9 = vld [vmem:[%s8034_s2 + $0xa4] ss:$16 sps:$4 sm:$0xff]   ;;  %v5677_v11 = vld [vmem:[%s8034_s2 + $0x6c] ss:$16 sps:$4 sm:$0xff]   ;;  %v5683_v12 = vld [vmem:[%s8034_s2 + $0xa0] ss:$16 sps:$4 sm:$0xff]   ;;  %p5291_p1 = pneg %p5290_p0 }
  0x3f   : > { %733 = vmatpush1.bf16.msra.mxu1 %v552_v50  ;;  %v401_v10 = vld [vmem:[%s5531_s13 + $0x40] sm:$0xff]  ;;  %v402_v13 = vld [vmem:[%s5531_s13 + $0x48] sm:$0xff]  ;;  %v403_v23 = vld [vmem:[%s5531_s13 + $0x50] sm:$0xff]  ;;  %s5294_s10 = scalar_lea.vmem %s5293_s9, 256 }
  0x40   : > { %1136 = vmatprep.subr.bf16.mxu1 %v5572_v51  ;;  %v5691_v14 = vld [vmem:[%s8034_s2 + $0xc4] ss:$16 sps:$4 sm:$0xff]   ;;  %v5698_v15 = vld [vmem:[%s8034_s2 + $0x68] ss:$16 sps:$4 sm:$0xff]   ;;  %v5704_v16 = vld [vmem:[%s8034_s2 + $0x8c] ss:$16 sps:$4 sm:$0xff]   ;;  %v425_v18 = vpack.c.bf16 %v402_v13, %v401_v10  ;;  %p5296_p3 = scmp.lt.s32.totalorder %s5294_s10, %s5288_s25 }
  0x41   : > { %1098 = vmatpush1.bf16.msra.mxu0 %v5588_v55  ;;  %v5710_v17 = vld [vmem:[%s8034_s2 + $0xc0] ss:$16 sps:$4 sm:$0xff]   ;;  %v5717_v19 = vld [vmem:[%s8034_s2 + $0x88] ss:$16 sps:$4 sm:$0xff]   ;;  %v5723_v20 = vld [vmem:[%s8034_s2 + $0xe4] ss:$16 sps:$4 sm:$0xff]  }
  0x42   : > { %4410 = vmatmul.mubr.msk.bf16.gmra.mrb[4].mxu0 %vm501_vm1, %v422_v53  ;;  %4422 = vmatmul.mubr.msk.bf16.gmra.mrb[4].mxu1 %vm501_vm1, %v5580_v54  ;;  %v5728_v21 = vld [vmem:[%s8034_s2 + $0xac] ss:$16 sps:$4 sm:$0xff]   ;;  %v5733_v22 = vld [vmem:[%s8034_s2 + $0xe0] ss:$16 sps:$4 sm:$0xff]   ;;  %v5748_v25 = vld [vmem:[%s8034_s2 + $0xa8] ss:$16 sps:$4 sm:$0xff]   ;;  %p5297_p4 = por %p5296_p3, %p5295_p2 }
  0x43   : > { %609 = vmatprep.mubr.bf16.mxu0 %v8039_v30  ;;  %762 = vmatprep.mubr.bf16.mxu1 %v8039_v30  ;;  %v404_v24 = vld [vmem:[%s5531_s13 + $0x58] sm:$0xff]  ;;  %v405_v31 = vld [vmem:[%s5531_s13 + $0x60] sm:$0xff]  ;;  %v406_v32 = vld [vmem:[%s5531_s13 + $0x68] sm:$0xff] }
  0x44   : > { %1099 = vmatprep.subr.bf16.mxu0 %v5593_v56  ;;  %v5756_v26 = vld [vmem:[%s8034_s2 + $0xcc] ss:$16 sps:$4 sm:$0xff]   ;;  %v426_v27 = vpack.c.bf16 %v404_v24, %v403_v23  ;;  %v5763_v28 = vld [vmem:[%s8034_s2 + $0xc8] ss:$16 sps:$4 sm:$0xff]   ;;  %v427_v34 = vpack.c.bf16 %v406_v32, %v405_v31  ;;  %v407_v35 = vld [vmem:[%s5531_s13 + $0x70] sm:$0xff]  ;;  %p5298_p5 = pnand %p5297_p4, %p5291_p1 }
  0x45   : > { %1100 = vmatpush1.bf16.msra.mxu0 %v5606_v59  ;;  %v5769_v29 = vld [vmem:[%s8034_s2 + $0xec] ss:$16 sps:$4 sm:$0xff]   ;;  %v5781_v33 = vld [vmem:[%s8034_s2 + $0xe8] ss:$16 sps:$4 sm:$0xff]   ;;  %v411_v42 = vld [vmem:[%s5531_s13 + $0x90] sm:$0xff] }
  0x46   : > { %1101 = vmatprep.subr.bf16.mxu0 %v5612_v60  ;;  %v408_v36 = vld [vmem:[%s5531_s13 + $0x78] sm:$0xff]  ;;  %v410_v39 = vld [vmem:[%s5531_s13 + $0x88] sm:$0xff]  ;;  %v413_v45 = vld [vmem:[%s5531_s13 + $0xa0] sm:$0xff] }
  0x47   : > { %v428_v37 = vpack.c.bf16 %v408_v36, %v407_v35  ;;  %v412_v43 = vld [vmem:[%s5531_s13 + $0x98] sm:$0xff]  ;;  %v414_v47 = vld [vmem:[%s5531_s13 + $0xa8] sm:$0xff]  ;;  %v415_v50 = vld [vmem:[%s5531_s13 + $0xb0] sm:$0xff] }
  0x48   : > { %v430_v44 = vpack.c.bf16 %v412_v43, %v411_v42  ;;  %v431_v48 = vpack.c.bf16 %v414_v47, %v413_v45 }
  0x49   : > { %1102 = vmatpush1.bf16.msra.mxu0 %v5630_v1 }
  0x4a   : > { %4411 = vmatmul.mubr.msk.bf16.gmra.mrb[8].mxu0 %vm501_vm1, %v423_v61  ;;  %4424 = vmatmul.mubr.msk.bf16.vlgmr.msra.gmra.mrb[8].mxu1 %vm501_vm1, %v421_v38  ;;  %v409_v38 = vld [vmem:[%s5531_s13 + $0x80] sm:$0xff] }
  0x4b   : > { %1137 = vmatpush1.bf16.msra.mxu1 %v5617_v62  ;;  %619 = vmatprep.mubr.bf16.mxu0 %v8039_v30  ;;  %v429_v40 = vpack.c.bf16 %v410_v39, %v409_v38 }
  0x4c   : > { %772 = vmatprep.mubr.bf16.mxu1 %v8039_v30  ;;  %1138 = vmatprep.subr.bf16.mxu1 %v5622_v63 }
  0x4d   : > { %1103 = vmatprep.subr.bf16.mxu0 %v5638_v3 }
  0x4e   : > { %1104 = vmatpush1.bf16.msra.mxu0 %v5658_v6 }
  0x4f   : > { %1139 = vmatpush1.bf16.msra.mxu1 %v5645_v4  ;;  %1105 = vmatprep.subr.bf16.mxu0 %v5671_v9 }
  0x50   : > { %1140 = vmatprep.subr.bf16.mxu1 %v5652_v5 }
  0x52   : > { %4412 = vmatmul.mubr.msk.bf16.gmra.mrb[12].mxu0 %vm501_vm1, %v424_v7  ;;  %4425 = vmatmul.mubr.msk.bf16.gmra.mrb[12].mxu1 %vm501_vm1, %v422_v53  ;;  %v416_v53 = vld [vmem:[%s5531_s13 + $0xb8] sm:$0xff] }
  0x53   : > { %629 = vmatprep.mubr.bf16.mxu0 %v8039_v30  ;;  %782 = vmatprep.mubr.bf16.mxu1 %v8039_v30  ;;  %v432_v57 = vpack.c.bf16 %v416_v53, %v415_v50 }
  0x54   : > { %1141 = vmatpush1.bf16.msra.mxu1 %v5665_v8  ;;  %1106 = vmatpush1.bf16.msra.mxu0 %v5683_v12 }
  0x55   : > { %1142 = vmatprep.subr.bf16.mxu1 %v5677_v11  ;;  %1107 = vmatprep.subr.bf16.mxu0 %v5691_v14 }
  0x58   : > { %1143 = vmatpush1.bf16.msra.mxu1 %v5698_v15  ;;  %1108 = vmatpush1.bf16.msra.mxu0 %v5710_v17 }
  0x59   : > { %1144 = vmatprep.subr.bf16.mxu1 %v5704_v16  ;;  %1109 = vmatprep.subr.bf16.mxu0 %v5723_v20 }
  0x5a   : > { %4413 = vmatmul.mubr.msk.bf16.gmra.mrb[16].mxu0 %vm501_vm1, %v425_v18  ;;  %4426 = vmatmul.mubr.msk.bf16.gmra.mrb[16].mxu1 %vm501_vm1, %v423_v61 }
  0x5b   : > { %639 = vmatprep.mubr.bf16.mxu0 %v8039_v30  ;;  %792 = vmatprep.mubr.bf16.mxu1 %v8039_v30 }
  0x5c   : > { %1145 = vmatpush1.bf16.msra.mxu1 %v5717_v19  ;;  %1110 = vmatpush1.bf16.msra.mxu0 %v5733_v22 }
  0x5d   : > { %1146 = vmatprep.subr.bf16.mxu1 %v5728_v21  ;;  %1206 = vmatprep.subr.bf16.mxu0 %v5556_v46 }
  0x60   : > { %1147 = vmatpush1.bf16.msra.mxu1 %v5748_v25 }
  0x61   : > { %1148 = vmatprep.subr.bf16.mxu1 %v5756_v26 }
  0x62   : > { %4414 = vmatmul.mubr.msk.bf16.gmra.mrb[20].mxu0 %vm501_vm1, %v426_v27  ;;  %4427 = vmatmul.mubr.msk.bf16.gmra.mrb[20].mxu1 %vm501_vm1, %v424_v7 }
  0x63   : > { %649 = vmatprep.mubr.bf16.mxu0 %v8039_v30  ;;  %802 = vmatprep.mubr.bf16.mxu1 %v8039_v30 }
  0x64   : > { %1149 = vmatpush1.bf16.msra.mxu1 %v5763_v28 }
  0x65   : > { %1150 = vmatprep.subr.bf16.mxu1 %v5769_v29 }
  0x68   : > { %1151 = vmatpush1.bf16.msra.mxu1 %v5781_v33 }
  0x69   : > { %1247 = vmatprep.subr.bf16.mxu1 %v5572_v51 }
  0x6a   : > { %4415 = vmatmul.mubr.msk.bf16.gmra.mrb[24].mxu0 %vm501_vm1, %v427_v34  ;;  %4428 = vmatmul.mubr.msk.bf16.gmra.mrb[24].mxu1 %vm501_vm1, %v425_v18 }
  0x6b   : > { %659 = vmatprep.mubr.bf16.mxu0 %v8039_v30  ;;  %812 = vmatprep.mubr.bf16.mxu1 %v8039_v30 }
  0x72   : > { %4416 = vmatmul.mubr.msk.bf16.gmra.mrb[28].mxu0 %vm501_vm1, %v428_v37  ;;  %4429 = vmatmul.mubr.msk.bf16.gmra.mrb[28].mxu1 %vm501_vm1, %v426_v27 }
  0x73   : > { %669 = vmatprep.mubr.bf16.mxu0 %v8039_v30  ;;  %822 = vmatprep.mubr.bf16.mxu1 %v8039_v30 }
  0x7a   : > { %4417 = vmatmul.mubr.msk.bf16.gmra.mrb[32].mxu0 %vm501_vm1, %v429_v40  ;;  %4430 = vmatmul.mubr.msk.bf16.gmra.mrb[32].mxu1 %vm501_vm1, %v427_v34 }
  0x7b   : > { %679 = vmatprep.mubr.bf16.mxu0 %v8039_v30  ;;  %832 = vmatprep.mubr.bf16.mxu1 %v8039_v30 }
  0x82   : > { %4418 = vmatmul.mubr.msk.bf16.gmra.mrb[36].mxu0 %vm501_vm1, %v430_v44  ;;  %4431 = vmatmul.mubr.msk.bf16.gmra.mrb[36].mxu1 %vm501_vm1, %v428_v37 }
  0x83   : > { %689 = vmatprep.mubr.bf16.mxu0 %v8039_v30  ;;  %842 = vmatprep.mubr.bf16.mxu1 %v8039_v30 }
  0x8a   : > { %4419 = vmatmul.mubr.msk.bf16.gmra.mrb[40].mxu0 %vm501_vm1, %v431_v48  ;;  %4432 = vmatmul.mubr.msk.bf16.gmra.mrb[40].mxu1 %vm501_vm1, %v429_v40 }
  0x8b   : > { %699 = vmatprep.mubr.bf16.mxu0 %v8039_v30  ;;  %852 = vmatprep.mubr.bf16.mxu1 %v8039_v30 }
  0x92   : > { %4420 = vmatmul.mubr.msk.bf16.gmra.mrb[44].mxu0 %vm501_vm1, %v432_v57  ;;  %4433 = vmatmul.mubr.msk.bf16.gmra.mrb[44].mxu1 %vm501_vm1, %v430_v44 }
  0x93   : > { %862 = vmatprep.mubr.bf16.mxu1 %v8039_v30  ;;  %1127 = vmatprep.mubr.bf16.mxu0 %v8039_v30 }
  0x9a   : > { %4434 = vmatmul.mubr.msk.bf16.gmra.mrb[48].mxu1 %vm501_vm1, %v431_v48  ;;  %1128 = vmatmul.mubr.bf16.vlgmr.msra.gmra.mrb[48].mxu0 %v8039_v30 }
  0x9b   : > { %872 = vmatprep.mubr.bf16.mxu1 %v8039_v30  ;;  %1207 = vmatpush1.bf16.msra.mxu0 %v5564_v49 }
  0x9c   : > { %1208 = vmatprep.subr.bf16.mxu0 %v5578_v52  ;;  %1238 = vmatprep.mubr.bf16.mxu0 %v8039_v30 }
  0x9f   : > { %1209 = vmatpush1.bf16.msra.mxu0 %v5588_v55 }
  0xa0   : > { %1210 = vmatprep.subr.bf16.mxu0 %v5593_v56 }
  0xa2   : > { %4435 = vmatmul.mubr.msk.bf16.gmra.mrb[52].mxu1 %vm501_vm1, %v432_v57 }
  0xa3   : > { %882 = vmatprep.mubr.bf16.mxu1 %v8039_v30  ;;  %1211 = vmatpush1.bf16.msra.mxu0 %v5606_v59 }
  0xa4   : > { %1212 = vmatprep.subr.bf16.mxu0 %v5612_v60 }
  0xa7   : > { %1213 = vmatpush1.bf16.msra.mxu0 %v5630_v1 }
  0xa8   : > { %1214 = vmatprep.subr.bf16.mxu0 %v5638_v3 }
  0xaa   : > { %4436 = vmatmul.mubr.msk.bf16.gmra.mrb[56].mxu1 %vm501_vm1, %v5540_v41 }
  0xab   : > { %892 = vmatprep.mubr.bf16.mxu1 %v8039_v30  ;;  %1215 = vmatpush1.bf16.msra.mxu0 %v5658_v6 }
  0xac   : > { %1216 = vmatprep.subr.bf16.mxu0 %v5671_v9 }
  0xaf   : > { %1217 = vmatpush1.bf16.msra.mxu0 %v5683_v12 }
  0xb0   : > { %1218 = vmatprep.subr.bf16.mxu0 %v5691_v14 }
  0xb2   : > { %4437 = vmatmul.mubr.msk.bf16.gmra.mrb[60].mxu1 %vm501_vm1, %v5580_v54 }
  0xb3   : > { %1168 = vmatprep.mubr.bf16.mxu1 %v8039_v30  ;;  %1219 = vmatpush1.bf16.msra.mxu0 %v5710_v17 }
  0xb4   : > { %1220 = vmatprep.subr.bf16.mxu0 %v5723_v20 }
  0xb7   : > { %1221 = vmatpush1.bf16.msra.mxu0 %v5733_v22 }
  0xb8   : > { %1317 = vmatprep.subr.bf16.mxu0 %v5556_v46 }
  0xba   : > { %1169 = vmatmul.mubr.bf16.vlgmr.msra.gmra.mrb[64].mxu1 %v8039_v30 }
  0xbb   : > { %1248 = vmatpush1.bf16.msra.mxu1 %v5617_v62  ;;  %1279 = vmatprep.mubr.bf16.mxu1 %v8039_v30 }
  0xbc   : > { %1249 = vmatprep.subr.bf16.mxu1 %v5622_v63 }
  0xbf   : > { %1250 = vmatpush1.bf16.msra.mxu1 %v5645_v4 }
  0xc0   : > { %1251 = vmatprep.subr.bf16.mxu1 %v5652_v5 }
  0xc3   : > { %1252 = vmatpush1.bf16.msra.mxu1 %v5665_v8 }
  0xc4   : > { %1253 = vmatprep.subr.bf16.mxu1 %v5677_v11 }
  0xc7   : > { %1254 = vmatpush1.bf16.msra.mxu1 %v5698_v15 }
  0xc8   : > { %1255 = vmatprep.subr.bf16.mxu1 %v5704_v16 }
  0xcb   : > { %1256 = vmatpush1.bf16.msra.mxu1 %v5717_v19 }
  0xcc   : > { %1257 = vmatprep.subr.bf16.mxu1 %v5728_v21 }
  0xcf   : > { %1258 = vmatpush1.bf16.msra.mxu1 %v5748_v25 }
  0xd0   : > { %1259 = vmatprep.subr.bf16.mxu1 %v5756_v26 }
  0xd3   : > { %1260 = vmatpush1.bf16.msra.mxu1 %v5763_v28 }
  0xd4   : > { %1261 = vmatprep.subr.bf16.mxu1 %v5769_v29 }
  0xd7   : > { %1262 = vmatpush1.bf16.msra.mxu1 %v5781_v33 }
  0xd8   : > { %1358 = vmatprep.subr.bf16.mxu1 %v5572_v51 }
 0x10d   : > { %v5866_v41 = vpop.f32.mrb[0].mxu1  ;;  %v5868_v54 = vpop.f32.mrb[0].mxu0 }
 0x10e   : > { %8043 = vst [vmem:[#allocation6_spill] sm:$0xff] %v5866_v41  ;;  %v5870_v58 = vpop.f32.mrb[1].mxu1  ;;  %v5872_v61 = vpop.f32.mrb[1].mxu0 }
 0x10f   : > { %8044 = vst [vmem:[#allocation7_spill] sm:$0xff] %v5870_v58  ;;  %v5874_v0 = vpop.f32.mrb[2].mxu1  ;;  %v5876_v2 = vpop.f32.mrb[2].mxu0 }
 0x110   : > { %8045 = vst [vmem:[#allocation8_spill] sm:$0xff] %v5874_v0  ;;  %v5878_v7 = vpop.f32.mrb[3].mxu1  ;;  %v5880_v10 = vpop.f32.mrb[3].mxu0 }
 0x111   : > { %8046 = vst [vmem:[#allocation9_spill] sm:$0xff] %v5878_v7 }
 0x115   : > { %v5882_v13 = vpop.f32.mrb[4].mxu1  ;;  %v5884_v18 = vpop.f32.mrb[4].mxu0 }
 0x116   : > { %8047 = vst [vmem:[#allocation10_spill] sm:$0xff] %v5882_v13  ;;  %v5886_v23 = vpop.f32.mrb[5].mxu1  ;;  %v5888_v24 = vpop.f32.mrb[5].mxu0 }
 0x117   : > { %8048 = vst [vmem:[#allocation11_spill] sm:$0xff] %v5886_v23  ;;  %v5890_v27 = vpop.f32.mrb[6].mxu1  ;;  %v5892_v31 = vpop.f32.mrb[6].mxu0 }
 0x118   : > { %8049 = vst [vmem:[#allocation12_spill] sm:$0xff] %v5890_v27  ;;  %v5894_v32 = vpop.f32.mrb[7].mxu1  ;;  %v5896_v34 = vpop.f32.mrb[7].mxu0 }
 0x119   : > { %8050 = vst [vmem:[#allocation13_spill] sm:$0xff] %v5894_v32  ;;  %8051 = vst [vmem:[#allocation14_spill] sm:$0xff] %v5896_v34 }
 0x11d   : > { %v5898_v35 = vpop.f32.mrb[8].mxu1  ;;  %v5900_v36 = vpop.f32.mrb[8].mxu0 }
 0x11e   : > { %8052 = vst [vmem:[#allocation15_spill] sm:$0xff] %v5900_v36  ;;  %v5902_v37 = vpop.f32.mrb[9].mxu1  ;;  %v5904_v38 = vpop.f32.mrb[9].mxu0 }
 0x11f   : > { %8053 = vst [vmem:[#allocation16_spill] sm:$0xff] %v5904_v38  ;;  %v5906_v39 = vpop.f32.mrb[10].mxu1  ;;  %v5908_v40 = vpop.f32.mrb[10].mxu0 }
 0x120   : > { %8054 = vst [vmem:[#allocation17_spill] sm:$0xff] %v5908_v40  ;;  %v5910_v42 = vpop.f32.mrb[11].mxu1  ;;  %v5912_v43 = vpop.f32.mrb[11].mxu0 }
 0x121   : > { %8055 = vst [vmem:[#allocation18_spill] sm:$0xff] %v5912_v43 }
 0x125   : > { %v5914_v44 = vpop.f32.mrb[12].mxu1  ;;  %v5916_v45 = vpop.f32.mrb[12].mxu0 }
 0x126   : > { %8056 = vst [vmem:[#allocation19_spill] sm:$0xff] %v5916_v45  ;;  %v5918_v47 = vpop.f32.mrb[13].mxu1  ;;  %v5920_v48 = vpop.f32.mrb[13].mxu0 }
 0x127   : > { %8057 = vst [vmem:[#allocation20_spill] sm:$0xff] %v5920_v48  ;;  %v5922_v50 = vpop.f32.mrb[14].mxu1  ;;  %v5924_v53 = vpop.f32.mrb[14].mxu0 }
 0x128   : > { %8058 = vst [vmem:[#allocation21_spill] sm:$0xff] %v5922_v50  ;;  %8059 = vst [vmem:[#allocation22_spill] sm:$0xff] %v5924_v53  ;;  %v5926_v57 = vpop.f32.mrb[15].mxu1  ;;  %v5928_v30 = vpop.f32.mrb[15].mxu0 }
 0x129   : > { %8060 = vst [vmem:[#allocation23_spill] sm:$0xff] %v5926_v57  ;;  %8061 = vst [vmem:[#allocation24_spill] sm:$0xff] %v5928_v30 }
 0x12d   : > { %v5930_v32 = vpop.f32.mrb[16].mxu1  ;;  %v5932_v27 = vpop.f32.mrb[16].mxu0 }
 0x12e   : > { %8062 = vst [vmem:[#allocation25_spill] sm:$0xff] %v5930_v32  ;;  %8063 = vst [vmem:[#allocation26_spill] sm:$0xff] %v5932_v27  ;;  %v5934_v23 = vpop.f32.mrb[17].mxu1  ;;  %v5936_v13 = vpop.f32.mrb[17].mxu0 }
 0x12f   : > { %8064 = vst [vmem:[#allocation27_spill] sm:$0xff] %v5934_v23  ;;  %8065 = vst [vmem:[#allocation28_spill] sm:$0xff] %v5936_v13  ;;  %v5938_v7 = vpop.f32.mrb[18].mxu1  ;;  %v5940_v0 = vpop.f32.mrb[18].mxu0 }
 0x130   : > { %8066 = vst [vmem:[#allocation29_spill] sm:$0xff] %v5938_v7  ;;  %8067 = vst [vmem:[#allocation30_spill] sm:$0xff] %v5940_v0  ;;  %v5942_v58 = vpop.f32.mrb[19].mxu1  ;;  %v5944_v41 = vpop.f32.mrb[19].mxu0 }
 0x131   : > { %8068 = vst [vmem:[#allocation31_spill] sm:$0xff] %v5942_v58  ;;  %8069 = vst [vmem:[#allocation32_spill] sm:$0xff] %v5944_v41 }
 0x135   : > { %v5946_v53 = vpop.f32.mrb[20].mxu1  ;;  %v5948_v48 = vpop.f32.mrb[20].mxu0 }
 0x136   : > { %8070 = vst [vmem:[#allocation33_spill] sm:$0xff] %v5946_v53  ;;  %8071 = vst [vmem:[#allocation34_spill] sm:$0xff] %v5948_v48  ;;  %v5950_v30 = vpop.f32.mrb[21].mxu1  ;;  %v5952_v45 = vpop.f32.mrb[21].mxu0 }
 0x137   : > { %8072 = vst [vmem:[#allocation35_spill] sm:$0xff] %v5950_v30  ;;  %8073 = vst [vmem:[#allocation36_spill] sm:$0xff] %v5952_v45  ;;  %v5954_v27 = vpop.f32.mrb[22].mxu1  ;;  %v5956_v43 = vpop.f32.mrb[22].mxu0 }
 0x138   : > { %8074 = vst [vmem:[#allocation37_spill] sm:$0xff] %v5954_v27  ;;  %8075 = vst [vmem:[#allocation38_spill] sm:$0xff] %v5956_v43  ;;  %v5958_v13 = vpop.f32.mrb[23].mxu1  ;;  %v5960_v7 = vpop.f32.mrb[23].mxu0 }
 0x139   : > { %8076 = vst [vmem:[#allocation39_spill] sm:$0xff] %v5958_v13  ;;  %8077 = vst [vmem:[#allocation40_spill] sm:$0xff] %v5960_v7 }
 0x13d   : > { %v5962_v0 = vpop.f32.mrb[24].mxu1  ;;  %v5964_v58 = vpop.f32.mrb[24].mxu0 }
 0x13e   : > { %8078 = vst [vmem:[#allocation41_spill] sm:$0xff] %v5962_v0  ;;  %8079 = vst [vmem:[#allocation42_spill] sm:$0xff] %v5964_v58  ;;  %v5966_v41 = vpop.f32.mrb[25].mxu1  ;;  %v5968_v53 = vpop.f32.mrb[25].mxu0 }
 0x13f   : > { %8080 = vst [vmem:[#allocation43_spill] sm:$0xff] %v5966_v41  ;;  %8081 = vst [vmem:[#allocation44_spill] sm:$0xff] %v5968_v53  ;;  %v5970_v48 = vpop.f32.mrb[26].mxu1  ;;  %v5972_v30 = vpop.f32.mrb[26].mxu0 }
 0x140   : > { %8082 = vst [vmem:[#allocation45_spill] sm:$0xff] %v5970_v48  ;;  %8083 = vst [vmem:[#allocation46_spill] sm:$0xff] %v5972_v30  ;;  %v5974_v45 = vpop.f32.mrb[27].mxu1  ;;  %v5976_v27 = vpop.f32.mrb[27].mxu0 }
 0x141   : > { %8084 = vst [vmem:[#allocation47_spill] sm:$0xff] %v5974_v45  ;;  %8085 = vst [vmem:[#allocation48_spill] sm:$0xff] %v5976_v27 }
 0x145   : > { %v5978_v43 = vpop.f32.mrb[28].mxu1  ;;  %v5980_v13 = vpop.f32.mrb[28].mxu0 }
 0x146   : > { %8086 = vst [vmem:[#allocation49_spill] sm:$0xff] %v5978_v43  ;;  %8087 = vst [vmem:[#allocation50_spill] sm:$0xff] %v5980_v13  ;;  %v5982_v7 = vpop.f32.mrb[29].mxu1  ;;  %v5984_v0 = vpop.f32.mrb[29].mxu0 }
 0x147   : > { %8088 = vst [vmem:[#allocation51_spill] sm:$0xff] %v5982_v7  ;;  %8089 = vst [vmem:[#allocation52_spill] sm:$0xff] %v5984_v0  ;;  %v5986_v58 = vpop.f32.mrb[30].mxu1  ;;  %v5988_v41 = vpop.f32.mrb[30].mxu0 }
 0x148   : > { %8090 = vst [vmem:[#allocation53_spill] sm:$0xff] %v5986_v58  ;;  %8091 = vst [vmem:[#allocation54_spill] sm:$0xff] %v5988_v41  ;;  %v5990_v53 = vpop.f32.mrb[31].mxu1  ;;  %v5992_v48 = vpop.f32.mrb[31].mxu0 }
 0x149   : > { %8092 = vst [vmem:[#allocation55_spill] sm:$0xff] %v5990_v53  ;;  %8093 = vst [vmem:[#allocation56_spill] sm:$0xff] %v5992_v48 }
 0x14d   : > { %v5994_v30 = vpop.f32.mrb[32].mxu1  ;;  %v5996_v45 = vpop.f32.mrb[32].mxu0 }
 0x14e   : > { %8094 = vst [vmem:[#allocation57_spill] sm:$0xff] %v5994_v30  ;;  %8095 = vst [vmem:[#allocation58_spill] sm:$0xff] %v5996_v45  ;;  %v5998_v27 = vpop.f32.mrb[33].mxu1  ;;  %v6000_v43 = vpop.f32.mrb[33].mxu0 }
 0x14f   : > { %8096 = vst [vmem:[#allocation59_spill] sm:$0xff] %v5998_v27  ;;  %8097 = vst [vmem:[#allocation60_spill] sm:$0xff] %v6000_v43  ;;  %v6002_v13 = vpop.f32.mrb[34].mxu1  ;;  %v6004_v7 = vpop.f32.mrb[34].mxu0 }
 0x150   : > { %8098 = vst [vmem:[#allocation61_spill] sm:$0xff] %v6002_v13  ;;  %8099 = vst [vmem:[#allocation62_spill] sm:$0xff] %v6004_v7  ;;  %v6006_v0 = vpop.f32.mrb[35].mxu1  ;;  %v6008_v58 = vpop.f32.mrb[35].mxu0 }
 0x151   : > { %8100 = vst [vmem:[#allocation63_spill] sm:$0xff] %v6006_v0  ;;  %8101 = vst [vmem:[#allocation64_spill] sm:$0xff] %v6008_v58  ;;  %v445_v58 = vlaneseq }
 0x155   : > { %v6010_v41 = vpop.f32.mrb[36].mxu1  ;;  %v6012_v53 = vpop.f32.mrb[36].mxu0 }
 0x156   : > { %8102 = vst [vmem:[#allocation65_spill] sm:$0xff] %v6010_v41  ;;  %8103 = vst [vmem:[#allocation66_spill] sm:$0xff] %v6012_v53  ;;  %v6014_v48 = vpop.f32.mrb[37].mxu1  ;;  %v6016_v30 = vpop.f32.mrb[37].mxu0 }
 0x157   : > { %8104 = vst [vmem:[#allocation67_spill] sm:$0xff] %v6014_v48  ;;  %8105 = vst [vmem:[#allocation68_spill] sm:$0xff] %v6016_v30  ;;  %v6018_v45 = vpop.f32.mrb[38].mxu1  ;;  %v6020_v27 = vpop.f32.mrb[38].mxu0 }
 0x158   : > { %8106 = vst [vmem:[#allocation69_spill] sm:$0xff] %v6018_v45  ;;  %8107 = vst [vmem:[#allocation70_spill] sm:$0xff] %v6020_v27  ;;  %v6022_v43 = vpop.f32.mrb[39].mxu1  ;;  %v6024_v13 = vpop.f32.mrb[39].mxu0 }
 0x159   : > { %8108 = vst [vmem:[#allocation71_spill] sm:$0xff] %v6022_v43  ;;  %8109 = vst [vmem:[#allocation72_spill] sm:$0xff] %v6024_v13  ;;  %v446_v43 = vshrl.u32 %v445_v58, 7 }
 0x15d   : > { %v6026_v7 = vpop.f32.mrb[40].mxu1  ;;  %v6028_v0 = vpop.f32.mrb[40].mxu0 }
 0x15e   : > { %8110 = vst [vmem:[#allocation73_spill] sm:$0xff] %v6026_v7  ;;  %8111 = vst [vmem:[#allocation74_spill] sm:$0xff] %v6028_v0  ;;  %v6030_v41 = vpop.f32.mrb[41].mxu1  ;;  %v6032_v53 = vpop.f32.mrb[41].mxu0  ;;  %v447_v7 = vsub.s32 0, %v446_v43 }
 0x15f   : > { %8112 = vst [vmem:[#allocation75_spill] sm:$0xff] %v6030_v41  ;;  %8113 = vst [vmem:[#allocation76_spill] sm:$0xff] %v6032_v53  ;;  %v6034_v48 = vpop.f32.mrb[42].mxu1  ;;  %v6036_v30 = vpop.f32.mrb[42].mxu0  ;;  %v443_v53 = vld [vmem:[%s8035_s3] sm:$0xf] }
 0x160   : > { %8114 = vst [vmem:[#allocation77_spill] sm:$0xff] %v6034_v48  ;;  %8115 = vst [vmem:[#allocation78_spill] sm:$0xff] %v6036_v30  ;;  %v6038_v45 = vpop.f32.mrb[43].mxu1  ;;  %v6040_v27 = vpop.f32.mrb[43].mxu0  ;;  %v451_v48 = vsub.s32 1, %v446_v43 }
 0x161   : > { %8116 = vst [vmem:[#allocation79_spill] sm:$0xff] %v6038_v45  ;;  %8117 = vst [vmem:[#allocation80_spill] sm:$0xff] %v6040_v27 }
 0x165   : > { %v6042_v40 = vpop.f32.mrb[44].mxu1  ;;  %v6044_v13 = vpop.f32.mrb[44].mxu0 }
 0x166   : > { %8118 = vst [vmem:[#allocation81_spill] sm:$0xff] %v6042_v40  ;;  %8119 = vst [vmem:[#allocation82_spill] sm:$0xff] %v6044_v13  ;;  %v6046_v0 = vpop.f32.mrb[45].mxu1  ;;  %v6048_v23 = vpop.f32.mrb[45].mxu0  ;;  %v6061_v40 = vrot.slane %v443_v53, %v447_v7  ;;  %v6063_v13 = vrot.slane %v443_v53, %v451_v48 }
 0x167   : > { %8120 = vst [vmem:[#allocation83_spill] sm:$0xff] %v6046_v0  ;;  %8121 = vst [vmem:[#allocation84_spill] sm:$0xff] %v6048_v23  ;;  %v6053_v30 = vpop.f32.mrb[46].mxu1  ;;  %v6055_v45 = vpop.f32.mrb[46].mxu0 }
 0x168   : > { %8122 = vst [vmem:[#allocation85_spill] sm:$0xff] %v6053_v30  ;;  %8123 = vst [vmem:[#allocation86_spill] sm:$0xff] %v6055_v45  ;;  %v6057_v27 = vpop.f32.mrb[47].mxu1  ;;  %v6059_v58 = vpop.f32.mrb[47].mxu0  ;;  %v592_v23 = vadd.f32 %v5868_v54, %v6061_v40  ;;  %v594_v0 = vadd.f32 %v5872_v61, %v6063_v13 }
 0x169   : > { %8124 = vst [vmem:[#allocation87_spill] sm:$0xff] %v6057_v27  ;;  %8125 = vst [vmem:[#allocation88_spill] sm:$0xff] %v6059_v58 }
 0x16d   : > { %v6069_v41 = vpop.f32.mrb[48].mxu1  ;;  %v1129_v38 = vpop.f32.mrb[48].mxu0 }
 0x16e   : > { %8126 = vst [vmem:[#allocation89_spill] sm:$0xff] %v6069_v41  ;;  %v1177_v30 = vadd.f32 %v1129_v38, %v592_v23  ;;  %v6071_v32 = vpop.f32.mrb[49].mxu1  ;;  %v1131_v45 = vpop.f32.mrb[49].mxu0 }
 0x16f   : > { %8127 = vst [vmem:[#allocation90_spill] sm:$0xff] %v6071_v32  ;;  %v1178_v27 = vadd.f32 %v1131_v45, %v594_v0  ;;  %v6073_v36 = vpop.f32.mrb[50].mxu1  ;;  %v1133_v7 = vpop.f32.mrb[50].mxu0 }
 0x170   : > { %8128 = vst [vmem:[#allocation91_spill] sm:$0xff] %v6073_v36  ;;  %v6075_v58 = vpop.f32.mrb[51].mxu1  ;;  %v1134_v48 = vpop.f32.mrb[51].mxu0  ;;  %v4470_v23 = vmul.f32 -1.442695, %v1177_v30 }
 0x171   : > { %8129 = vst [vmem:[#allocation92_spill] sm:$0xff] %v6075_v58  ;;  %v4471_v41 = vmul.f32 -1.442695, %v1178_v27  ;;  %v455_v48 = vsub.s32 2, %v446_v43 }
 0x173   : > { %4712 = vpow2.f32 %v4471_v41  ;;  %v6099_v41 = vrot.slane %v443_v53, %v455_v48 }
 0x174   : > { %4714 = vpow2.f32 %v4470_v23 }
 0x175   : > { %v6077_v57 = vpop.f32.mrb[52].mxu1 }
 0x176   : > { %8130 = vst [vmem:[#allocation93_spill] sm:$0xff] %v6077_v57  ;;  %v6079_v54 = vpop.f32.mrb[53].mxu1  ;;  %v459_v57 = vsub.s32 3, %v446_v43 }
 0x177   : > { %8131 = vst [vmem:[#allocation94_spill] sm:$0xff] %v6079_v54  ;;  %v6081_v34 = vpop.f32.mrb[54].mxu1 }
 0x178   : > { %8132 = vst [vmem:[#allocation95_spill] sm:$0xff] %v6081_v34  ;;  %v6083_v61 = vpop.f32.mrb[55].mxu1  ;;  %v6103_v23 = vrot.slane %v443_v53, %v459_v57 }
 0x179   : > { %8133 = vst [vmem:[#allocation96_spill] sm:$0xff] %v6083_v61 }
 0x17a   : > { %v767_v43 = vadd.f32 %v5902_v37, %v6103_v23 }
 0x17d   : > { %v6085_v38 = vpop.f32.mrb[56].mxu1  ;;  %v4713_v34 = vpop.eup %4712 }
 0x17e   : > { %8134 = vst [vmem:[#allocation97_spill] sm:$0xff] %v6085_v38  ;;  %v6087_v0 = vpop.f32.mrb[57].mxu1  ;;  %v4715_v30 = vpop.eup %4714 }
 0x17f   : > { %8135 = vst [vmem:[#allocation98_spill] sm:$0xff] %v6087_v0  ;;  %v6089_v45 = vpop.f32.mrb[58].mxu1  ;;  %v1190_v0 = vadd.f32 1.0, %v4713_v34 }
 0x180   : > { %8136 = vst [vmem:[#allocation99_spill] sm:$0xff] %v6089_v45  ;;  %v6091_v7 = vpop.f32.mrb[59].mxu1  ;;  %v1184_v45 = vadd.f32 1.0, %v4715_v30 }
 0x181   : > { %8137 = vst [vmem:[#allocation100_spill] sm:$0xff] %v6091_v7  ;;  %v765_v7 = vadd.f32 %v5898_v35, %v6099_v41  ;;  %4716 = vrcp.f32 %v1190_v0 }
 0x182   : > { %4718 = vrcp.f32 %v1184_v45 }
 0x185   : > { %v6093_v58 = vpop.f32.mrb[60].mxu1 }
 0x186   : > { %8138 = vst [vmem:[#allocation101_spill] sm:$0xff] %v6093_v58  ;;  %v6095_v54 = vpop.f32.mrb[61].mxu1 }
 0x187   : > { %8139 = vst [vmem:[#allocation102_spill] sm:$0xff] %v6095_v54  ;;  %v6097_v61 = vpop.f32.mrb[62].mxu1 }
 0x188   : > { %8140 = vst [vmem:[#allocation103_spill] sm:$0xff] %v6097_v61  ;;  %v6101_v27 = vpop.f32.mrb[63].mxu1 }
 0x189   : > { %8141 = vst [vmem:[#allocation104_spill] sm:$0xff] %v6101_v27 }
 0x18b   : > { %v4717_v53 = vpop.eup %4716 }
 0x18c   : > { %v4719_v34 = vpop.eup %4718  ;;  %v1200_v30 = vmul.f32 0.0, %v4717_v53 }
 0x18d   : > { %v1170_v58 = vpop.f32.mrb[64].mxu1 }
 0x18e   : > { %v1179_v54 = vadd.f32 %v1170_v58, %v765_v7  ;;  %v1172_v38 = vpop.f32.mrb[65].mxu1  ;;  %v771_v7 = vadd.f32 %v5910_v42, %v6103_v23 }
 0x18f   : > { %v1180_v61 = vadd.f32 %v1172_v38, %v767_v43  ;;  %v1174_v48 = vpop.f32.mrb[66].mxu1 }
 0x190   : > { %4720 = vtanh.f32 %v1179_v54  ;;  %v1175_v36 = vpop.f32.mrb[67].mxu1  ;;  %v769_v54 = vadd.f32 %v5906_v39, %v6099_v41 }
 0x191   : > { %v4472_v27 = vmul.f32 -1.442695, %v1180_v61  ;;  %v596_v36 = vadd.f32 %v5876_v2, %v6061_v40  ;;  %v598_v61 = vadd.f32 %v5880_v10, %v6063_v13 }
 0x193   : > { %4722 = vpow2.f32 %v4472_v27 }
 0x19a   : > { %v4721_v57 = vpop.eup %4720 }
 0x19b   : > { %v1201_v32 = vmul.f32 %v4721_v57, %v4719_v34 }
 0x19d   : > { %v4723_v35 = vpop.eup %4722  ;;  %v6109_v50 = vadd.f32 %v1201_v32, %v1200_v30  ;;  %v8142_v32 = vmov 0  }
 0x19e   : > { %v1197_v37 = vadd.f32 1.0, %v4723_v35 }
 0x19f   : > { %4724 = vtanh.f32 %v6109_v50 }
 0x1a0   : > { %4726 = vrcp.f32 %v1197_v37 }
 0x1a9   : > { %v4725_v58 = vpop.eup %4724 }
 0x1aa   : > { %v4727_v0 = vpop.eup %4726 }
 0x1ab   : > { %v1204_v38 = vmul.f32 %v4727_v0, %v4725_v58 }
 0x1ad   : > { %v1205_v45 = vpack.c.bf16 %v1204_v38, %v1204_v38 }
 0x1af   : > { %1239 = vmatmul.mubr.bf16.vlgmr.msra.gmra.mrb[52].mxu0 %v1205_v45  ;;  %1280 = vmatmul.mubr.bf16.vlgmr.msra.gmra.mrb[68].mxu1 %v1205_v45 }
 0x1b0   : > { %1318 = vmatpush1.bf16.msra.mxu0 %v5564_v49  ;;  %1359 = vmatpush1.bf16.msra.mxu1 %v5617_v62 }
 0x1b1   : > { %1319 = vmatprep.subr.bf16.mxu0 %v5578_v52  ;;  %1360 = vmatprep.subr.bf16.mxu1 %v5622_v63 }
 0x1b2   : > { %1349 = vmatprep.mubr.bf16.mxu0 %v8142_v32  ;;  %1390 = vmatprep.mubr.bf16.mxu1 %v8142_v32 }
 0x1b4   : > { %1320 = vmatpush1.bf16.msra.mxu0 %v5588_v55  ;;  %1361 = vmatpush1.bf16.msra.mxu1 %v5645_v4 }
 0x1b5   : > { %1321 = vmatprep.subr.bf16.mxu0 %v5593_v56  ;;  %1362 = vmatprep.subr.bf16.mxu1 %v5652_v5 }
 0x1b8   : > { %1322 = vmatpush1.bf16.msra.mxu0 %v5606_v59  ;;  %1363 = vmatpush1.bf16.msra.mxu1 %v5665_v8 }
 0x1b9   : > { %1323 = vmatprep.subr.bf16.mxu0 %v5612_v60  ;;  %1364 = vmatprep.subr.bf16.mxu1 %v5677_v11 }
 0x1bc   : > { %1324 = vmatpush1.bf16.msra.mxu0 %v5630_v1  ;;  %1365 = vmatpush1.bf16.msra.mxu1 %v5698_v15 }
 0x1bd   : > { %1325 = vmatprep.subr.bf16.mxu0 %v5638_v3  ;;  %1366 = vmatprep.subr.bf16.mxu1 %v5704_v16 }
 0x1c0   : > { %1326 = vmatpush1.bf16.msra.mxu0 %v5658_v6  ;;  %1367 = vmatpush1.bf16.msra.mxu1 %v5717_v19 }
 0x1c1   : > { %1327 = vmatprep.subr.bf16.mxu0 %v5671_v9  ;;  %1368 = vmatprep.subr.bf16.mxu1 %v5728_v21 }
 0x1c4   : > { %1328 = vmatpush1.bf16.msra.mxu0 %v5683_v12  ;;  %1369 = vmatpush1.bf16.msra.mxu1 %v5748_v25 }
 0x1c5   : > { %1329 = vmatprep.subr.bf16.mxu0 %v5691_v14  ;;  %1370 = vmatprep.subr.bf16.mxu1 %v5756_v26 }
 0x1c8   : > { %1330 = vmatpush1.bf16.msra.mxu0 %v5710_v17  ;;  %1371 = vmatpush1.bf16.msra.mxu1 %v5763_v28 }
 0x1c9   : > { %1331 = vmatprep.subr.bf16.mxu0 %v5723_v20  ;;  %1372 = vmatprep.subr.bf16.mxu1 %v5769_v29 }
 0x1cc   : > { %1332 = vmatpush1.bf16.msra.mxu0 %v5733_v22  ;;  %1373 = vmatpush1.bf16.msra.mxu1 %v5781_v33 }
 0x1cd   : > { %1428 = vmatprep.subr.bf16.mxu0 %v5556_v46  ;;  %1469 = vmatprep.subr.bf16.mxu1 %v5572_v51 }
 0x282   : > { %v1240_v27 = vpop.f32.mrb[52].mxu0  ;;  %v1281_v43 = vpop.f32.mrb[68].mxu1 }
 0x283   : > { %v1288_v48 = vadd.f32 %v1240_v27, %v596_v36  ;;  %v1290_v53 = vadd.f32 %v1281_v43, %v769_v54  ;;  %v1242_v34 = vpop.f32.mrb[53].mxu0  ;;  %v1283_v46 = vpop.f32.mrb[69].mxu1 }
 0x284   : > { %v1289_v57 = vadd.f32 %v1242_v34, %v598_v61  ;;  %v1291_v30 = vadd.f32 %v1283_v46, %v771_v7  ;;  %v1244_v35 = vpop.f32.mrb[54].mxu0  ;;  %v1285_v37 = vpop.f32.mrb[70].mxu1 }
 0x285   : > { %v4473_v2 = vmul.f32 -1.442695, %v1288_v48  ;;  %v1245_v58 = vpop.f32.mrb[55].mxu0  ;;  %v1286_v0 = vpop.f32.mrb[71].mxu1 }
 0x286   : > { %v4474_v39 = vmul.f32 -1.442695, %v1289_v57  ;;  %v4475_v10 = vmul.f32 -1.442695, %v1291_v30 }
 0x287   : > { %4728 = vpow2.f32 %v4473_v2 }
 0x288   : > { %4730 = vpow2.f32 %v4474_v39 }
 0x289   : > { %4732 = vpow2.f32 %v4475_v10 }
 0x28a   : > { %4734 = vtanh.f32 %v1290_v53 }
 0x291   : > { %v4729_v38 = vpop.eup %4728 }
 0x292   : > { %v4731_v45 = vpop.eup %4730  ;;  %v1295_v42 = vadd.f32 1.0, %v4729_v38 }
 0x293   : > { %v1301_v36 = vadd.f32 1.0, %v4731_v45  ;;  %v4733_v54 = vpop.eup %4732 }
 0x294   : > { %4736 = vrcp.f32 %v1295_v42  ;;  %v4735_v61 = vpop.eup %4734  ;;  %v1308_v48 = vadd.f32 1.0, %v4733_v54 }
 0x295   : > { %4738 = vrcp.f32 %v1301_v36 }
 0x296   : > { %4740 = vrcp.f32 %v1308_v48 }
 0x29e   : > { %v4737_v7 = vpop.eup %4736 }
 0x29f   : > { %v4739_v27 = vpop.eup %4738  ;;  %v1312_v43 = vmul.f32 %v4737_v7, %v4735_v61 }
 0x2a0   : > { %v1311_v34 = vmul.f32 %v4739_v27, %v6109_v50  ;;  %v4741_v57 = vpop.eup %4740 }
 0x2a2   : > { %v6155_v46 = vadd.f32 %v1312_v43, %v1311_v34 }
 0x2a4   : > { %4742 = vtanh.f32 %v6155_v46 }
 0x2ae   : > { %v4743_v30 = vpop.eup %4742 }
 0x2af   : > { %v1315_v35 = vmul.f32 %v4743_v30, %v4741_v57  ;;  %v6212_v30 = vld [vmem:[%s8034_s2] ss:$16 sps:$4 sm:$0xff]  }
 0x2b1   : > { %v1316_v53 = vpack.c.bf16 %v1315_v35, %v1315_v35  ;;  %v6224_v35 = vld [vmem:[%s8034_s2 + $0x24] ss:$16 sps:$4 sm:$0xff]  }
 0x2b3   : > { %1350 = vmatmul.mubr.bf16.vlgmr.msra.gmra.mrb[56].mxu0 %v1316_v53  ;;  %1391 = vmatmul.mubr.bf16.vlgmr.msra.gmra.mrb[72].mxu1 %v1316_v53  ;;  %v6230_v53 = vld [vmem:[%s8034_s2 + $0x2c] ss:$16 sps:$4 sm:$0xff]  }
 0x2b4   : > { %1429 = vmatpush1.bf16.msra.mxu0 %v5564_v49  ;;  %1470 = vmatpush1.bf16.msra.mxu1 %v5617_v62  ;;  %v6193_v49 = vld [vmem:[%s8034_s2 + $0x4] ss:$16 sps:$4 sm:$0xff]  }
 0x2b5   : > { %1430 = vmatprep.subr.bf16.mxu0 %v5578_v52  ;;  %1471 = vmatprep.subr.bf16.mxu1 %v5622_v63  ;;  %v602_v52 = vadd.f32 %v5884_v18, %v6061_v40 }
 0x2b6   : > { %1460 = vmatprep.mubr.bf16.mxu0 %v8142_v32  ;;  %1501 = vmatprep.mubr.bf16.mxu1 %v8142_v32 }
 0x2b8   : > { %1431 = vmatpush1.bf16.msra.mxu0 %v5588_v55  ;;  %1472 = vmatpush1.bf16.msra.mxu1 %v5645_v4  ;;  %v775_v55 = vadd.f32 %v5914_v44, %v6099_v41 }
 0x2b9   : > { %1432 = vmatprep.subr.bf16.mxu0 %v5593_v56  ;;  %1473 = vmatprep.subr.bf16.mxu1 %v5652_v5  ;;  %v604_v56 = vadd.f32 %v5888_v24, %v6063_v13 }
 0x2bc   : > { %1433 = vmatpush1.bf16.msra.mxu0 %v5606_v59  ;;  %1474 = vmatpush1.bf16.msra.mxu1 %v5665_v8  ;;  %v777_v59 = vadd.f32 %v5918_v47, %v6103_v23 }
 0x2bd   : > { %1434 = vmatprep.subr.bf16.mxu0 %v5612_v60  ;;  %1475 = vmatprep.subr.bf16.mxu1 %v5677_v11 }
 0x2c0   : > { %1435 = vmatpush1.bf16.msra.mxu0 %v5630_v1  ;;  %1476 = vmatpush1.bf16.msra.mxu1 %v5698_v15 }
 0x2c1   : > { %1436 = vmatprep.subr.bf16.mxu0 %v5638_v3  ;;  %1477 = vmatprep.subr.bf16.mxu1 %v5704_v16 }
 0x2c4   : > { %1437 = vmatpush1.bf16.msra.mxu0 %v5658_v6  ;;  %1478 = vmatpush1.bf16.msra.mxu1 %v5717_v19 }
 0x2c5   : > { %1438 = vmatprep.subr.bf16.mxu0 %v5671_v9  ;;  %1479 = vmatprep.subr.bf16.mxu1 %v5728_v21 }
 0x2c8   : > { %1439 = vmatpush1.bf16.msra.mxu0 %v5683_v12  ;;  %1480 = vmatpush1.bf16.msra.mxu1 %v5748_v25 }
 0x2c9   : > { %1440 = vmatprep.subr.bf16.mxu0 %v5691_v14  ;;  %1481 = vmatprep.subr.bf16.mxu1 %v5756_v26 }
 0x2cc   : > { %1441 = vmatpush1.bf16.msra.mxu0 %v5710_v17  ;;  %1482 = vmatpush1.bf16.msra.mxu1 %v5763_v28 }
 0x2cd   : > { %1442 = vmatprep.subr.bf16.mxu0 %v5723_v20  ;;  %1483 = vmatprep.subr.bf16.mxu1 %v5769_v29 }
 0x2d0   : > { %1443 = vmatpush1.bf16.msra.mxu0 %v5733_v22  ;;  %1484 = vmatpush1.bf16.msra.mxu1 %v5781_v33 }
 0x2d1   : > { %1539 = vmatprep.subr.bf16.mxu0 %v6193_v49  ;;  %1580 = vmatprep.subr.bf16.mxu1 %v5572_v51 }
 0x386   : > { %v1351_v60 = vpop.f32.mrb[56].mxu0  ;;  %v1392_v62 = vpop.f32.mrb[72].mxu1 }
 0x387   : > { %v1399_v63 = vadd.f32 %v1351_v60, %v602_v52  ;;  %v1401_v1 = vadd.f32 %v1392_v62, %v775_v55  ;;  %v1353_v3 = vpop.f32.mrb[57].mxu0  ;;  %v1394_v4 = vpop.f32.mrb[73].mxu1  ;;  %v6238_v52 = vld [vmem:[%s8034_s2 + $0x20] ss:$16 sps:$4 sm:$0xff]   ;;  %v6244_v55 = vld [vmem:[%s8034_s2 + $0x28] ss:$16 sps:$4 sm:$0xff]  }
 0x388   : > { %v1400_v6 = vadd.f32 %v1353_v3, %v604_v56  ;;  %v1402_v51 = vadd.f32 %v1394_v4, %v777_v59  ;;  %v1355_v50 = vpop.f32.mrb[58].mxu0  ;;  %v1396_v37 = vpop.f32.mrb[74].mxu1  ;;  %v6250_v56 = vld [vmem:[%s8034_s2 + $0x44] ss:$16 sps:$4 sm:$0xff]   ;;  %v6257_v59 = vld [vmem:[%s8034_s2 + $0x40] ss:$16 sps:$4 sm:$0xff]  }
 0x389   : > { %v4476_v18 = vmul.f32 -1.442695, %v1399_v63  ;;  %v1356_v2 = vpop.f32.mrb[59].mxu0  ;;  %v1397_v58 = vpop.f32.mrb[75].mxu1  ;;  %v6264_v60 = vld [vmem:[%s8034_s2 + $0x64] ss:$16 sps:$4 sm:$0xff]  }
 0x38a   : > { %v4477_v44 = vmul.f32 -1.442695, %v1400_v6  ;;  %v4478_v24 = vmul.f32 -1.442695, %v1402_v51 }
 0x38b   : > { %4744 = vpow2.f32 %v4476_v18 }
 0x38c   : > { %4746 = vpow2.f32 %v4477_v44 }
 0x38d   : > { %4748 = vpow2.f32 %v4478_v24 }
 0x38e   : > { %4750 = vtanh.f32 %v1401_v1 }
 0x395   : > { %v4745_v0 = vpop.eup %4744 }
 0x396   : > { %v4747_v39 = vpop.eup %4746  ;;  %v1406_v47 = vadd.f32 1.0, %v4745_v0 }
 0x397   : > { %v1412_v10 = vadd.f32 1.0, %v4747_v39  ;;  %v4749_v38 = vpop.eup %4748 }
 0x398   : > { %4752 = vrcp.f32 %v1406_v47  ;;  %v4751_v45 = vpop.eup %4750  ;;  %v1419_v61 = vadd.f32 1.0, %v4749_v38 }
 0x399   : > { %4754 = vrcp.f32 %v1412_v10 }
 0x39a   : > { %4756 = vrcp.f32 %v1419_v61  ;;  %v6332_v61 = vld [vmem:[%s8034_s2 + $0x4c] ss:$16 sps:$4 sm:$0xff]  }
 0x3a2   : > { %v4753_v42 = vpop.eup %4752 }
 0x3a3   : > { %v4755_v36 = vpop.eup %4754  ;;  %v1423_v54 = vmul.f32 %v4753_v42, %v4751_v45 }
 0x3a4   : > { %v1422_v7 = vmul.f32 %v4755_v36, %v6155_v46  ;;  %v4757_v43 = vpop.eup %4756  ;;  %v6218_v46 = vld [vmem:[%s8034_s2 + $0x8] ss:$16 sps:$4 sm:$0xff]  }
 0x3a6   : > { %v6206_v27 = vadd.f32 %v1423_v54, %v1422_v7  ;;  %v6339_v7 = vld [vmem:[%s8034_s2 + $0x48] ss:$16 sps:$4 sm:$0xff]  }
 0x3a8   : > { %4758 = vtanh.f32 %v6206_v27 }
 0x3b2   : > { %v4759_v48 = vpop.eup %4758 }
 0x3b3   : > { %v1426_v34 = vmul.f32 %v4759_v48, %v4757_v43  ;;  %v6353_v43 = vld [vmem:[%s8034_s2 + $0x68] ss:$16 sps:$4 sm:$0xff]   ;;  %v6360_v48 = vld [vmem:[%s8034_s2 + $0x8c] ss:$16 sps:$4 sm:$0xff]  }
 0x3b5   : > { %v1427_v57 = vpack.c.bf16 %v1426_v34, %v1426_v34  ;;  %v6367_v34 = vld [vmem:[%s8034_s2 + $0x88] ss:$16 sps:$4 sm:$0xff]  }
 0x3b7   : > { %1461 = vmatmul.mubr.bf16.vlgmr.msra.gmra.mrb[60].mxu0 %v1427_v57  ;;  %1502 = vmatmul.mubr.bf16.vlgmr.msra.gmra.mrb[76].mxu1 %v1427_v57  ;;  %v6373_v57 = vld [vmem:[%s8034_s2 + $0xa4] ss:$16 sps:$4 sm:$0xff]  }
 0x3b8   : > { %1540 = vmatpush1.bf16.msra.mxu0 %v6212_v30  ;;  %1581 = vmatpush1.bf16.msra.mxu1 %v6218_v46 }
 0x3b9   : > { %1541 = vmatprep.subr.bf16.mxu0 %v6224_v35  ;;  %1582 = vmatprep.subr.bf16.mxu1 %v6230_v53 }
 0x3ba   : > { %1571 = vmatprep.mubr.bf16.mxu0 %v8142_v32  ;;  %1612 = vmatprep.mubr.bf16.mxu1 %v8142_v32 }
 0x3bc   : > { %1542 = vmatpush1.bf16.msra.mxu0 %v6238_v52  ;;  %1583 = vmatpush1.bf16.msra.mxu1 %v6244_v55 }
 0x3bd   : > { %1543 = vmatprep.subr.bf16.mxu0 %v6250_v56  ;;  %1584 = vmatprep.subr.bf16.mxu1 %v5652_v5  ;;  %v6271_v5 = vld [vmem:[%s8034_s2 + $0x60] ss:$16 sps:$4 sm:$0xff]  }
 0x3c0   : > { %1544 = vmatpush1.bf16.msra.mxu0 %v6257_v59  ;;  %1585 = vmatpush1.bf16.msra.mxu1 %v5665_v8  ;;  %v6278_v8 = vld [vmem:[%s8034_s2 + $0x84] ss:$16 sps:$4 sm:$0xff]  }
 0x3c1   : > { %1545 = vmatprep.subr.bf16.mxu0 %v6264_v60  ;;  %1586 = vmatprep.subr.bf16.mxu1 %v5677_v11  ;;  %v6285_v11 = vld [vmem:[%s8034_s2 + $0x80] ss:$16 sps:$4 sm:$0xff]  }
 0x3c4   : > { %1546 = vmatpush1.bf16.msra.mxu0 %v6271_v5  ;;  %1587 = vmatpush1.bf16.msra.mxu1 %v5698_v15 }
 0x3c5   : > { %1547 = vmatprep.subr.bf16.mxu0 %v6278_v8  ;;  %1588 = vmatprep.subr.bf16.mxu1 %v5704_v16  ;;  %v8144_v16 = vld [vmem:[#allocation14_spill] sm:$0xff] }
 0x3c8   : > { %1548 = vmatpush1.bf16.msra.mxu0 %v6285_v11  ;;  %1589 = vmatpush1.bf16.msra.mxu1 %v5717_v19  ;;  %v8145_v19 = vld [vmem:[#allocation23_spill] sm:$0xff] }
 0x3c9   : > { %1549 = vmatprep.subr.bf16.mxu0 %v5671_v9  ;;  %1590 = vmatprep.subr.bf16.mxu1 %v5728_v21  ;;  %v6305_v9 = vld [vmem:[%s8034_s2 + $0xc] ss:$16 sps:$4 sm:$0xff]  }
 0x3cc   : > { %1550 = vmatpush1.bf16.msra.mxu0 %v5683_v12  ;;  %1591 = vmatpush1.bf16.msra.mxu1 %v5748_v25  ;;  %v606_v12 = vadd.f32 %v5892_v31, %v6061_v40 }
 0x3cd   : > { %1551 = vmatprep.subr.bf16.mxu0 %v5691_v14  ;;  %1592 = vmatprep.subr.bf16.mxu1 %v5756_v26  ;;  %v8143_v14 = vld [vmem:[#allocation21_spill] sm:$0xff] }
 0x3ce   : > { %v779_v15 = vadd.f32 %v8143_v14, %v6099_v41  ;;  %v6385_v14 = vld [vmem:[%s8034_s2 + $0xa0] ss:$16 sps:$4 sm:$0xff]  }
 0x3d0   : > { %1552 = vmatpush1.bf16.msra.mxu0 %v5710_v17  ;;  %1593 = vmatpush1.bf16.msra.mxu1 %v5763_v28  ;;  %v608_v17 = vadd.f32 %v8144_v16, %v6063_v13  ;;  %v6397_v16 = vld [vmem:[%s8034_s2 + $0xc4] ss:$16 sps:$4 sm:$0xff]  }
 0x3d1   : > { %1553 = vmatprep.subr.bf16.mxu0 %v5723_v20  ;;  %1594 = vmatprep.subr.bf16.mxu1 %v5769_v29  ;;  %v781_v20 = vadd.f32 %v8145_v19, %v6103_v23  ;;  %v6409_v19 = vld [vmem:[%s8034_s2 + $0xc0] ss:$16 sps:$4 sm:$0xff]  }
 0x3d4   : > { %1554 = vmatpush1.bf16.msra.mxu0 %v5733_v22  ;;  %1595 = vmatpush1.bf16.msra.mxu1 %v5781_v33 }
 0x3d5   : > { %1650 = vmatprep.subr.bf16.mxu0 %v6193_v49  ;;  %1691 = vmatprep.subr.bf16.mxu1 %v6305_v9 }
 0x48a   : > { %v1462_v21 = vpop.f32.mrb[60].mxu0  ;;  %v1503_v22 = vpop.f32.mrb[76].mxu1 }
 0x48b   : > { %v1510_v25 = vadd.f32 %v1462_v21, %v606_v12  ;;  %v1512_v26 = vadd.f32 %v1503_v22, %v779_v15  ;;  %v1464_v28 = vpop.f32.mrb[61].mxu0  ;;  %v1505_v29 = vpop.f32.mrb[77].mxu1  ;;  %v6379_v12 = vld [vmem:[%s8034_s2 + $0xac] ss:$16 sps:$4 sm:$0xff]   ;;  %v6391_v15 = vld [vmem:[%s8034_s2 + $0xa8] ss:$16 sps:$4 sm:$0xff]  }
 0x48c   : > { %v1511_v33 = vadd.f32 %v1464_v28, %v608_v17  ;;  %v1513_v62 = vadd.f32 %v1505_v29, %v781_v20  ;;  %v1466_v63 = vpop.f32.mrb[62].mxu0  ;;  %v1507_v1 = vpop.f32.mrb[78].mxu1  ;;  %v6403_v17 = vld [vmem:[%s8034_s2 + $0xcc] ss:$16 sps:$4 sm:$0xff]   ;;  %v6415_v20 = vld [vmem:[%s8034_s2 + $0xc8] ss:$16 sps:$4 sm:$0xff]  }
 0x48d   : > { %v4479_v31 = vmul.f32 -1.442695, %v1510_v25  ;;  %v1467_v3 = vpop.f32.mrb[63].mxu0  ;;  %v1508_v4 = vpop.f32.mrb[79].mxu1  ;;  %v6421_v21 = vld [vmem:[%s8034_s2 + $0xe4] ss:$16 sps:$4 sm:$0xff]  }
 0x48e   : > { %v4480_v6 = vmul.f32 -1.442695, %v1511_v33  ;;  %v4481_v51 = vmul.f32 -1.442695, %v1513_v62  ;;  %v6427_v22 = vld [vmem:[%s8034_s2 + $0xec] ss:$16 sps:$4 sm:$0xff]  }
 0x48f   : > { %4760 = vpow2.f32 %v4479_v31  ;;  %v6433_v25 = vld [vmem:[%s8034_s2 + $0xe0] ss:$16 sps:$4 sm:$0xff]   ;;  %v8146_v28 = vld [vmem:[#allocation15_spill] sm:$0xff]  ;;  %v8147_v33 = vld [vmem:[#allocation25_spill] sm:$0xff] }
 0x490   : > { %4762 = vpow2.f32 %v4480_v6  ;;  %v612_v29 = vadd.f32 %v8146_v28, %v6061_v40  ;;  %v785_v62 = vadd.f32 %v8147_v33, %v6099_v41  ;;  %v8148_v63 = vld [vmem:[#allocation16_spill] sm:$0xff]  ;;  %v8149_v31 = vld [vmem:[#allocation27_spill] sm:$0xff] }
 0x491   : > { %4764 = vpow2.f32 %v4481_v51  ;;  %v614_v1 = vadd.f32 %v8148_v63, %v6063_v13  ;;  %v787_v3 = vadd.f32 %v8149_v31, %v6103_v23 }
 0x492   : > { %4766 = vtanh.f32 %v1512_v26  ;;  %v6439_v26 = vld [vmem:[%s8034_s2 + $0xe8] ss:$16 sps:$4 sm:$0xff]  }
 0x499   : > { %v4761_v50 = vpop.eup %4760 }
 0x49a   : > { %v4763_v37 = vpop.eup %4762  ;;  %v1517_v18 = vadd.f32 1.0, %v4761_v50 }
 0x49b   : > { %v1523_v2 = vadd.f32 1.0, %v4763_v37  ;;  %v4765_v58 = vpop.eup %4764 }
 0x49c   : > { %4768 = vrcp.f32 %v1517_v18  ;;  %v4767_v44 = vpop.eup %4766  ;;  %v1530_v47 = vadd.f32 1.0, %v4765_v58 }
 0x49d   : > { %4770 = vrcp.f32 %v1523_v2 }
 0x49e   : > { %4772 = vrcp.f32 %v1530_v47 }
 0x4a6   : > { %v4769_v24 = vpop.eup %4768 }
 0x4a7   : > { %v4771_v0 = vpop.eup %4770  ;;  %v1534_v39 = vmul.f32 %v4769_v24, %v4767_v44 }
 0x4a8   : > { %v1533_v10 = vmul.f32 %v4771_v0, %v6206_v27  ;;  %v4773_v45 = vpop.eup %4772  ;;  %v6346_v27 = vld [vmem:[%s8034_s2 + $0x6c] ss:$16 sps:$4 sm:$0xff]  }
 0x4aa   : > { %v6317_v38 = vadd.f32 %v1534_v39, %v1533_v10 }
 0x4ac   : > { %4774 = vtanh.f32 %v6317_v38 }
 0x4b6   : > { %v4775_v42 = vpop.eup %4774 }
 0x4b7   : > { %v1537_v36 = vmul.f32 %v4775_v42, %v4773_v45 }
 0x4b9   : > { %v1538_v54 = vpack.c.bf16 %v1537_v36, %v1537_v36 }
 0x4bb   : > { %1572 = vmatmul.mubr.bf16.vlgmr.msra.gmra.mrb[64].mxu0 %v1538_v54  ;;  %1613 = vmatmul.mubr.bf16.vlgmr.msra.gmra.mrb[80].mxu1 %v1538_v54 }
 0x4bc   : > { %1651 = vmatpush1.bf16.msra.mxu0 %v6212_v30  ;;  %1692 = vmatpush1.bf16.msra.mxu1 %v6218_v46 }
 0x4bd   : > { %1652 = vmatprep.subr.bf16.mxu0 %v6224_v35  ;;  %1693 = vmatprep.subr.bf16.mxu1 %v6230_v53 }
 0x4be   : > { %1682 = vmatprep.mubr.bf16.mxu0 %v8142_v32  ;;  %1723 = vmatprep.mubr.bf16.mxu1 %v8142_v32 }
 0x4c0   : > { %1653 = vmatpush1.bf16.msra.mxu0 %v6238_v52  ;;  %1694 = vmatpush1.bf16.msra.mxu1 %v6244_v55 }
 0x4c1   : > { %1654 = vmatprep.subr.bf16.mxu0 %v6250_v56  ;;  %1695 = vmatprep.subr.bf16.mxu1 %v6332_v61 }
 0x4c4   : > { %1655 = vmatpush1.bf16.msra.mxu0 %v6257_v59  ;;  %1696 = vmatpush1.bf16.msra.mxu1 %v6339_v7 }
 0x4c5   : > { %1656 = vmatprep.subr.bf16.mxu0 %v6264_v60  ;;  %1697 = vmatprep.subr.bf16.mxu1 %v6346_v27 }
 0x4c8   : > { %1657 = vmatpush1.bf16.msra.mxu0 %v6271_v5  ;;  %1698 = vmatpush1.bf16.msra.mxu1 %v6353_v43 }
 0x4c9   : > { %1658 = vmatprep.subr.bf16.mxu0 %v6278_v8  ;;  %1699 = vmatprep.subr.bf16.mxu1 %v6360_v48 }
 0x4cc   : > { %1659 = vmatpush1.bf16.msra.mxu0 %v6285_v11  ;;  %1700 = vmatpush1.bf16.msra.mxu1 %v6367_v34 }
 0x4cd   : > { %1660 = vmatprep.subr.bf16.mxu0 %v6373_v57  ;;  %1701 = vmatprep.subr.bf16.mxu1 %v6379_v12 }
 0x4d0   : > { %1661 = vmatpush1.bf16.msra.mxu0 %v6385_v14  ;;  %1702 = vmatpush1.bf16.msra.mxu1 %v6391_v15 }
 0x4d1   : > { %1662 = vmatprep.subr.bf16.mxu0 %v6397_v16  ;;  %1703 = vmatprep.subr.bf16.mxu1 %v6403_v17 }
 0x4d4   : > { %1663 = vmatpush1.bf16.msra.mxu0 %v6409_v19  ;;  %1704 = vmatpush1.bf16.msra.mxu1 %v6415_v20 }
 0x4d5   : > { %1664 = vmatprep.subr.bf16.mxu0 %v6421_v21  ;;  %1705 = vmatprep.subr.bf16.mxu1 %v6427_v22 }
 0x4d8   : > { %1665 = vmatpush1.bf16.msra.mxu0 %v6433_v25  ;;  %1706 = vmatpush1.bf16.msra.mxu1 %v6439_v26 }
 0x4d9   : > { %1761 = vmatprep.subr.bf16.mxu0 %v6193_v49  ;;  %1802 = vmatprep.subr.bf16.mxu1 %v6305_v9 }
 0x58e   : > { %v1573_v4 = vpop.f32.mrb[64].mxu0  ;;  %v1614_v6 = vpop.f32.mrb[80].mxu1 }
 0x58f   : > { %v1621_v51 = vadd.f32 %v1573_v4, %v612_v29  ;;  %v1623_v50 = vadd.f32 %v1614_v6, %v785_v62  ;;  %v1575_v37 = vpop.f32.mrb[65].mxu0  ;;  %v1616_v18 = vpop.f32.mrb[81].mxu1 }
 0x590   : > { %v1622_v2 = vadd.f32 %v1575_v37, %v614_v1  ;;  %v1624_v58 = vadd.f32 %v1616_v18, %v787_v3  ;;  %v1577_v44 = vpop.f32.mrb[66].mxu0  ;;  %v1618_v24 = vpop.f32.mrb[82].mxu1 }
 0x591   : > { %v4482_v0 = vmul.f32 -1.442695, %v1621_v51  ;;  %v1578_v39 = vpop.f32.mrb[67].mxu0  ;;  %v1619_v47 = vpop.f32.mrb[83].mxu1  ;;  %v8152_v44 = vld [vmem:[#allocation18_spill] sm:$0xff] }
 0x592   : > { %v4483_v10 = vmul.f32 -1.442695, %v1622_v2  ;;  %v4484_v45 = vmul.f32 -1.442695, %v1624_v58  ;;  %v8151_v2 = vld [vmem:[#allocation29_spill] sm:$0xff]  ;;  %v618_v24 = vadd.f32 %v8152_v44, %v6063_v13 }
 0x593   : > { %4776 = vpow2.f32 %v4482_v0  ;;  %v789_v58 = vadd.f32 %v8151_v2, %v6099_v41  ;;  %v8153_v0 = vld [vmem:[#allocation31_spill] sm:$0xff] }
 0x594   : > { %4778 = vpow2.f32 %v4483_v10  ;;  %v791_v39 = vadd.f32 %v8153_v0, %v6103_v23 }
 0x595   : > { %4780 = vpow2.f32 %v4484_v45 }
 0x596   : > { %4782 = vtanh.f32 %v1623_v50 }
 0x59d   : > { %v4777_v42 = vpop.eup %4776 }
 0x59e   : > { %v4779_v36 = vpop.eup %4778  ;;  %v1628_v54 = vadd.f32 1.0, %v4777_v42 }
 0x59f   : > { %v1634_v28 = vadd.f32 1.0, %v4779_v36  ;;  %v4781_v29 = vpop.eup %4780 }
 0x5a0   : > { %4784 = vrcp.f32 %v1628_v54  ;;  %v4783_v33 = vpop.eup %4782  ;;  %v1641_v31 = vadd.f32 1.0, %v4781_v29 }
 0x5a1   : > { %4786 = vrcp.f32 %v1634_v28 }
 0x5a2   : > { %4788 = vrcp.f32 %v1641_v31 }
 0x5aa   : > { %v4785_v62 = vpop.eup %4784 }
 0x5ab   : > { %v4787_v63 = vpop.eup %4786  ;;  %v1645_v1 = vmul.f32 %v4785_v62, %v4783_v33 }
 0x5ac   : > { %v1644_v3 = vmul.f32 %v4787_v63, %v6317_v38  ;;  %v4789_v6 = vpop.eup %4788  ;;  %v8150_v38 = vld [vmem:[#allocation17_spill] sm:$0xff] }
 0x5ad   : > { %v616_v18 = vadd.f32 %v8150_v38, %v6061_v40 }
 0x5ae   : > { %v6453_v4 = vadd.f32 %v1645_v1, %v1644_v3 }
 0x5b0   : > { %4790 = vtanh.f32 %v6453_v4 }
 0x5ba   : > { %v4791_v51 = vpop.eup %4790 }
 0x5bb   : > { %v1648_v37 = vmul.f32 %v4791_v51, %v4789_v6 }
 0x5bd   : > { %v1649_v50 = vpack.c.bf16 %v1648_v37, %v1648_v37 }
 0x5bf   : > { %1683 = vmatmul.mubr.bf16.vlgmr.msra.gmra.mrb[68].mxu0 %v1649_v50  ;;  %1724 = vmatmul.mubr.bf16.vlgmr.msra.gmra.mrb[84].mxu1 %v1649_v50 }
 0x5c0   : > { %1762 = vmatpush1.bf16.msra.mxu0 %v6212_v30  ;;  %1803 = vmatpush1.bf16.msra.mxu1 %v6218_v46 }
 0x5c1   : > { %1763 = vmatprep.subr.bf16.mxu0 %v6224_v35  ;;  %1804 = vmatprep.subr.bf16.mxu1 %v6230_v53 }
 0x5c2   : > { %1793 = vmatprep.mubr.bf16.mxu0 %v8142_v32  ;;  %1834 = vmatprep.mubr.bf16.mxu1 %v8142_v32 }
 0x5c4   : > { %1764 = vmatpush1.bf16.msra.mxu0 %v6238_v52  ;;  %1805 = vmatpush1.bf16.msra.mxu1 %v6244_v55 }
 0x5c5   : > { %1765 = vmatprep.subr.bf16.mxu0 %v6250_v56  ;;  %1806 = vmatprep.subr.bf16.mxu1 %v6332_v61 }
 0x5c8   : > { %1766 = vmatpush1.bf16.msra.mxu0 %v6257_v59  ;;  %1807 = vmatpush1.bf16.msra.mxu1 %v6339_v7 }
 0x5c9   : > { %1767 = vmatprep.subr.bf16.mxu0 %v6264_v60  ;;  %1808 = vmatprep.subr.bf16.mxu1 %v6346_v27 }
 0x5cc   : > { %1768 = vmatpush1.bf16.msra.mxu0 %v6271_v5  ;;  %1809 = vmatpush1.bf16.msra.mxu1 %v6353_v43 }
 0x5cd   : > { %1769 = vmatprep.subr.bf16.mxu0 %v6278_v8  ;;  %1810 = vmatprep.subr.bf16.mxu1 %v6360_v48 }
 0x5d0   : > { %1770 = vmatpush1.bf16.msra.mxu0 %v6285_v11  ;;  %1811 = vmatpush1.bf16.msra.mxu1 %v6367_v34 }
 0x5d1   : > { %1771 = vmatprep.subr.bf16.mxu0 %v6373_v57  ;;  %1812 = vmatprep.subr.bf16.mxu1 %v6379_v12 }
 0x5d4   : > { %1772 = vmatpush1.bf16.msra.mxu0 %v6385_v14  ;;  %1813 = vmatpush1.bf16.msra.mxu1 %v6391_v15 }
 0x5d5   : > { %1773 = vmatprep.subr.bf16.mxu0 %v6397_v16  ;;  %1814 = vmatprep.subr.bf16.mxu1 %v6403_v17 }
 0x5d8   : > { %1774 = vmatpush1.bf16.msra.mxu0 %v6409_v19  ;;  %1815 = vmatpush1.bf16.msra.mxu1 %v6415_v20 }
 0x5d9   : > { %1775 = vmatprep.subr.bf16.mxu0 %v6421_v21  ;;  %1816 = vmatprep.subr.bf16.mxu1 %v6427_v22 }
 0x5dc   : > { %1776 = vmatpush1.bf16.msra.mxu0 %v6433_v25  ;;  %1817 = vmatpush1.bf16.msra.mxu1 %v6439_v26 }
 0x5dd   : > { %1872 = vmatprep.subr.bf16.mxu0 %v6193_v49  ;;  %1913 = vmatprep.subr.bf16.mxu1 %v6305_v9 }
 0x692   : > { %v1684_v47 = vpop.f32.mrb[68].mxu0  ;;  %v1725_v10 = vpop.f32.mrb[84].mxu1 }
 0x693   : > { %v1732_v45 = vadd.f32 %v1684_v47, %v616_v18  ;;  %v1734_v42 = vadd.f32 %v1725_v10, %v789_v58  ;;  %v1686_v36 = vpop.f32.mrb[69].mxu0  ;;  %v1727_v54 = vpop.f32.mrb[85].mxu1 }
 0x694   : > { %v1733_v28 = vadd.f32 %v1686_v36, %v618_v24  ;;  %v1735_v29 = vadd.f32 %v1727_v54, %v791_v39  ;;  %v1688_v33 = vpop.f32.mrb[70].mxu0  ;;  %v1729_v62 = vpop.f32.mrb[86].mxu1 }
 0x695   : > { %v4485_v63 = vmul.f32 -1.442695, %v1732_v45  ;;  %v1689_v1 = vpop.f32.mrb[71].mxu0  ;;  %v1730_v31 = vpop.f32.mrb[87].mxu1  ;;  %v8156_v33 = vld [vmem:[#allocation20_spill] sm:$0xff] }
 0x696   : > { %v4486_v3 = vmul.f32 -1.442695, %v1733_v28  ;;  %v4487_v6 = vmul.f32 -1.442695, %v1735_v29  ;;  %v8155_v28 = vld [vmem:[#allocation33_spill] sm:$0xff]  ;;  %v624_v62 = vadd.f32 %v8156_v33, %v6063_v13 }
 0x697   : > { %4792 = vpow2.f32 %v4485_v63  ;;  %v795_v29 = vadd.f32 %v8155_v28, %v6099_v41  ;;  %v8157_v63 = vld [vmem:[#allocation35_spill] sm:$0xff] }
 0x698   : > { %4794 = vpow2.f32 %v4486_v3  ;;  %v797_v1 = vadd.f32 %v8157_v63, %v6103_v23 }
 0x699   : > { %4796 = vpow2.f32 %v4487_v6 }
 0x69a   : > { %4798 = vtanh.f32 %v1734_v42 }
 0x6a1   : > { %v4793_v51 = vpop.eup %4792 }
 0x6a2   : > { %v4795_v37 = vpop.eup %4794  ;;  %v1739_v50 = vadd.f32 1.0, %v4793_v51 }
 0x6a3   : > { %v1745_v38 = vadd.f32 1.0, %v4795_v37  ;;  %v4797_v18 = vpop.eup %4796 }
 0x6a4   : > { %4800 = vrcp.f32 %v1739_v50  ;;  %v4799_v2 = vpop.eup %4798  ;;  %v1752_v0 = vadd.f32 1.0, %v4797_v18 }
 0x6a5   : > { %4802 = vrcp.f32 %v1745_v38 }
 0x6a6   : > { %4804 = vrcp.f32 %v1752_v0 }
 0x6ae   : > { %v4801_v58 = vpop.eup %4800 }
 0x6af   : > { %v4803_v44 = vpop.eup %4802  ;;  %v1756_v24 = vmul.f32 %v4801_v58, %v4799_v2 }
 0x6b0   : > { %v1755_v39 = vmul.f32 %v4803_v44, %v6453_v4  ;;  %v4805_v10 = vpop.eup %4804  ;;  %v8154_v4 = vld [vmem:[#allocation19_spill] sm:$0xff] }
 0x6b1   : > { %v622_v54 = vadd.f32 %v8154_v4, %v6061_v40 }
 0x6b2   : > { %v6499_v47 = vadd.f32 %v1756_v24, %v1755_v39 }
 0x6b4   : > { %4806 = vtanh.f32 %v6499_v47 }
 0x6be   : > { %v4807_v45 = vpop.eup %4806 }
 0x6bf   : > { %v1759_v36 = vmul.f32 %v4807_v45, %v4805_v10 }
 0x6c1   : > { %v1760_v42 = vpack.c.bf16 %v1759_v36, %v1759_v36 }
 0x6c3   : > { %1794 = vmatmul.mubr.bf16.vlgmr.msra.gmra.mrb[72].mxu0 %v1760_v42  ;;  %1835 = vmatmul.mubr.bf16.vlgmr.msra.gmra.mrb[88].mxu1 %v1760_v42 }
 0x6c4   : > { %1873 = vmatpush1.bf16.msra.mxu0 %v6212_v30  ;;  %1914 = vmatpush1.bf16.msra.mxu1 %v6218_v46 }
 0x6c5   : > { %1874 = vmatprep.subr.bf16.mxu0 %v6224_v35  ;;  %1915 = vmatprep.subr.bf16.mxu1 %v6230_v53 }
 0x6c6   : > { %1904 = vmatprep.mubr.bf16.mxu0 %v8142_v32  ;;  %1945 = vmatprep.mubr.bf16.mxu1 %v8142_v32 }
 0x6c8   : > { %1875 = vmatpush1.bf16.msra.mxu0 %v6238_v52  ;;  %1916 = vmatpush1.bf16.msra.mxu1 %v6244_v55 }
 0x6c9   : > { %1876 = vmatprep.subr.bf16.mxu0 %v6250_v56  ;;  %1917 = vmatprep.subr.bf16.mxu1 %v6332_v61 }
 0x6cc   : > { %1877 = vmatpush1.bf16.msra.mxu0 %v6257_v59  ;;  %1918 = vmatpush1.bf16.msra.mxu1 %v6339_v7 }
 0x6cd   : > { %1878 = vmatprep.subr.bf16.mxu0 %v6264_v60  ;;  %1919 = vmatprep.subr.bf16.mxu1 %v6346_v27 }
 0x6d0   : > { %1879 = vmatpush1.bf16.msra.mxu0 %v6271_v5  ;;  %1920 = vmatpush1.bf16.msra.mxu1 %v6353_v43 }
 0x6d1   : > { %1880 = vmatprep.subr.bf16.mxu0 %v6278_v8  ;;  %1921 = vmatprep.subr.bf16.mxu1 %v6360_v48 }
 0x6d4   : > { %1881 = vmatpush1.bf16.msra.mxu0 %v6285_v11  ;;  %1922 = vmatpush1.bf16.msra.mxu1 %v6367_v34 }
 0x6d5   : > { %1882 = vmatprep.subr.bf16.mxu0 %v6373_v57  ;;  %1923 = vmatprep.subr.bf16.mxu1 %v6379_v12 }
 0x6d8   : > { %1883 = vmatpush1.bf16.msra.mxu0 %v6385_v14  ;;  %1924 = vmatpush1.bf16.msra.mxu1 %v6391_v15 }
 0x6d9   : > { %1884 = vmatprep.subr.bf16.mxu0 %v6397_v16  ;;  %1925 = vmatprep.subr.bf16.mxu1 %v6403_v17 }
 0x6dc   : > { %1885 = vmatpush1.bf16.msra.mxu0 %v6409_v19  ;;  %1926 = vmatpush1.bf16.msra.mxu1 %v6415_v20 }
 0x6dd   : > { %1886 = vmatprep.subr.bf16.mxu0 %v6421_v21  ;;  %1927 = vmatprep.subr.bf16.mxu1 %v6427_v22 }
 0x6e0   : > { %1887 = vmatpush1.bf16.msra.mxu0 %v6433_v25  ;;  %1928 = vmatpush1.bf16.msra.mxu1 %v6439_v26 }
 0x6e1   : > { %1983 = vmatprep.subr.bf16.mxu0 %v6193_v49  ;;  %2024 = vmatprep.subr.bf16.mxu1 %v6305_v9 }
 0x796   : > { %v1795_v31 = vpop.f32.mrb[72].mxu0  ;;  %v1836_v3 = vpop.f32.mrb[88].mxu1 }
 0x797   : > { %v1843_v6 = vadd.f32 %v1795_v31, %v622_v54  ;;  %v1845_v51 = vadd.f32 %v1836_v3, %v795_v29  ;;  %v1797_v37 = vpop.f32.mrb[73].mxu0  ;;  %v1838_v50 = vpop.f32.mrb[89].mxu1 }
 0x798   : > { %v1844_v38 = vadd.f32 %v1797_v37, %v624_v62  ;;  %v1846_v18 = vadd.f32 %v1838_v50, %v797_v1  ;;  %v1799_v2 = vpop.f32.mrb[74].mxu0  ;;  %v1840_v58 = vpop.f32.mrb[90].mxu1 }
 0x799   : > { %v4488_v44 = vmul.f32 -1.442695, %v1843_v6  ;;  %v1800_v24 = vpop.f32.mrb[75].mxu0  ;;  %v1841_v0 = vpop.f32.mrb[91].mxu1  ;;  %v8160_v2 = vld [vmem:[#allocation24_spill] sm:$0xff] }
 0x79a   : > { %v4489_v39 = vmul.f32 -1.442695, %v1844_v38  ;;  %v4490_v10 = vmul.f32 -1.442695, %v1846_v18  ;;  %v8159_v38 = vld [vmem:[#allocation37_spill] sm:$0xff]  ;;  %v628_v58 = vadd.f32 %v8160_v2, %v6063_v13 }
 0x79b   : > { %4808 = vpow2.f32 %v4488_v44  ;;  %v799_v18 = vadd.f32 %v8159_v38, %v6099_v41  ;;  %v8161_v44 = vld [vmem:[#allocation39_spill] sm:$0xff] }
 0x79c   : > { %4810 = vpow2.f32 %v4489_v39  ;;  %v801_v24 = vadd.f32 %v8161_v44, %v6103_v23 }
 0x79d   : > { %4812 = vpow2.f32 %v4490_v10 }
 0x79e   : > { %4814 = vtanh.f32 %v1845_v51 }
 0x7a5   : > { %v4809_v45 = vpop.eup %4808 }
 0x7a6   : > { %v4811_v36 = vpop.eup %4810  ;;  %v1850_v42 = vadd.f32 1.0, %v4809_v45 }
 0x7a7   : > { %v1856_v4 = vadd.f32 1.0, %v4811_v36  ;;  %v4813_v54 = vpop.eup %4812 }
 0x7a8   : > { %4816 = vrcp.f32 %v1850_v42  ;;  %v4815_v28 = vpop.eup %4814  ;;  %v1863_v63 = vadd.f32 1.0, %v4813_v54 }
 0x7a9   : > { %4818 = vrcp.f32 %v1856_v4 }
 0x7aa   : > { %4820 = vrcp.f32 %v1863_v63 }
 0x7b2   : > { %v4817_v29 = vpop.eup %4816 }
 0x7b3   : > { %v4819_v33 = vpop.eup %4818  ;;  %v1867_v62 = vmul.f32 %v4817_v29, %v4815_v28 }
 0x7b4   : > { %v1866_v1 = vmul.f32 %v4819_v33, %v6499_v47  ;;  %v4821_v3 = vpop.eup %4820  ;;  %v8158_v47 = vld [vmem:[#allocation22_spill] sm:$0xff] }
 0x7b5   : > { %v626_v50 = vadd.f32 %v8158_v47, %v6061_v40 }
 0x7b6   : > { %v6545_v31 = vadd.f32 %v1867_v62, %v1866_v1 }
 0x7b8   : > { %4822 = vtanh.f32 %v6545_v31 }
 0x7c2   : > { %v4823_v6 = vpop.eup %4822 }
 0x7c3   : > { %v1870_v37 = vmul.f32 %v4823_v6, %v4821_v3 }
 0x7c5   : > { %v1871_v51 = vpack.c.bf16 %v1870_v37, %v1870_v37 }
 0x7c7   : > { %1905 = vmatmul.mubr.bf16.vlgmr.msra.gmra.mrb[76].mxu0 %v1871_v51  ;;  %1946 = vmatmul.mubr.bf16.vlgmr.msra.gmra.mrb[92].mxu1 %v1871_v51 }
 0x7c8   : > { %1984 = vmatpush1.bf16.msra.mxu0 %v6212_v30  ;;  %2025 = vmatpush1.bf16.msra.mxu1 %v6218_v46 }
 0x7c9   : > { %1985 = vmatprep.subr.bf16.mxu0 %v6224_v35  ;;  %2026 = vmatprep.subr.bf16.mxu1 %v6230_v53 }
 0x7ca   : > { %2015 = vmatprep.mubr.bf16.mxu0 %v8142_v32  ;;  %2056 = vmatprep.mubr.bf16.mxu1 %v8142_v32 }
 0x7cc   : > { %1986 = vmatpush1.bf16.msra.mxu0 %v6238_v52  ;;  %2027 = vmatpush1.bf16.msra.mxu1 %v6244_v55 }
 0x7cd   : > { %1987 = vmatprep.subr.bf16.mxu0 %v6250_v56  ;;  %2028 = vmatprep.subr.bf16.mxu1 %v6332_v61 }
 0x7d0   : > { %1988 = vmatpush1.bf16.msra.mxu0 %v6257_v59  ;;  %2029 = vmatpush1.bf16.msra.mxu1 %v6339_v7 }
 0x7d1   : > { %1989 = vmatprep.subr.bf16.mxu0 %v6264_v60  ;;  %2030 = vmatprep.subr.bf16.mxu1 %v6346_v27 }
 0x7d4   : > { %1990 = vmatpush1.bf16.msra.mxu0 %v6271_v5  ;;  %2031 = vmatpush1.bf16.msra.mxu1 %v6353_v43 }
 0x7d5   : > { %1991 = vmatprep.subr.bf16.mxu0 %v6278_v8  ;;  %2032 = vmatprep.subr.bf16.mxu1 %v6360_v48 }
 0x7d8   : > { %1992 = vmatpush1.bf16.msra.mxu0 %v6285_v11  ;;  %2033 = vmatpush1.bf16.msra.mxu1 %v6367_v34 }
 0x7d9   : > { %1993 = vmatprep.subr.bf16.mxu0 %v6373_v57  ;;  %2034 = vmatprep.subr.bf16.mxu1 %v6379_v12 }
 0x7dc   : > { %1994 = vmatpush1.bf16.msra.mxu0 %v6385_v14  ;;  %2035 = vmatpush1.bf16.msra.mxu1 %v6391_v15 }
 0x7dd   : > { %1995 = vmatprep.subr.bf16.mxu0 %v6397_v16  ;;  %2036 = vmatprep.subr.bf16.mxu1 %v6403_v17 }
 0x7e0   : > { %1996 = vmatpush1.bf16.msra.mxu0 %v6409_v19  ;;  %2037 = vmatpush1.bf16.msra.mxu1 %v6415_v20 }
 0x7e1   : > { %1997 = vmatprep.subr.bf16.mxu0 %v6421_v21  ;;  %2038 = vmatprep.subr.bf16.mxu1 %v6427_v22 }
 0x7e4   : > { %1998 = vmatpush1.bf16.msra.mxu0 %v6433_v25  ;;  %2039 = vmatpush1.bf16.msra.mxu1 %v6439_v26 }
 0x7e5   : > { %2094 = vmatprep.subr.bf16.mxu0 %v6193_v49  ;;  %2135 = vmatprep.subr.bf16.mxu1 %v6305_v9 }
 0x89a   : > { %v1906_v0 = vpop.f32.mrb[76].mxu0  ;;  %v1947_v39 = vpop.f32.mrb[92].mxu1 }
 0x89b   : > { %v1954_v10 = vadd.f32 %v1906_v0, %v626_v50  ;;  %v1956_v45 = vadd.f32 %v1947_v39, %v799_v18  ;;  %v1908_v36 = vpop.f32.mrb[77].mxu0  ;;  %v1949_v42 = vpop.f32.mrb[93].mxu1 }
 0x89c   : > { %v1955_v4 = vadd.f32 %v1908_v36, %v628_v58  ;;  %v1957_v54 = vadd.f32 %v1949_v42, %v801_v24  ;;  %v1910_v28 = vpop.f32.mrb[78].mxu0  ;;  %v1951_v29 = vpop.f32.mrb[94].mxu1 }
 0x89d   : > { %v4491_v33 = vmul.f32 -1.442695, %v1954_v10  ;;  %v1911_v62 = vpop.f32.mrb[79].mxu0  ;;  %v1952_v63 = vpop.f32.mrb[95].mxu1  ;;  %v8164_v28 = vld [vmem:[#allocation28_spill] sm:$0xff] }
 0x89e   : > { %v4492_v1 = vmul.f32 -1.442695, %v1955_v4  ;;  %v4493_v3 = vmul.f32 -1.442695, %v1957_v54  ;;  %v8163_v4 = vld [vmem:[#allocation41_spill] sm:$0xff]  ;;  %v634_v29 = vadd.f32 %v8164_v28, %v6063_v13 }
 0x89f   : > { %4824 = vpow2.f32 %v4491_v33  ;;  %v805_v54 = vadd.f32 %v8163_v4, %v6099_v41  ;;  %v8165_v33 = vld [vmem:[#allocation43_spill] sm:$0xff] }
 0x8a0   : > { %4826 = vpow2.f32 %v4492_v1  ;;  %v807_v62 = vadd.f32 %v8165_v33, %v6103_v23 }
 0x8a1   : > { %4828 = vpow2.f32 %v4493_v3 }
 0x8a2   : > { %4830 = vtanh.f32 %v1956_v45 }
 0x8a9   : > { %v4825_v6 = vpop.eup %4824 }
 0x8aa   : > { %v4827_v37 = vpop.eup %4826  ;;  %v1961_v51 = vadd.f32 1.0, %v4825_v6 }
 0x8ab   : > { %v1967_v47 = vadd.f32 1.0, %v4827_v37  ;;  %v4829_v50 = vpop.eup %4828 }
 0x8ac   : > { %4832 = vrcp.f32 %v1961_v51  ;;  %v4831_v38 = vpop.eup %4830  ;;  %v1974_v44 = vadd.f32 1.0, %v4829_v50 }
 0x8ad   : > { %4834 = vrcp.f32 %v1967_v47 }
 0x8ae   : > { %4836 = vrcp.f32 %v1974_v44 }
 0x8b6   : > { %v4833_v18 = vpop.eup %4832 }
 0x8b7   : > { %v4835_v2 = vpop.eup %4834  ;;  %v1978_v58 = vmul.f32 %v4833_v18, %v4831_v38 }
 0x8b8   : > { %v1977_v24 = vmul.f32 %v4835_v2, %v6545_v31  ;;  %v4837_v39 = vpop.eup %4836  ;;  %v8162_v31 = vld [vmem:[#allocation26_spill] sm:$0xff] }
 0x8b9   : > { %v632_v42 = vadd.f32 %v8162_v31, %v6061_v40 }
 0x8ba   : > { %v6591_v0 = vadd.f32 %v1978_v58, %v1977_v24 }
 0x8bc   : > { %4838 = vtanh.f32 %v6591_v0 }
 0x8c6   : > { %v4839_v10 = vpop.eup %4838 }
 0x8c7   : > { %v1981_v36 = vmul.f32 %v4839_v10, %v4837_v39 }
 0x8c9   : > { %v1982_v45 = vpack.c.bf16 %v1981_v36, %v1981_v36 }
 0x8cb   : > { %2016 = vmatmul.mubr.bf16.vlgmr.msra.gmra.mrb[80].mxu0 %v1982_v45  ;;  %2057 = vmatmul.mubr.bf16.vlgmr.msra.gmra.mrb[96].mxu1 %v1982_v45 }
 0x8cc   : > { %2095 = vmatpush1.bf16.msra.mxu0 %v6212_v30  ;;  %2136 = vmatpush1.bf16.msra.mxu1 %v6218_v46 }
 0x8cd   : > { %2096 = vmatprep.subr.bf16.mxu0 %v6224_v35  ;;  %2137 = vmatprep.subr.bf16.mxu1 %v6230_v53 }
 0x8ce   : > { %2126 = vmatprep.mubr.bf16.mxu0 %v8142_v32  ;;  %2167 = vmatprep.mubr.bf16.mxu1 %v8142_v32 }
 0x8d0   : > { %2097 = vmatpush1.bf16.msra.mxu0 %v6238_v52  ;;  %2138 = vmatpush1.bf16.msra.mxu1 %v6244_v55 }
 0x8d1   : > { %2098 = vmatprep.subr.bf16.mxu0 %v6250_v56  ;;  %2139 = vmatprep.subr.bf16.mxu1 %v6332_v61 }
 0x8d4   : > { %2099 = vmatpush1.bf16.msra.mxu0 %v6257_v59  ;;  %2140 = vmatpush1.bf16.msra.mxu1 %v6339_v7 }
 0x8d5   : > { %2100 = vmatprep.subr.bf16.mxu0 %v6264_v60  ;;  %2141 = vmatprep.subr.bf16.mxu1 %v6346_v27 }
 0x8d8   : > { %2101 = vmatpush1.bf16.msra.mxu0 %v6271_v5  ;;  %2142 = vmatpush1.bf16.msra.mxu1 %v6353_v43 }
 0x8d9   : > { %2102 = vmatprep.subr.bf16.mxu0 %v6278_v8  ;;  %2143 = vmatprep.subr.bf16.mxu1 %v6360_v48 }
 0x8dc   : > { %2103 = vmatpush1.bf16.msra.mxu0 %v6285_v11  ;;  %2144 = vmatpush1.bf16.msra.mxu1 %v6367_v34 }
 0x8dd   : > { %2104 = vmatprep.subr.bf16.mxu0 %v6373_v57  ;;  %2145 = vmatprep.subr.bf16.mxu1 %v6379_v12 }
 0x8e0   : > { %2105 = vmatpush1.bf16.msra.mxu0 %v6385_v14  ;;  %2146 = vmatpush1.bf16.msra.mxu1 %v6391_v15 }
 0x8e1   : > { %2106 = vmatprep.subr.bf16.mxu0 %v6397_v16  ;;  %2147 = vmatprep.subr.bf16.mxu1 %v6403_v17 }
 0x8e4   : > { %2107 = vmatpush1.bf16.msra.mxu0 %v6409_v19  ;;  %2148 = vmatpush1.bf16.msra.mxu1 %v6415_v20 }
 0x8e5   : > { %2108 = vmatprep.subr.bf16.mxu0 %v6421_v21  ;;  %2149 = vmatprep.subr.bf16.mxu1 %v6427_v22 }
 0x8e8   : > { %2109 = vmatpush1.bf16.msra.mxu0 %v6433_v25  ;;  %2150 = vmatpush1.bf16.msra.mxu1 %v6439_v26 }
 0x8e9   : > { %2205 = vmatprep.subr.bf16.mxu0 %v6193_v49  ;;  %2246 = vmatprep.subr.bf16.mxu1 %v6305_v9 }
 0x99e   : > { %v2017_v63 = vpop.f32.mrb[80].mxu0  ;;  %v2058_v1 = vpop.f32.mrb[96].mxu1 }
 0x99f   : > { %v2065_v3 = vadd.f32 %v2017_v63, %v632_v42  ;;  %v2067_v6 = vadd.f32 %v2058_v1, %v805_v54  ;;  %v2019_v37 = vpop.f32.mrb[81].mxu0  ;;  %v2060_v49 = vpop.f32.mrb[97].mxu1 }
 0x9a0   : > { %v2066_v51 = vadd.f32 %v2019_v37, %v634_v29  ;;  %v2068_v47 = vadd.f32 %v2060_v49, %v807_v62  ;;  %v2021_v50 = vpop.f32.mrb[82].mxu0  ;;  %v2062_v38 = vpop.f32.mrb[98].mxu1 }
 0x9a1   : > { %v4494_v18 = vmul.f32 -1.442695, %v2065_v3  ;;  %v2022_v2 = vpop.f32.mrb[83].mxu0  ;;  %v2063_v58 = vpop.f32.mrb[99].mxu1 }
 0x9a2   : > { %v4495_v44 = vmul.f32 -1.442695, %v2066_v51  ;;  %v4496_v24 = vmul.f32 -1.442695, %v2068_v47 }
 0x9a3   : > { %4840 = vpow2.f32 %v4494_v18 }
 0x9a4   : > { %4842 = vpow2.f32 %v4495_v44 }
 0x9a5   : > { %4844 = vpow2.f32 %v4496_v24 }
 0x9a6   : > { %4846 = vtanh.f32 %v2067_v6 }
 0x9ad   : > { %v4841_v39 = vpop.eup %4840 }
 0x9ae   : > { %v4843_v10 = vpop.eup %4842  ;;  %v2072_v36 = vadd.f32 1.0, %v4841_v39 }
 0x9af   : > { %v2078_v45 = vadd.f32 1.0, %v4843_v10  ;;  %v4845_v31 = vpop.eup %4844 }
 0x9b0   : > { %4848 = vrcp.f32 %v2072_v36  ;;  %v4847_v42 = vpop.eup %4846  ;;  %v2085_v29 = vadd.f32 1.0, %v4845_v31 }
 0x9b1   : > { %4850 = vrcp.f32 %v2078_v45 }
 0x9b2   : > { %4852 = vrcp.f32 %v2085_v29 }
 0x9ba   : > { %v4849_v4 = vpop.eup %4848 }
 0x9bb   : > { %v4851_v54 = vpop.eup %4850  ;;  %v2089_v28 = vmul.f32 %v4849_v4, %v4847_v42 }
 0x9bc   : > { %v2088_v33 = vmul.f32 %v4851_v54, %v6591_v0  ;;  %v4853_v63 = vpop.eup %4852 }
 0x9be   : > { %v6637_v62 = vadd.f32 %v2089_v28, %v2088_v33 }
 0x9c0   : > { %4854 = vtanh.f32 %v6637_v62 }
 0x9ca   : > { %v4855_v1 = vpop.eup %4854 }
 0x9cb   : > { %v2092_v3 = vmul.f32 %v4855_v1, %v4853_v63 }
 0x9cd   : > { %v2093_v6 = vpack.c.bf16 %v2092_v3, %v2092_v3 }
 0x9cf   : > { %2127 = vmatmul.mubr.bf16.vlgmr.msra.gmra.mrb[84].mxu0 %v2093_v6  ;;  %2168 = vmatmul.mubr.bf16.vlgmr.msra.gmra.mrb[100].mxu1 %v2093_v6 }
 0x9d0   : > { %2206 = vmatpush1.bf16.msra.mxu0 %v6212_v30  ;;  %2247 = vmatpush1.bf16.msra.mxu1 %v6218_v46  ;;  %v6675_v30 = vld [vmem:[%s8034_s2 + $0x4] ss:$16 sps:$4 sm:$0xff]  }
 0x9d1   : > { %2207 = vmatprep.subr.bf16.mxu0 %v6224_v35  ;;  %2248 = vmatprep.subr.bf16.mxu1 %v6230_v53  ;;  %v8166_v46 = vld [vmem:[#allocation30_spill] sm:$0xff]  ;;  %v8167_v53 = vld [vmem:[#allocation45_spill] sm:$0xff] }
 0x9d2   : > { %2237 = vmatprep.mubr.bf16.mxu0 %v8142_v32  ;;  %2278 = vmatprep.mubr.bf16.mxu1 %v8142_v32  ;;  %v636_v35 = vadd.f32 %v8166_v46, %v6061_v40  ;;  %v6694_v46 = vld [vmem:[%s8034_s2] ss:$16 sps:$4 sm:$0xff]  }
 0x9d4   : > { %2208 = vmatpush1.bf16.msra.mxu0 %v6238_v52  ;;  %2249 = vmatpush1.bf16.msra.mxu1 %v6244_v55  ;;  %v809_v52 = vadd.f32 %v8167_v53, %v6099_v41  ;;  %v8168_v55 = vld [vmem:[#allocation32_spill] sm:$0xff]  ;;  %v6712_v53 = vld [vmem:[%s8034_s2 + $0x2c] ss:$16 sps:$4 sm:$0xff]  }
 0x9d5   : > { %2209 = vmatprep.subr.bf16.mxu0 %v6250_v56  ;;  %2250 = vmatprep.subr.bf16.mxu1 %v6332_v61  ;;  %v638_v56 = vadd.f32 %v8168_v55, %v6063_v13  ;;  %v6726_v55 = vld [vmem:[%s8034_s2 + $0x28] ss:$16 sps:$4 sm:$0xff]  }
 0x9d8   : > { %2210 = vmatpush1.bf16.msra.mxu0 %v6257_v59  ;;  %2251 = vmatpush1.bf16.msra.mxu1 %v6339_v7  ;;  %v8169_v59 = vld [vmem:[#allocation47_spill] sm:$0xff] }
 0x9d9   : > { %2211 = vmatprep.subr.bf16.mxu0 %v6264_v60  ;;  %2252 = vmatprep.subr.bf16.mxu1 %v6346_v27  ;;  %v811_v60 = vadd.f32 %v8169_v59, %v6103_v23  ;;  %v6739_v59 = vld [vmem:[%s8034_s2 + $0x40] ss:$16 sps:$4 sm:$0xff]  }
 0x9dc   : > { %2212 = vmatpush1.bf16.msra.mxu0 %v6271_v5  ;;  %2253 = vmatpush1.bf16.msra.mxu1 %v6353_v43 }
 0x9dd   : > { %2213 = vmatprep.subr.bf16.mxu0 %v6278_v8  ;;  %2254 = vmatprep.subr.bf16.mxu1 %v6360_v48 }
 0x9e0   : > { %2214 = vmatpush1.bf16.msra.mxu0 %v6285_v11  ;;  %2255 = vmatpush1.bf16.msra.mxu1 %v6367_v34 }
 0x9e1   : > { %2215 = vmatprep.subr.bf16.mxu0 %v6373_v57  ;;  %2256 = vmatprep.subr.bf16.mxu1 %v6379_v12 }
 0x9e4   : > { %2216 = vmatpush1.bf16.msra.mxu0 %v6385_v14  ;;  %2257 = vmatpush1.bf16.msra.mxu1 %v6391_v15 }
 0x9e5   : > { %2217 = vmatprep.subr.bf16.mxu0 %v6397_v16  ;;  %2258 = vmatprep.subr.bf16.mxu1 %v6403_v17 }
 0x9e8   : > { %2218 = vmatpush1.bf16.msra.mxu0 %v6409_v19  ;;  %2259 = vmatpush1.bf16.msra.mxu1 %v6415_v20 }
 0x9e9   : > { %2219 = vmatprep.subr.bf16.mxu0 %v6421_v21  ;;  %2260 = vmatprep.subr.bf16.mxu1 %v6427_v22 }
 0x9ec   : > { %2220 = vmatpush1.bf16.msra.mxu0 %v6433_v25  ;;  %2261 = vmatpush1.bf16.msra.mxu1 %v6439_v26 }
 0x9ed   : > { %2316 = vmatprep.subr.bf16.mxu0 %v6675_v30  ;;  %2357 = vmatprep.subr.bf16.mxu1 %v6305_v9 }
 0xaa2   : > { %v2128_v5 = vpop.f32.mrb[84].mxu0  ;;  %v2169_v8 = vpop.f32.mrb[100].mxu1 }
 0xaa3   : > { %v2176_v11 = vadd.f32 %v2128_v5, %v636_v35  ;;  %v2178_v0 = vadd.f32 %v2169_v8, %v809_v52  ;;  %v2130_v37 = vpop.f32.mrb[85].mxu0  ;;  %v2171_v49 = vpop.f32.mrb[101].mxu1  ;;  %v6706_v35 = vld [vmem:[%s8034_s2 + $0x24] ss:$16 sps:$4 sm:$0xff]   ;;  %v6720_v52 = vld [vmem:[%s8034_s2 + $0x20] ss:$16 sps:$4 sm:$0xff]  }
 0xaa4   : > { %v2177_v51 = vadd.f32 %v2130_v37, %v638_v56  ;;  %v2179_v9 = vadd.f32 %v2171_v49, %v811_v60  ;;  %v2132_v47 = vpop.f32.mrb[86].mxu0  ;;  %v2173_v50 = vpop.f32.mrb[102].mxu1  ;;  %v6732_v56 = vld [vmem:[%s8034_s2 + $0x44] ss:$16 sps:$4 sm:$0xff]  }
 0xaa5   : > { %v4497_v38 = vmul.f32 -1.442695, %v2176_v11  ;;  %v2133_v18 = vpop.f32.mrb[87].mxu0  ;;  %v2174_v2 = vpop.f32.mrb[103].mxu1  ;;  %v6746_v60 = vld [vmem:[%s8034_s2 + $0x64] ss:$16 sps:$4 sm:$0xff]  }
 0xaa6   : > { %v4498_v58 = vmul.f32 -1.442695, %v2177_v51  ;;  %v4499_v44 = vmul.f32 -1.442695, %v2179_v9 }
 0xaa7   : > { %4856 = vpow2.f32 %v4497_v38 }
 0xaa8   : > { %4858 = vpow2.f32 %v4498_v58 }
 0xaa9   : > { %4860 = vpow2.f32 %v4499_v44 }
 0xaaa   : > { %4862 = vtanh.f32 %v2178_v0 }
 0xab1   : > { %v4857_v24 = vpop.eup %4856 }
 0xab2   : > { %v4859_v39 = vpop.eup %4858  ;;  %v2183_v10 = vadd.f32 1.0, %v4857_v24 }
 0xab3   : > { %v2189_v36 = vadd.f32 1.0, %v4859_v39  ;;  %v4861_v45 = vpop.eup %4860 }
 0xab4   : > { %4864 = vrcp.f32 %v2183_v10  ;;  %v4863_v31 = vpop.eup %4862  ;;  %v2196_v28 = vadd.f32 1.0, %v4861_v45 }
 0xab5   : > { %4866 = vrcp.f32 %v2189_v36 }
 0xab6   : > { %4868 = vrcp.f32 %v2196_v28 }
 0xabe   : > { %v4865_v42 = vpop.eup %4864 }
 0xabf   : > { %v4867_v4 = vpop.eup %4866  ;;  %v2200_v54 = vmul.f32 %v4865_v42, %v4863_v31 }
 0xac0   : > { %v2199_v29 = vmul.f32 %v4867_v4, %v6637_v62  ;;  %v4869_v63 = vpop.eup %4868  ;;  %v6700_v62 = vld [vmem:[%s8034_s2 + $0x8] ss:$16 sps:$4 sm:$0xff]  }
 0xac2   : > { %v6688_v33 = vadd.f32 %v2200_v54, %v2199_v29  ;;  %v6814_v29 = vld [vmem:[%s8034_s2 + $0x4c] ss:$16 sps:$4 sm:$0xff]  }
 0xac4   : > { %4870 = vtanh.f32 %v6688_v33 }
 0xace   : > { %v4871_v1 = vpop.eup %4870 }
 0xacf   : > { %v2203_v3 = vmul.f32 %v4871_v1, %v4869_v63  ;;  %v6828_v63 = vld [vmem:[%s8034_s2 + $0x6c] ss:$16 sps:$4 sm:$0xff]   ;;  %v6835_v1 = vld [vmem:[%s8034_s2 + $0x68] ss:$16 sps:$4 sm:$0xff]  }
 0xad1   : > { %v2204_v6 = vpack.c.bf16 %v2203_v3, %v2203_v3  ;;  %v6842_v3 = vld [vmem:[%s8034_s2 + $0x8c] ss:$16 sps:$4 sm:$0xff]  }
 0xad3   : > { %2238 = vmatmul.mubr.bf16.vlgmr.msra.gmra.mrb[88].mxu0 %v2204_v6  ;;  %2279 = vmatmul.mubr.bf16.vlgmr.msra.gmra.mrb[104].mxu1 %v2204_v6  ;;  %v6849_v6 = vld [vmem:[%s8034_s2 + $0x88] ss:$16 sps:$4 sm:$0xff]  }
 0xad4   : > { %2317 = vmatpush1.bf16.msra.mxu0 %v6694_v46  ;;  %2358 = vmatpush1.bf16.msra.mxu1 %v6700_v62 }
 0xad5   : > { %2318 = vmatprep.subr.bf16.mxu0 %v6706_v35  ;;  %2359 = vmatprep.subr.bf16.mxu1 %v6712_v53 }
 0xad6   : > { %2348 = vmatprep.mubr.bf16.mxu0 %v8142_v32  ;;  %2389 = vmatprep.mubr.bf16.mxu1 %v8142_v32 }
 0xad8   : > { %2319 = vmatpush1.bf16.msra.mxu0 %v6720_v52  ;;  %2360 = vmatpush1.bf16.msra.mxu1 %v6726_v55 }
 0xad9   : > { %2320 = vmatprep.subr.bf16.mxu0 %v6732_v56  ;;  %2361 = vmatprep.subr.bf16.mxu1 %v6332_v61  ;;  %v6753_v61 = vld [vmem:[%s8034_s2 + $0x60] ss:$16 sps:$4 sm:$0xff]  }
 0xadc   : > { %2321 = vmatpush1.bf16.msra.mxu0 %v6739_v59  ;;  %2362 = vmatpush1.bf16.msra.mxu1 %v6339_v7  ;;  %v6760_v7 = vld [vmem:[%s8034_s2 + $0x84] ss:$16 sps:$4 sm:$0xff]  }
 0xadd   : > { %2322 = vmatprep.subr.bf16.mxu0 %v6746_v60  ;;  %2363 = vmatprep.subr.bf16.mxu1 %v6346_v27  ;;  %v6767_v27 = vld [vmem:[%s8034_s2 + $0x80] ss:$16 sps:$4 sm:$0xff]  }
 0xae0   : > { %2323 = vmatpush1.bf16.msra.mxu0 %v6753_v61  ;;  %2364 = vmatpush1.bf16.msra.mxu1 %v6353_v43  ;;  %v6787_v43 = vld [vmem:[%s8034_s2 + $0xc] ss:$16 sps:$4 sm:$0xff]  }
 0xae1   : > { %2324 = vmatprep.subr.bf16.mxu0 %v6760_v7  ;;  %2365 = vmatprep.subr.bf16.mxu1 %v6360_v48  ;;  %v8170_v48 = vld [vmem:[#allocation34_spill] sm:$0xff] }
 0xae4   : > { %2325 = vmatpush1.bf16.msra.mxu0 %v6767_v27  ;;  %2366 = vmatpush1.bf16.msra.mxu1 %v6367_v34  ;;  %v642_v34 = vadd.f32 %v8170_v48, %v6061_v40  ;;  %v6855_v48 = vld [vmem:[%s8034_s2 + $0xa4] ss:$16 sps:$4 sm:$0xff]  }
 0xae5   : > { %2326 = vmatprep.subr.bf16.mxu0 %v6373_v57  ;;  %2367 = vmatprep.subr.bf16.mxu1 %v6379_v12  ;;  %v8171_v57 = vld [vmem:[#allocation49_spill] sm:$0xff] }
 0xae6   : > { %v815_v12 = vadd.f32 %v8171_v57, %v6099_v41  ;;  %v6867_v57 = vld [vmem:[%s8034_s2 + $0xa0] ss:$16 sps:$4 sm:$0xff]  }
 0xae8   : > { %2327 = vmatpush1.bf16.msra.mxu0 %v6385_v14  ;;  %2368 = vmatpush1.bf16.msra.mxu1 %v6391_v15  ;;  %v8172_v14 = vld [vmem:[#allocation36_spill] sm:$0xff] }
 0xae9   : > { %2328 = vmatprep.subr.bf16.mxu0 %v6397_v16  ;;  %2369 = vmatprep.subr.bf16.mxu1 %v6403_v17  ;;  %v644_v15 = vadd.f32 %v8172_v14, %v6063_v13  ;;  %v8173_v16 = vld [vmem:[#allocation51_spill] sm:$0xff]  ;;  %v6879_v14 = vld [vmem:[%s8034_s2 + $0xc4] ss:$16 sps:$4 sm:$0xff]  }
 0xaea   : > { %v817_v17 = vadd.f32 %v8173_v16, %v6103_v23  ;;  %v6891_v16 = vld [vmem:[%s8034_s2 + $0xc0] ss:$16 sps:$4 sm:$0xff]  }
 0xaec   : > { %2329 = vmatpush1.bf16.msra.mxu0 %v6409_v19  ;;  %2370 = vmatpush1.bf16.msra.mxu1 %v6415_v20 }
 0xaed   : > { %2330 = vmatprep.subr.bf16.mxu0 %v6421_v21  ;;  %2371 = vmatprep.subr.bf16.mxu1 %v6427_v22 }
 0xaf0   : > { %2331 = vmatpush1.bf16.msra.mxu0 %v6433_v25  ;;  %2372 = vmatpush1.bf16.msra.mxu1 %v6439_v26 }
 0xaf1   : > { %2427 = vmatprep.subr.bf16.mxu0 %v6675_v30  ;;  %2468 = vmatprep.subr.bf16.mxu1 %v6787_v43 }
 0xba6   : > { %v2239_v19 = vpop.f32.mrb[88].mxu0  ;;  %v2280_v20 = vpop.f32.mrb[104].mxu1 }
 0xba7   : > { %v2287_v21 = vadd.f32 %v2239_v19, %v642_v34  ;;  %v2289_v22 = vadd.f32 %v2280_v20, %v815_v12  ;;  %v2241_v25 = vpop.f32.mrb[89].mxu0  ;;  %v2282_v26 = vpop.f32.mrb[105].mxu1  ;;  %v6861_v34 = vld [vmem:[%s8034_s2 + $0xac] ss:$16 sps:$4 sm:$0xff]   ;;  %v6873_v12 = vld [vmem:[%s8034_s2 + $0xa8] ss:$16 sps:$4 sm:$0xff]  }
 0xba8   : > { %v2288_v5 = vadd.f32 %v2241_v25, %v644_v15  ;;  %v2290_v8 = vadd.f32 %v2282_v26, %v817_v17  ;;  %v2243_v11 = vpop.f32.mrb[90].mxu0  ;;  %v2284_v0 = vpop.f32.mrb[106].mxu1  ;;  %v6885_v15 = vld [vmem:[%s8034_s2 + $0xcc] ss:$16 sps:$4 sm:$0xff]   ;;  %v6897_v17 = vld [vmem:[%s8034_s2 + $0xc8] ss:$16 sps:$4 sm:$0xff]  }
 0xba9   : > { %v4500_v37 = vmul.f32 -1.442695, %v2287_v21  ;;  %v2244_v49 = vpop.f32.mrb[91].mxu0  ;;  %v2285_v51 = vpop.f32.mrb[107].mxu1  ;;  %v6903_v19 = vld [vmem:[%s8034_s2 + $0xe4] ss:$16 sps:$4 sm:$0xff]  }
 0xbaa   : > { %v4501_v9 = vmul.f32 -1.442695, %v2288_v5  ;;  %v4502_v47 = vmul.f32 -1.442695, %v2290_v8  ;;  %v6909_v20 = vld [vmem:[%s8034_s2 + $0xec] ss:$16 sps:$4 sm:$0xff]  }
 0xbab   : > { %4872 = vpow2.f32 %v4500_v37  ;;  %v6915_v21 = vld [vmem:[%s8034_s2 + $0xe0] ss:$16 sps:$4 sm:$0xff]   ;;  %v8175_v5 = vld [vmem:[#allocation53_spill] sm:$0xff]  ;;  %v8177_v37 = vld [vmem:[#allocation55_spill] sm:$0xff] }
 0xbac   : > { %4874 = vpow2.f32 %v4501_v9  ;;  %v8174_v25 = vld [vmem:[#allocation38_spill] sm:$0xff]  ;;  %v819_v8 = vadd.f32 %v8175_v5, %v6099_v41  ;;  %v8176_v11 = vld [vmem:[#allocation40_spill] sm:$0xff]  ;;  %v821_v49 = vadd.f32 %v8177_v37, %v6103_v23 }
 0xbad   : > { %4876 = vpow2.f32 %v4502_v47  ;;  %v646_v26 = vadd.f32 %v8174_v25, %v6061_v40  ;;  %v648_v0 = vadd.f32 %v8176_v11, %v6063_v13 }
 0xbae   : > { %4878 = vtanh.f32 %v2289_v22  ;;  %v6921_v22 = vld [vmem:[%s8034_s2 + $0xe8] ss:$16 sps:$4 sm:$0xff]  }
 0xbb5   : > { %v4873_v50 = vpop.eup %4872 }
 0xbb6   : > { %v4875_v38 = vpop.eup %4874  ;;  %v2294_v18 = vadd.f32 1.0, %v4873_v50 }
 0xbb7   : > { %v2300_v2 = vadd.f32 1.0, %v4875_v38  ;;  %v4877_v58 = vpop.eup %4876 }
 0xbb8   : > { %4880 = vrcp.f32 %v2294_v18  ;;  %v4879_v44 = vpop.eup %4878  ;;  %v2307_v36 = vadd.f32 1.0, %v4877_v58 }
 0xbb9   : > { %4882 = vrcp.f32 %v2300_v2 }
 0xbba   : > { %4884 = vrcp.f32 %v2307_v36 }
 0xbc2   : > { %v4881_v24 = vpop.eup %4880 }
 0xbc3   : > { %v4883_v39 = vpop.eup %4882  ;;  %v2311_v10 = vmul.f32 %v4881_v24, %v4879_v44 }
 0xbc4   : > { %v2310_v45 = vmul.f32 %v4883_v39, %v6688_v33  ;;  %v4885_v42 = vpop.eup %4884  ;;  %v6821_v33 = vld [vmem:[%s8034_s2 + $0x48] ss:$16 sps:$4 sm:$0xff]  }
 0xbc6   : > { %v6799_v31 = vadd.f32 %v2311_v10, %v2310_v45 }
 0xbc8   : > { %4886 = vtanh.f32 %v6799_v31 }
 0xbd2   : > { %v4887_v4 = vpop.eup %4886 }
 0xbd3   : > { %v2314_v54 = vmul.f32 %v4887_v4, %v4885_v42 }
 0xbd5   : > { %v2315_v28 = vpack.c.bf16 %v2314_v54, %v2314_v54 }
 0xbd7   : > { %2349 = vmatmul.mubr.bf16.vlgmr.msra.gmra.mrb[92].mxu0 %v2315_v28  ;;  %2390 = vmatmul.mubr.bf16.vlgmr.msra.gmra.mrb[108].mxu1 %v2315_v28 }
 0xbd8   : > { %2428 = vmatpush1.bf16.msra.mxu0 %v6694_v46  ;;  %2469 = vmatpush1.bf16.msra.mxu1 %v6700_v62 }
 0xbd9   : > { %2429 = vmatprep.subr.bf16.mxu0 %v6706_v35  ;;  %2470 = vmatprep.subr.bf16.mxu1 %v6712_v53 }
 0xbda   : > { %2459 = vmatprep.mubr.bf16.mxu0 %v8142_v32  ;;  %2500 = vmatprep.mubr.bf16.mxu1 %v8142_v32 }
 0xbdc   : > { %2430 = vmatpush1.bf16.msra.mxu0 %v6720_v52  ;;  %2471 = vmatpush1.bf16.msra.mxu1 %v6726_v55 }
 0xbdd   : > { %2431 = vmatprep.subr.bf16.mxu0 %v6732_v56  ;;  %2472 = vmatprep.subr.bf16.mxu1 %v6814_v29 }
 0xbe0   : > { %2432 = vmatpush1.bf16.msra.mxu0 %v6739_v59  ;;  %2473 = vmatpush1.bf16.msra.mxu1 %v6821_v33 }
 0xbe1   : > { %2433 = vmatprep.subr.bf16.mxu0 %v6746_v60  ;;  %2474 = vmatprep.subr.bf16.mxu1 %v6828_v63 }
 0xbe4   : > { %2434 = vmatpush1.bf16.msra.mxu0 %v6753_v61  ;;  %2475 = vmatpush1.bf16.msra.mxu1 %v6835_v1 }
 0xbe5   : > { %2435 = vmatprep.subr.bf16.mxu0 %v6760_v7  ;;  %2476 = vmatprep.subr.bf16.mxu1 %v6842_v3 }
 0xbe8   : > { %2436 = vmatpush1.bf16.msra.mxu0 %v6767_v27  ;;  %2477 = vmatpush1.bf16.msra.mxu1 %v6849_v6 }
 0xbe9   : > { %2437 = vmatprep.subr.bf16.mxu0 %v6855_v48  ;;  %2478 = vmatprep.subr.bf16.mxu1 %v6861_v34 }
 0xbec   : > { %2438 = vmatpush1.bf16.msra.mxu0 %v6867_v57  ;;  %2479 = vmatpush1.bf16.msra.mxu1 %v6873_v12 }
 0xbed   : > { %2439 = vmatprep.subr.bf16.mxu0 %v6879_v14  ;;  %2480 = vmatprep.subr.bf16.mxu1 %v6885_v15 }
 0xbf0   : > { %2440 = vmatpush1.bf16.msra.mxu0 %v6891_v16  ;;  %2481 = vmatpush1.bf16.msra.mxu1 %v6897_v17 }
 0xbf1   : > { %2441 = vmatprep.subr.bf16.mxu0 %v6903_v19  ;;  %2482 = vmatprep.subr.bf16.mxu1 %v6909_v20 }
 0xbf4   : > { %2442 = vmatpush1.bf16.msra.mxu0 %v6915_v21  ;;  %2483 = vmatpush1.bf16.msra.mxu1 %v6921_v22 }
 0xbf5   : > { %2538 = vmatprep.subr.bf16.mxu0 %v6675_v30  ;;  %2579 = vmatprep.subr.bf16.mxu1 %v6787_v43 }
 0xcaa   : > { %v2350_v51 = vpop.f32.mrb[92].mxu0  ;;  %v2391_v9 = vpop.f32.mrb[108].mxu1 }
 0xcab   : > { %v2398_v47 = vadd.f32 %v2350_v51, %v646_v26  ;;  %v2400_v50 = vadd.f32 %v2391_v9, %v819_v8  ;;  %v2352_v38 = vpop.f32.mrb[93].mxu0  ;;  %v2393_v18 = vpop.f32.mrb[109].mxu1 }
 0xcac   : > { %v2399_v2 = vadd.f32 %v2352_v38, %v648_v0  ;;  %v2401_v58 = vadd.f32 %v2393_v18, %v821_v49  ;;  %v2354_v44 = vpop.f32.mrb[94].mxu0  ;;  %v2395_v24 = vpop.f32.mrb[110].mxu1 }
 0xcad   : > { %v4503_v39 = vmul.f32 -1.442695, %v2398_v47  ;;  %v2355_v10 = vpop.f32.mrb[95].mxu0  ;;  %v2396_v36 = vpop.f32.mrb[111].mxu1  ;;  %v8180_v44 = vld [vmem:[#allocation44_spill] sm:$0xff] }
 0xcae   : > { %v4504_v45 = vmul.f32 -1.442695, %v2399_v2  ;;  %v4505_v42 = vmul.f32 -1.442695, %v2401_v58  ;;  %v8179_v2 = vld [vmem:[#allocation57_spill] sm:$0xff]  ;;  %v654_v24 = vadd.f32 %v8180_v44, %v6063_v13 }
 0xcaf   : > { %4888 = vpow2.f32 %v4503_v39  ;;  %v825_v58 = vadd.f32 %v8179_v2, %v6099_v41  ;;  %v8181_v39 = vld [vmem:[#allocation59_spill] sm:$0xff] }
 0xcb0   : > { %4890 = vpow2.f32 %v4504_v45  ;;  %v827_v10 = vadd.f32 %v8181_v39, %v6103_v23 }
 0xcb1   : > { %4892 = vpow2.f32 %v4505_v42 }
 0xcb2   : > { %4894 = vtanh.f32 %v2400_v50 }
 0xcb9   : > { %v4889_v4 = vpop.eup %4888 }
 0xcba   : > { %v4891_v54 = vpop.eup %4890  ;;  %v2405_v28 = vadd.f32 1.0, %v4889_v4 }
 0xcbb   : > { %v2411_v25 = vadd.f32 1.0, %v4891_v54  ;;  %v4893_v26 = vpop.eup %4892 }
 0xcbc   : > { %4896 = vrcp.f32 %v2405_v28  ;;  %v4895_v5 = vpop.eup %4894  ;;  %v2418_v37 = vadd.f32 1.0, %v4893_v26 }
 0xcbd   : > { %4898 = vrcp.f32 %v2411_v25 }
 0xcbe   : > { %4900 = vrcp.f32 %v2418_v37 }
 0xcc6   : > { %v4897_v8 = vpop.eup %4896 }
 0xcc7   : > { %v4899_v11 = vpop.eup %4898  ;;  %v2422_v0 = vmul.f32 %v4897_v8, %v4895_v5 }
 0xcc8   : > { %v2421_v49 = vmul.f32 %v4899_v11, %v6799_v31  ;;  %v4901_v9 = vpop.eup %4900  ;;  %v8178_v31 = vld [vmem:[#allocation42_spill] sm:$0xff] }
 0xcc9   : > { %v652_v18 = vadd.f32 %v8178_v31, %v6061_v40 }
 0xcca   : > { %v6935_v51 = vadd.f32 %v2422_v0, %v2421_v49 }
 0xccc   : > { %4902 = vtanh.f32 %v6935_v51 }
 0xcd6   : > { %v4903_v47 = vpop.eup %4902 }
 0xcd7   : > { %v2425_v38 = vmul.f32 %v4903_v47, %v4901_v9 }
 0xcd9   : > { %v2426_v50 = vpack.c.bf16 %v2425_v38, %v2425_v38 }
 0xcdb   : > { %2460 = vmatmul.mubr.bf16.vlgmr.msra.gmra.mrb[96].mxu0 %v2426_v50  ;;  %2501 = vmatmul.mubr.bf16.vlgmr.msra.gmra.mrb[112].mxu1 %v2426_v50 }
 0xcdc   : > { %2539 = vmatpush1.bf16.msra.mxu0 %v6694_v46  ;;  %2580 = vmatpush1.bf16.msra.mxu1 %v6700_v62 }
 0xcdd   : > { %2540 = vmatprep.subr.bf16.mxu0 %v6706_v35  ;;  %2581 = vmatprep.subr.bf16.mxu1 %v6712_v53 }
 0xcde   : > { %2570 = vmatprep.mubr.bf16.mxu0 %v8142_v32  ;;  %2611 = vmatprep.mubr.bf16.mxu1 %v8142_v32 }
 0xce0   : > { %2541 = vmatpush1.bf16.msra.mxu0 %v6720_v52  ;;  %2582 = vmatpush1.bf16.msra.mxu1 %v6726_v55 }
 0xce1   : > { %2542 = vmatprep.subr.bf16.mxu0 %v6732_v56  ;;  %2583 = vmatprep.subr.bf16.mxu1 %v6814_v29 }
 0xce4   : > { %2543 = vmatpush1.bf16.msra.mxu0 %v6739_v59  ;;  %2584 = vmatpush1.bf16.msra.mxu1 %v6821_v33 }
 0xce5   : > { %2544 = vmatprep.subr.bf16.mxu0 %v6746_v60  ;;  %2585 = vmatprep.subr.bf16.mxu1 %v6828_v63 }
 0xce8   : > { %2545 = vmatpush1.bf16.msra.mxu0 %v6753_v61  ;;  %2586 = vmatpush1.bf16.msra.mxu1 %v6835_v1 }
 0xce9   : > { %2546 = vmatprep.subr.bf16.mxu0 %v6760_v7  ;;  %2587 = vmatprep.subr.bf16.mxu1 %v6842_v3 }
 0xcec   : > { %2547 = vmatpush1.bf16.msra.mxu0 %v6767_v27  ;;  %2588 = vmatpush1.bf16.msra.mxu1 %v6849_v6 }
 0xced   : > { %2548 = vmatprep.subr.bf16.mxu0 %v6855_v48  ;;  %2589 = vmatprep.subr.bf16.mxu1 %v6861_v34 }
 0xcf0   : > { %2549 = vmatpush1.bf16.msra.mxu0 %v6867_v57  ;;  %2590 = vmatpush1.bf16.msra.mxu1 %v6873_v12 }
 0xcf1   : > { %2550 = vmatprep.subr.bf16.mxu0 %v6879_v14  ;;  %2591 = vmatprep.subr.bf16.mxu1 %v6885_v15 }
 0xcf4   : > { %2551 = vmatpush1.bf16.msra.mxu0 %v6891_v16  ;;  %2592 = vmatpush1.bf16.msra.mxu1 %v6897_v17 }
 0xcf5   : > { %2552 = vmatprep.subr.bf16.mxu0 %v6903_v19  ;;  %2593 = vmatprep.subr.bf16.mxu1 %v6909_v20 }
 0xcf8   : > { %2553 = vmatpush1.bf16.msra.mxu0 %v6915_v21  ;;  %2594 = vmatpush1.bf16.msra.mxu1 %v6921_v22 }
 0xcf9   : > { %2649 = vmatprep.subr.bf16.mxu0 %v6675_v30  ;;  %2690 = vmatprep.subr.bf16.mxu1 %v6787_v43 }
 0xdae   : > { %v2461_v36 = vpop.f32.mrb[96].mxu0  ;;  %v2502_v45 = vpop.f32.mrb[112].mxu1 }
 0xdaf   : > { %v2509_v42 = vadd.f32 %v2461_v36, %v652_v18  ;;  %v2511_v4 = vadd.f32 %v2502_v45, %v825_v58  ;;  %v2463_v54 = vpop.f32.mrb[97].mxu0  ;;  %v2504_v28 = vpop.f32.mrb[113].mxu1 }
 0xdb0   : > { %v2510_v25 = vadd.f32 %v2463_v54, %v654_v24  ;;  %v2512_v26 = vadd.f32 %v2504_v28, %v827_v10  ;;  %v2465_v5 = vpop.f32.mrb[98].mxu0  ;;  %v2506_v8 = vpop.f32.mrb[114].mxu1 }
 0xdb1   : > { %v4506_v11 = vmul.f32 -1.442695, %v2509_v42  ;;  %v2466_v0 = vpop.f32.mrb[99].mxu0  ;;  %v2507_v37 = vpop.f32.mrb[115].mxu1  ;;  %v8184_v5 = vld [vmem:[#allocation48_spill] sm:$0xff] }
 0xdb2   : > { %v4507_v49 = vmul.f32 -1.442695, %v2510_v25  ;;  %v4508_v9 = vmul.f32 -1.442695, %v2512_v26  ;;  %v8183_v25 = vld [vmem:[#allocation61_spill] sm:$0xff]  ;;  %v658_v8 = vadd.f32 %v8184_v5, %v6063_v13 }
 0xdb3   : > { %4904 = vpow2.f32 %v4506_v11  ;;  %v829_v26 = vadd.f32 %v8183_v25, %v6099_v41  ;;  %v8185_v11 = vld [vmem:[#allocation63_spill] sm:$0xff] }
 0xdb4   : > { %4906 = vpow2.f32 %v4507_v49  ;;  %v831_v0 = vadd.f32 %v8185_v11, %v6103_v23 }
 0xdb5   : > { %4908 = vpow2.f32 %v4508_v9 }
 0xdb6   : > { %4910 = vtanh.f32 %v2511_v4 }
 0xdbd   : > { %v4905_v47 = vpop.eup %4904 }
 0xdbe   : > { %v4907_v38 = vpop.eup %4906  ;;  %v2516_v50 = vadd.f32 1.0, %v4905_v47 }
 0xdbf   : > { %v2522_v31 = vadd.f32 1.0, %v4907_v38  ;;  %v4909_v18 = vpop.eup %4908 }
 0xdc0   : > { %4912 = vrcp.f32 %v2516_v50  ;;  %v4911_v2 = vpop.eup %4910  ;;  %v2529_v39 = vadd.f32 1.0, %v4909_v18 }
 0xdc1   : > { %4914 = vrcp.f32 %v2522_v31 }
 0xdc2   : > { %4916 = vrcp.f32 %v2529_v39 }
 0xdca   : > { %v4913_v58 = vpop.eup %4912 }
 0xdcb   : > { %v4915_v44 = vpop.eup %4914  ;;  %v2533_v24 = vmul.f32 %v4913_v58, %v4911_v2 }
 0xdcc   : > { %v2532_v10 = vmul.f32 %v4915_v44, %v6935_v51  ;;  %v4917_v45 = vpop.eup %4916  ;;  %v8182_v51 = vld [vmem:[#allocation46_spill] sm:$0xff] }
 0xdcd   : > { %v656_v28 = vadd.f32 %v8182_v51, %v6061_v40 }
 0xdce   : > { %v6981_v36 = vadd.f32 %v2533_v24, %v2532_v10 }
 0xdd0   : > { %4918 = vtanh.f32 %v6981_v36 }
 0xdda   : > { %v4919_v42 = vpop.eup %4918 }
 0xddb   : > { %v2536_v54 = vmul.f32 %v4919_v42, %v4917_v45 }
 0xddd   : > { %v2537_v4 = vpack.c.bf16 %v2536_v54, %v2536_v54 }
 0xddf   : > { %2571 = vmatmul.mubr.bf16.vlgmr.msra.gmra.mrb[100].mxu0 %v2537_v4  ;;  %2612 = vmatmul.mubr.bf16.vlgmr.msra.gmra.mrb[116].mxu1 %v2537_v4 }
 0xde0   : > { %2650 = vmatpush1.bf16.msra.mxu0 %v6694_v46  ;;  %2691 = vmatpush1.bf16.msra.mxu1 %v6700_v62 }
 0xde1   : > { %2651 = vmatprep.subr.bf16.mxu0 %v6706_v35  ;;  %2692 = vmatprep.subr.bf16.mxu1 %v6712_v53 }
 0xde2   : > { %2681 = vmatprep.mubr.bf16.mxu0 %v8142_v32  ;;  %2722 = vmatprep.mubr.bf16.mxu1 %v8142_v32 }
 0xde4   : > { %2652 = vmatpush1.bf16.msra.mxu0 %v6720_v52  ;;  %2693 = vmatpush1.bf16.msra.mxu1 %v6726_v55 }
 0xde5   : > { %2653 = vmatprep.subr.bf16.mxu0 %v6732_v56  ;;  %2694 = vmatprep.subr.bf16.mxu1 %v6814_v29 }
 0xde8   : > { %2654 = vmatpush1.bf16.msra.mxu0 %v6739_v59  ;;  %2695 = vmatpush1.bf16.msra.mxu1 %v6821_v33 }
 0xde9   : > { %2655 = vmatprep.subr.bf16.mxu0 %v6746_v60  ;;  %2696 = vmatprep.subr.bf16.mxu1 %v6828_v63 }
 0xdec   : > { %2656 = vmatpush1.bf16.msra.mxu0 %v6753_v61  ;;  %2697 = vmatpush1.bf16.msra.mxu1 %v6835_v1 }
 0xded   : > { %2657 = vmatprep.subr.bf16.mxu0 %v6760_v7  ;;  %2698 = vmatprep.subr.bf16.mxu1 %v6842_v3 }
 0xdf0   : > { %2658 = vmatpush1.bf16.msra.mxu0 %v6767_v27  ;;  %2699 = vmatpush1.bf16.msra.mxu1 %v6849_v6 }
 0xdf1   : > { %2659 = vmatprep.subr.bf16.mxu0 %v6855_v48  ;;  %2700 = vmatprep.subr.bf16.mxu1 %v6861_v34 }
 0xdf4   : > { %2660 = vmatpush1.bf16.msra.mxu0 %v6867_v57  ;;  %2701 = vmatpush1.bf16.msra.mxu1 %v6873_v12 }
 0xdf5   : > { %2661 = vmatprep.subr.bf16.mxu0 %v6879_v14  ;;  %2702 = vmatprep.subr.bf16.mxu1 %v6885_v15 }
 0xdf8   : > { %2662 = vmatpush1.bf16.msra.mxu0 %v6891_v16  ;;  %2703 = vmatpush1.bf16.msra.mxu1 %v6897_v17 }
 0xdf9   : > { %2663 = vmatprep.subr.bf16.mxu0 %v6903_v19  ;;  %2704 = vmatprep.subr.bf16.mxu1 %v6909_v20 }
 0xdfc   : > { %2664 = vmatpush1.bf16.msra.mxu0 %v6915_v21  ;;  %2705 = vmatpush1.bf16.msra.mxu1 %v6921_v22 }
 0xdfd   : > { %2760 = vmatprep.subr.bf16.mxu0 %v6675_v30  ;;  %2801 = vmatprep.subr.bf16.mxu1 %v6787_v43 }
 0xeb2   : > { %v2572_v37 = vpop.f32.mrb[100].mxu0  ;;  %v2613_v49 = vpop.f32.mrb[116].mxu1 }
 0xeb3   : > { %v2620_v9 = vadd.f32 %v2572_v37, %v656_v28  ;;  %v2622_v47 = vadd.f32 %v2613_v49, %v829_v26  ;;  %v2574_v38 = vpop.f32.mrb[101].mxu0  ;;  %v2615_v50 = vpop.f32.mrb[117].mxu1 }
 0xeb4   : > { %v2621_v31 = vadd.f32 %v2574_v38, %v658_v8  ;;  %v2623_v18 = vadd.f32 %v2615_v50, %v831_v0  ;;  %v2576_v2 = vpop.f32.mrb[102].mxu0  ;;  %v2617_v58 = vpop.f32.mrb[118].mxu1 }
 0xeb5   : > { %v4509_v44 = vmul.f32 -1.442695, %v2620_v9  ;;  %v2577_v24 = vpop.f32.mrb[103].mxu0  ;;  %v2618_v39 = vpop.f32.mrb[119].mxu1  ;;  %v8188_v2 = vld [vmem:[#allocation52_spill] sm:$0xff] }
 0xeb6   : > { %v4510_v10 = vmul.f32 -1.442695, %v2621_v31  ;;  %v4511_v45 = vmul.f32 -1.442695, %v2623_v18  ;;  %v8187_v31 = vld [vmem:[#allocation65_spill] sm:$0xff]  ;;  %v664_v58 = vadd.f32 %v8188_v2, %v6063_v13 }
 0xeb7   : > { %4920 = vpow2.f32 %v4509_v44  ;;  %v835_v18 = vadd.f32 %v8187_v31, %v6099_v41  ;;  %v8189_v44 = vld [vmem:[#allocation67_spill] sm:$0xff] }
 0xeb8   : > { %4922 = vpow2.f32 %v4510_v10  ;;  %v837_v24 = vadd.f32 %v8189_v44, %v6103_v23 }
 0xeb9   : > { %4924 = vpow2.f32 %v4511_v45 }
 0xeba   : > { %4926 = vtanh.f32 %v2622_v47 }
 0xec1   : > { %v4921_v42 = vpop.eup %4920 }
 0xec2   : > { %v4923_v54 = vpop.eup %4922  ;;  %v2627_v4 = vadd.f32 1.0, %v4921_v42 }
 0xec3   : > { %v2633_v51 = vadd.f32 1.0, %v4923_v54  ;;  %v4925_v28 = vpop.eup %4924 }
 0xec4   : > { %4928 = vrcp.f32 %v2627_v4  ;;  %v4927_v25 = vpop.eup %4926  ;;  %v2640_v11 = vadd.f32 1.0, %v4925_v28 }
 0xec5   : > { %4930 = vrcp.f32 %v2633_v51 }
 0xec6   : > { %4932 = vrcp.f32 %v2640_v11 }
 0xece   : > { %v4929_v26 = vpop.eup %4928 }
 0xecf   : > { %v4931_v5 = vpop.eup %4930  ;;  %v2644_v8 = vmul.f32 %v4929_v26, %v4927_v25 }
 0xed0   : > { %v2643_v0 = vmul.f32 %v4931_v5, %v6981_v36  ;;  %v4933_v49 = vpop.eup %4932  ;;  %v8186_v36 = vld [vmem:[#allocation50_spill] sm:$0xff] }
 0xed1   : > { %v662_v50 = vadd.f32 %v8186_v36, %v6061_v40 }
 0xed2   : > { %v7027_v37 = vadd.f32 %v2644_v8, %v2643_v0 }
 0xed4   : > { %4934 = vtanh.f32 %v7027_v37 }
 0xede   : > { %v4935_v9 = vpop.eup %4934 }
 0xedf   : > { %v2647_v38 = vmul.f32 %v4935_v9, %v4933_v49 }
 0xee1   : > { %v2648_v47 = vpack.c.bf16 %v2647_v38, %v2647_v38 }
 0xee3   : > { %2682 = vmatmul.mubr.bf16.vlgmr.msra.gmra.mrb[104].mxu0 %v2648_v47  ;;  %2723 = vmatmul.mubr.bf16.vlgmr.msra.gmra.mrb[120].mxu1 %v2648_v47 }
 0xee4   : > { %2761 = vmatpush1.bf16.msra.mxu0 %v6694_v46  ;;  %2802 = vmatpush1.bf16.msra.mxu1 %v6700_v62 }
 0xee5   : > { %2762 = vmatprep.subr.bf16.mxu0 %v6706_v35  ;;  %2803 = vmatprep.subr.bf16.mxu1 %v6712_v53 }
 0xee6   : > { %2792 = vmatprep.mubr.bf16.mxu0 %v8142_v32  ;;  %2833 = vmatprep.mubr.bf16.mxu1 %v8142_v32 }
 0xee8   : > { %2763 = vmatpush1.bf16.msra.mxu0 %v6720_v52  ;;  %2804 = vmatpush1.bf16.msra.mxu1 %v6726_v55 }
 0xee9   : > { %2764 = vmatprep.subr.bf16.mxu0 %v6732_v56  ;;  %2805 = vmatprep.subr.bf16.mxu1 %v6814_v29 }
 0xeec   : > { %2765 = vmatpush1.bf16.msra.mxu0 %v6739_v59  ;;  %2806 = vmatpush1.bf16.msra.mxu1 %v6821_v33 }
 0xeed   : > { %2766 = vmatprep.subr.bf16.mxu0 %v6746_v60  ;;  %2807 = vmatprep.subr.bf16.mxu1 %v6828_v63 }
 0xef0   : > { %2767 = vmatpush1.bf16.msra.mxu0 %v6753_v61  ;;  %2808 = vmatpush1.bf16.msra.mxu1 %v6835_v1 }
 0xef1   : > { %2768 = vmatprep.subr.bf16.mxu0 %v6760_v7  ;;  %2809 = vmatprep.subr.bf16.mxu1 %v6842_v3 }
 0xef4   : > { %2769 = vmatpush1.bf16.msra.mxu0 %v6767_v27  ;;  %2810 = vmatpush1.bf16.msra.mxu1 %v6849_v6 }
 0xef5   : > { %2770 = vmatprep.subr.bf16.mxu0 %v6855_v48  ;;  %2811 = vmatprep.subr.bf16.mxu1 %v6861_v34 }
 0xef8   : > { %2771 = vmatpush1.bf16.msra.mxu0 %v6867_v57  ;;  %2812 = vmatpush1.bf16.msra.mxu1 %v6873_v12 }
 0xef9   : > { %2772 = vmatprep.subr.bf16.mxu0 %v6879_v14  ;;  %2813 = vmatprep.subr.bf16.mxu1 %v6885_v15 }
 0xefc   : > { %2773 = vmatpush1.bf16.msra.mxu0 %v6891_v16  ;;  %2814 = vmatpush1.bf16.msra.mxu1 %v6897_v17 }
 0xefd   : > { %2774 = vmatprep.subr.bf16.mxu0 %v6903_v19  ;;  %2815 = vmatprep.subr.bf16.mxu1 %v6909_v20 }
 0xf00   : > { %2775 = vmatpush1.bf16.msra.mxu0 %v6915_v21  ;;  %2816 = vmatpush1.bf16.msra.mxu1 %v6921_v22 }
 0xf01   : > { %2871 = vmatprep.subr.bf16.mxu0 %v6675_v30  ;;  %2912 = vmatprep.subr.bf16.mxu1 %v6787_v43 }
 0xfb6   : > { %v2683_v39 = vpop.f32.mrb[104].mxu0  ;;  %v2724_v10 = vpop.f32.mrb[120].mxu1 }
 0xfb7   : > { %v2731_v45 = vadd.f32 %v2683_v39, %v662_v50  ;;  %v2733_v42 = vadd.f32 %v2724_v10, %v835_v18  ;;  %v2685_v54 = vpop.f32.mrb[105].mxu0  ;;  %v2726_v4 = vpop.f32.mrb[121].mxu1 }
 0xfb8   : > { %v2732_v51 = vadd.f32 %v2685_v54, %v664_v58  ;;  %v2734_v28 = vadd.f32 %v2726_v4, %v837_v24  ;;  %v2687_v25 = vpop.f32.mrb[106].mxu0  ;;  %v2728_v26 = vpop.f32.mrb[122].mxu1 }
 0xfb9   : > { %v4512_v5 = vmul.f32 -1.442695, %v2731_v45  ;;  %v2688_v8 = vpop.f32.mrb[107].mxu0  ;;  %v2729_v11 = vpop.f32.mrb[123].mxu1  ;;  %v8192_v25 = vld [vmem:[#allocation56_spill] sm:$0xff] }
 0xfba   : > { %v4513_v0 = vmul.f32 -1.442695, %v2732_v51  ;;  %v4514_v49 = vmul.f32 -1.442695, %v2734_v28  ;;  %v8191_v51 = vld [vmem:[#allocation69_spill] sm:$0xff]  ;;  %v668_v26 = vadd.f32 %v8192_v25, %v6063_v13 }
 0xfbb   : > { %4936 = vpow2.f32 %v4512_v5  ;;  %v839_v28 = vadd.f32 %v8191_v51, %v6099_v41  ;;  %v8193_v5 = vld [vmem:[#allocation71_spill] sm:$0xff] }
 0xfbc   : > { %4938 = vpow2.f32 %v4513_v0  ;;  %v841_v8 = vadd.f32 %v8193_v5, %v6103_v23 }
 0xfbd   : > { %4940 = vpow2.f32 %v4514_v49 }
 0xfbe   : > { %4942 = vtanh.f32 %v2733_v42 }
 0xfc5   : > { %v4937_v9 = vpop.eup %4936 }
 0xfc6   : > { %v4939_v38 = vpop.eup %4938  ;;  %v2738_v47 = vadd.f32 1.0, %v4937_v9 }
 0xfc7   : > { %v2744_v36 = vadd.f32 1.0, %v4939_v38  ;;  %v4941_v50 = vpop.eup %4940 }
 0xfc8   : > { %4944 = vrcp.f32 %v2738_v47  ;;  %v4943_v31 = vpop.eup %4942  ;;  %v2751_v44 = vadd.f32 1.0, %v4941_v50 }
 0xfc9   : > { %4946 = vrcp.f32 %v2744_v36 }
 0xfca   : > { %4948 = vrcp.f32 %v2751_v44 }
 0xfd2   : > { %v4945_v18 = vpop.eup %4944 }
 0xfd3   : > { %v4947_v2 = vpop.eup %4946  ;;  %v2755_v58 = vmul.f32 %v4945_v18, %v4943_v31 }
 0xfd4   : > { %v2754_v24 = vmul.f32 %v4947_v2, %v7027_v37  ;;  %v4949_v10 = vpop.eup %4948  ;;  %v8190_v37 = vld [vmem:[#allocation54_spill] sm:$0xff] }
 0xfd5   : > { %v666_v4 = vadd.f32 %v8190_v37, %v6061_v40 }
 0xfd6   : > { %v7073_v39 = vadd.f32 %v2755_v58, %v2754_v24 }
 0xfd8   : > { %4950 = vtanh.f32 %v7073_v39 }
 0xfe2   : > { %v4951_v45 = vpop.eup %4950 }
 0xfe3   : > { %v2758_v54 = vmul.f32 %v4951_v45, %v4949_v10 }
 0xfe5   : > { %v2759_v42 = vpack.c.bf16 %v2758_v54, %v2758_v54 }
 0xfe7   : > { %2793 = vmatmul.mubr.bf16.vlgmr.msra.gmra.mrb[108].mxu0 %v2759_v42  ;;  %2834 = vmatmul.mubr.bf16.vlgmr.msra.gmra.mrb[124].mxu1 %v2759_v42 }
 0xfe8   : > { %2872 = vmatpush1.bf16.msra.mxu0 %v6694_v46  ;;  %2913 = vmatpush1.bf16.msra.mxu1 %v6700_v62 }
 0xfe9   : > { %2873 = vmatprep.subr.bf16.mxu0 %v6706_v35  ;;  %2914 = vmatprep.subr.bf16.mxu1 %v6712_v53 }
 0xfea   : > { %2903 = vmatprep.mubr.bf16.mxu0 %v8142_v32  ;;  %2944 = vmatprep.mubr.bf16.mxu1 %v8142_v32 }
 0xfec   : > { %2874 = vmatpush1.bf16.msra.mxu0 %v6720_v52  ;;  %2915 = vmatpush1.bf16.msra.mxu1 %v6726_v55 }
 0xfed   : > { %2875 = vmatprep.subr.bf16.mxu0 %v6732_v56  ;;  %2916 = vmatprep.subr.bf16.mxu1 %v6814_v29 }
 0xff0   : > { %2876 = vmatpush1.bf16.msra.mxu0 %v6739_v59  ;;  %2917 = vmatpush1.bf16.msra.mxu1 %v6821_v33 }
 0xff1   : > { %2877 = vmatprep.subr.bf16.mxu0 %v6746_v60  ;;  %2918 = vmatprep.subr.bf16.mxu1 %v6828_v63 }
 0xff4   : > { %2878 = vmatpush1.bf16.msra.mxu0 %v6753_v61  ;;  %2919 = vmatpush1.bf16.msra.mxu1 %v6835_v1 }
 0xff5   : > { %2879 = vmatprep.subr.bf16.mxu0 %v6760_v7  ;;  %2920 = vmatprep.subr.bf16.mxu1 %v6842_v3 }
 0xff8   : > { %2880 = vmatpush1.bf16.msra.mxu0 %v6767_v27  ;;  %2921 = vmatpush1.bf16.msra.mxu1 %v6849_v6 }
 0xff9   : > { %2881 = vmatprep.subr.bf16.mxu0 %v6855_v48  ;;  %2922 = vmatprep.subr.bf16.mxu1 %v6861_v34 }
 0xffc   : > { %2882 = vmatpush1.bf16.msra.mxu0 %v6867_v57  ;;  %2923 = vmatpush1.bf16.msra.mxu1 %v6873_v12 }
 0xffd   : > { %2883 = vmatprep.subr.bf16.mxu0 %v6879_v14  ;;  %2924 = vmatprep.subr.bf16.mxu1 %v6885_v15 }
0x1000   : > { %2884 = vmatpush1.bf16.msra.mxu0 %v6891_v16  ;;  %2925 = vmatpush1.bf16.msra.mxu1 %v6897_v17 }
0x1001   : > { %2885 = vmatprep.subr.bf16.mxu0 %v6903_v19  ;;  %2926 = vmatprep.subr.bf16.mxu1 %v6909_v20 }
0x1004   : > { %2886 = vmatpush1.bf16.msra.mxu0 %v6915_v21  ;;  %2927 = vmatpush1.bf16.msra.mxu1 %v6921_v22 }
0x1005   : > { %2982 = vmatprep.subr.bf16.mxu0 %v6675_v30  ;;  %3023 = vmatprep.subr.bf16.mxu1 %v6787_v43 }
0x10ba   : > { %v2794_v11 = vpop.f32.mrb[108].mxu0  ;;  %v2835_v0 = vpop.f32.mrb[124].mxu1 }
0x10bb   : > { %v2842_v49 = vadd.f32 %v2794_v11, %v666_v4  ;;  %v2844_v9 = vadd.f32 %v2835_v0, %v839_v28  ;;  %v2796_v38 = vpop.f32.mrb[109].mxu0  ;;  %v2837_v30 = vpop.f32.mrb[125].mxu1 }
0x10bc   : > { %v2843_v47 = vadd.f32 %v2796_v38, %v668_v26  ;;  %v2845_v36 = vadd.f32 %v2837_v30, %v841_v8  ;;  %v2798_v50 = vpop.f32.mrb[110].mxu0  ;;  %v2839_v31 = vpop.f32.mrb[126].mxu1 }
0x10bd   : > { %v4515_v18 = vmul.f32 -1.442695, %v2842_v49  ;;  %v2799_v2 = vpop.f32.mrb[111].mxu0  ;;  %v2840_v58 = vpop.f32.mrb[127].mxu1 }
0x10be   : > { %v4516_v44 = vmul.f32 -1.442695, %v2843_v47  ;;  %v4517_v24 = vmul.f32 -1.442695, %v2845_v36 }
0x10bf   : > { %4952 = vpow2.f32 %v4515_v18 }
0x10c0   : > { %4954 = vpow2.f32 %v4516_v44 }
0x10c1   : > { %4956 = vpow2.f32 %v4517_v24 }
0x10c2   : > { %4958 = vtanh.f32 %v2844_v9 }
0x10c9   : > { %v4953_v10 = vpop.eup %4952 }
0x10ca   : > { %v4955_v45 = vpop.eup %4954  ;;  %v2849_v54 = vadd.f32 1.0, %v4953_v10 }
0x10cb   : > { %v2855_v42 = vadd.f32 1.0, %v4955_v45  ;;  %v4957_v37 = vpop.eup %4956 }
0x10cc   : > { %4960 = vrcp.f32 %v2849_v54  ;;  %v4959_v4 = vpop.eup %4958  ;;  %v2862_v26 = vadd.f32 1.0, %v4957_v37 }
0x10cd   : > { %4962 = vrcp.f32 %v2855_v42 }
0x10ce   : > { %4964 = vrcp.f32 %v2862_v26 }
0x10d6   : > { %v4961_v51 = vpop.eup %4960 }
0x10d7   : > { %v4963_v28 = vpop.eup %4962  ;;  %v2866_v25 = vmul.f32 %v4961_v51, %v4959_v4 }
0x10d8   : > { %v2865_v5 = vmul.f32 %v4963_v28, %v7073_v39  ;;  %v4965_v11 = vpop.eup %4964 }
0x10da   : > { %v7119_v8 = vadd.f32 %v2866_v25, %v2865_v5 }
0x10dc   : > { %4966 = vtanh.f32 %v7119_v8 }
0x10e6   : > { %v4967_v0 = vpop.eup %4966 }
0x10e7   : > { %v2869_v49 = vmul.f32 %v4967_v0, %v4965_v11 }
0x10e9   : > { %v2870_v9 = vpack.c.bf16 %v2869_v49, %v2869_v49 }
0x10eb   : > { %2904 = vmatmul.mubr.bf16.vlgmr.msra.gmra.mrb[112].mxu0 %v2870_v9  ;;  %2945 = vmatmul.mubr.bf16.vlgmr.msra.gmra.mrb[128].mxu1 %v2870_v9 }
0x10ec   : > { %2983 = vmatpush1.bf16.msra.mxu0 %v6694_v46  ;;  %3024 = vmatpush1.bf16.msra.mxu1 %v6700_v62  ;;  %v7157_v46 = vld [vmem:[%s8034_s2 + $0x4] ss:$16 sps:$4 sm:$0xff]  }
0x10ed   : > { %2984 = vmatprep.subr.bf16.mxu0 %v6706_v35  ;;  %3025 = vmatprep.subr.bf16.mxu1 %v6712_v53  ;;  %v8194_v62 = vld [vmem:[#allocation58_spill] sm:$0xff]  ;;  %v8195_v53 = vld [vmem:[#allocation73_spill] sm:$0xff] }
0x10ee   : > { %3014 = vmatprep.mubr.bf16.mxu0 %v8142_v32  ;;  %3055 = vmatprep.mubr.bf16.mxu1 %v8142_v32  ;;  %v672_v35 = vadd.f32 %v8194_v62, %v6061_v40  ;;  %v7176_v62 = vld [vmem:[%s8034_s2] ss:$16 sps:$4 sm:$0xff]  }
0x10f0   : > { %2985 = vmatpush1.bf16.msra.mxu0 %v6720_v52  ;;  %3026 = vmatpush1.bf16.msra.mxu1 %v6726_v55  ;;  %v845_v52 = vadd.f32 %v8195_v53, %v6099_v41  ;;  %v8196_v55 = vld [vmem:[#allocation60_spill] sm:$0xff]  ;;  %v7194_v53 = vld [vmem:[%s8034_s2 + $0x2c] ss:$16 sps:$4 sm:$0xff]  }
0x10f1   : > { %2986 = vmatprep.subr.bf16.mxu0 %v6732_v56  ;;  %3027 = vmatprep.subr.bf16.mxu1 %v6814_v29  ;;  %v674_v56 = vadd.f32 %v8196_v55, %v6063_v13  ;;  %v7208_v55 = vld [vmem:[%s8034_s2 + $0x28] ss:$16 sps:$4 sm:$0xff]  }
0x10f4   : > { %2987 = vmatpush1.bf16.msra.mxu0 %v6739_v59  ;;  %3028 = vmatpush1.bf16.msra.mxu1 %v6821_v33  ;;  %v8197_v59 = vld [vmem:[#allocation75_spill] sm:$0xff] }
0x10f5   : > { %2988 = vmatprep.subr.bf16.mxu0 %v6746_v60  ;;  %3029 = vmatprep.subr.bf16.mxu1 %v6828_v63  ;;  %v847_v60 = vadd.f32 %v8197_v59, %v6103_v23  ;;  %v7221_v59 = vld [vmem:[%s8034_s2 + $0x40] ss:$16 sps:$4 sm:$0xff]  }
0x10f8   : > { %2989 = vmatpush1.bf16.msra.mxu0 %v6753_v61  ;;  %3030 = vmatpush1.bf16.msra.mxu1 %v6835_v1 }
0x10f9   : > { %2990 = vmatprep.subr.bf16.mxu0 %v6760_v7  ;;  %3031 = vmatprep.subr.bf16.mxu1 %v6842_v3 }
0x10fc   : > { %2991 = vmatpush1.bf16.msra.mxu0 %v6767_v27  ;;  %3032 = vmatpush1.bf16.msra.mxu1 %v6849_v6 }
0x10fd   : > { %2992 = vmatprep.subr.bf16.mxu0 %v6855_v48  ;;  %3033 = vmatprep.subr.bf16.mxu1 %v6861_v34 }
0x1100   : > { %2993 = vmatpush1.bf16.msra.mxu0 %v6867_v57  ;;  %3034 = vmatpush1.bf16.msra.mxu1 %v6873_v12 }
0x1101   : > { %2994 = vmatprep.subr.bf16.mxu0 %v6879_v14  ;;  %3035 = vmatprep.subr.bf16.mxu1 %v6885_v15 }
0x1104   : > { %2995 = vmatpush1.bf16.msra.mxu0 %v6891_v16  ;;  %3036 = vmatpush1.bf16.msra.mxu1 %v6897_v17 }
0x1105   : > { %2996 = vmatprep.subr.bf16.mxu0 %v6903_v19  ;;  %3037 = vmatprep.subr.bf16.mxu1 %v6909_v20 }
0x1108   : > { %2997 = vmatpush1.bf16.msra.mxu0 %v6915_v21  ;;  %3038 = vmatpush1.bf16.msra.mxu1 %v6921_v22 }
0x1109   : > { %3093 = vmatprep.subr.bf16.mxu0 %v7157_v46  ;;  %3134 = vmatprep.subr.bf16.mxu1 %v6787_v43 }
0x11be   : > { %v2905_v61 = vpop.f32.mrb[112].mxu0  ;;  %v2946_v7 = vpop.f32.mrb[128].mxu1 }
0x11bf   : > { %v2953_v27 = vadd.f32 %v2905_v61, %v672_v35  ;;  %v2955_v39 = vadd.f32 %v2946_v7, %v845_v52  ;;  %v2907_v38 = vpop.f32.mrb[113].mxu0  ;;  %v2948_v30 = vpop.f32.mrb[129].mxu1  ;;  %v7188_v35 = vld [vmem:[%s8034_s2 + $0x24] ss:$16 sps:$4 sm:$0xff]   ;;  %v7202_v52 = vld [vmem:[%s8034_s2 + $0x20] ss:$16 sps:$4 sm:$0xff]  }
0x11c0   : > { %v2954_v47 = vadd.f32 %v2907_v38, %v674_v56  ;;  %v2956_v43 = vadd.f32 %v2948_v30, %v847_v60  ;;  %v2909_v36 = vpop.f32.mrb[114].mxu0  ;;  %v2950_v50 = vpop.f32.mrb[130].mxu1  ;;  %v7214_v56 = vld [vmem:[%s8034_s2 + $0x44] ss:$16 sps:$4 sm:$0xff]  }
0x11c1   : > { %v4518_v31 = vmul.f32 -1.442695, %v2953_v27  ;;  %v2910_v18 = vpop.f32.mrb[115].mxu0  ;;  %v2951_v2 = vpop.f32.mrb[131].mxu1  ;;  %v7228_v60 = vld [vmem:[%s8034_s2 + $0x64] ss:$16 sps:$4 sm:$0xff]  }
0x11c2   : > { %v4519_v58 = vmul.f32 -1.442695, %v2954_v47  ;;  %v4520_v44 = vmul.f32 -1.442695, %v2956_v43 }
0x11c3   : > { %4968 = vpow2.f32 %v4518_v31 }
0x11c4   : > { %4970 = vpow2.f32 %v4519_v58 }
0x11c5   : > { %4972 = vpow2.f32 %v4520_v44 }
0x11c6   : > { %4974 = vtanh.f32 %v2955_v39 }
0x11cd   : > { %v4969_v24 = vpop.eup %4968 }
0x11ce   : > { %v4971_v10 = vpop.eup %4970  ;;  %v2960_v45 = vadd.f32 1.0, %v4969_v24 }
0x11cf   : > { %v2966_v54 = vadd.f32 1.0, %v4971_v10  ;;  %v4973_v42 = vpop.eup %4972 }
0x11d0   : > { %4976 = vrcp.f32 %v2960_v45  ;;  %v4975_v37 = vpop.eup %4974  ;;  %v2973_v25 = vadd.f32 1.0, %v4973_v42 }
0x11d1   : > { %4978 = vrcp.f32 %v2966_v54 }
0x11d2   : > { %4980 = vrcp.f32 %v2973_v25 }
0x11da   : > { %v4977_v4 = vpop.eup %4976 }
0x11db   : > { %v4979_v51 = vpop.eup %4978  ;;  %v2977_v28 = vmul.f32 %v4977_v4, %v4975_v37 }
0x11dc   : > { %v2976_v26 = vmul.f32 %v4979_v51, %v7119_v8  ;;  %v4981_v11 = vpop.eup %4980  ;;  %v7182_v8 = vld [vmem:[%s8034_s2 + $0x8] ss:$16 sps:$4 sm:$0xff]  }
0x11de   : > { %v7170_v5 = vadd.f32 %v2977_v28, %v2976_v26  ;;  %v7296_v26 = vld [vmem:[%s8034_s2 + $0x4c] ss:$16 sps:$4 sm:$0xff]  }
0x11e0   : > { %4982 = vtanh.f32 %v7170_v5 }
0x11ea   : > { %v4983_v0 = vpop.eup %4982 }
0x11eb   : > { %v2980_v49 = vmul.f32 %v4983_v0, %v4981_v11  ;;  %v7310_v11 = vld [vmem:[%s8034_s2 + $0x6c] ss:$16 sps:$4 sm:$0xff]   ;;  %v7317_v0 = vld [vmem:[%s8034_s2 + $0x68] ss:$16 sps:$4 sm:$0xff]  }
0x11ed   : > { %v2981_v9 = vpack.c.bf16 %v2980_v49, %v2980_v49  ;;  %v7324_v49 = vld [vmem:[%s8034_s2 + $0x8c] ss:$16 sps:$4 sm:$0xff]  }
0x11ef   : > { %3015 = vmatmul.mubr.bf16.vlgmr.msra.gmra.mrb[116].mxu0 %v2981_v9  ;;  %3056 = vmatmul.mubr.bf16.vlgmr.msra.gmra.mrb[132].mxu1 %v2981_v9  ;;  %v7331_v9 = vld [vmem:[%s8034_s2 + $0x88] ss:$16 sps:$4 sm:$0xff]  }
0x11f0   : > { %3094 = vmatpush1.bf16.msra.mxu0 %v7176_v62  ;;  %3135 = vmatpush1.bf16.msra.mxu1 %v7182_v8 }
0x11f1   : > { %3095 = vmatprep.subr.bf16.mxu0 %v7188_v35  ;;  %3136 = vmatprep.subr.bf16.mxu1 %v7194_v53 }
0x11f2   : > { %3125 = vmatprep.mubr.bf16.mxu0 %v8142_v32  ;;  %3166 = vmatprep.mubr.bf16.mxu1 %v8142_v32 }
0x11f4   : > { %3096 = vmatpush1.bf16.msra.mxu0 %v7202_v52  ;;  %3137 = vmatpush1.bf16.msra.mxu1 %v7208_v55 }
0x11f5   : > { %3097 = vmatprep.subr.bf16.mxu0 %v7214_v56  ;;  %3138 = vmatprep.subr.bf16.mxu1 %v6814_v29  ;;  %v7235_v29 = vld [vmem:[%s8034_s2 + $0x60] ss:$16 sps:$4 sm:$0xff]  }
0x11f8   : > { %3098 = vmatpush1.bf16.msra.mxu0 %v7221_v59  ;;  %3139 = vmatpush1.bf16.msra.mxu1 %v6821_v33  ;;  %v7242_v33 = vld [vmem:[%s8034_s2 + $0x84] ss:$16 sps:$4 sm:$0xff]  }
0x11f9   : > { %3099 = vmatprep.subr.bf16.mxu0 %v7228_v60  ;;  %3140 = vmatprep.subr.bf16.mxu1 %v6828_v63  ;;  %v7249_v63 = vld [vmem:[%s8034_s2 + $0x80] ss:$16 sps:$4 sm:$0xff]  }
0x11fc   : > { %3100 = vmatpush1.bf16.msra.mxu0 %v7235_v29  ;;  %3141 = vmatpush1.bf16.msra.mxu1 %v6835_v1  ;;  %v7269_v1 = vld [vmem:[%s8034_s2 + $0xc] ss:$16 sps:$4 sm:$0xff]  }
0x11fd   : > { %3101 = vmatprep.subr.bf16.mxu0 %v7242_v33  ;;  %3142 = vmatprep.subr.bf16.mxu1 %v6842_v3  ;;  %v8198_v3 = vld [vmem:[#allocation62_spill] sm:$0xff] }
0x1200   : > { %3102 = vmatpush1.bf16.msra.mxu0 %v7249_v63  ;;  %3143 = vmatpush1.bf16.msra.mxu1 %v6849_v6  ;;  %v676_v6 = vadd.f32 %v8198_v3, %v6061_v40  ;;  %v7337_v3 = vld [vmem:[%s8034_s2 + $0xa4] ss:$16 sps:$4 sm:$0xff]  }
0x1201   : > { %3103 = vmatprep.subr.bf16.mxu0 %v6855_v48  ;;  %3144 = vmatprep.subr.bf16.mxu1 %v6861_v34  ;;  %v8199_v48 = vld [vmem:[#allocation77_spill] sm:$0xff] }
0x1202   : > { %v849_v34 = vadd.f32 %v8199_v48, %v6099_v41  ;;  %v7349_v48 = vld [vmem:[%s8034_s2 + $0xa0] ss:$16 sps:$4 sm:$0xff]  }
0x1204   : > { %3104 = vmatpush1.bf16.msra.mxu0 %v6867_v57  ;;  %3145 = vmatpush1.bf16.msra.mxu1 %v6873_v12  ;;  %v8200_v57 = vld [vmem:[#allocation64_spill] sm:$0xff] }
0x1205   : > { %3105 = vmatprep.subr.bf16.mxu0 %v6879_v14  ;;  %3146 = vmatprep.subr.bf16.mxu1 %v6885_v15  ;;  %v678_v12 = vadd.f32 %v8200_v57, %v6063_v13  ;;  %v8201_v14 = vld [vmem:[#allocation79_spill] sm:$0xff]  ;;  %v7361_v57 = vld [vmem:[%s8034_s2 + $0xc4] ss:$16 sps:$4 sm:$0xff]  }
0x1206   : > { %v851_v15 = vadd.f32 %v8201_v14, %v6103_v23  ;;  %v7373_v14 = vld [vmem:[%s8034_s2 + $0xc0] ss:$16 sps:$4 sm:$0xff]  }
0x1208   : > { %3106 = vmatpush1.bf16.msra.mxu0 %v6891_v16  ;;  %3147 = vmatpush1.bf16.msra.mxu1 %v6897_v17 }
0x1209   : > { %3107 = vmatprep.subr.bf16.mxu0 %v6903_v19  ;;  %3148 = vmatprep.subr.bf16.mxu1 %v6909_v20 }
0x120c   : > { %3108 = vmatpush1.bf16.msra.mxu0 %v6915_v21  ;;  %3149 = vmatpush1.bf16.msra.mxu1 %v6921_v22 }
0x120d   : > { %3204 = vmatprep.subr.bf16.mxu0 %v7157_v46  ;;  %3245 = vmatprep.subr.bf16.mxu1 %v7269_v1 }
0x12c2   : > { %v3016_v16 = vpop.f32.mrb[116].mxu0  ;;  %v3057_v17 = vpop.f32.mrb[132].mxu1 }
0x12c3   : > { %v3064_v19 = vadd.f32 %v3016_v16, %v676_v6  ;;  %v3066_v20 = vadd.f32 %v3057_v17, %v849_v34  ;;  %v3018_v21 = vpop.f32.mrb[117].mxu0  ;;  %v3059_v22 = vpop.f32.mrb[133].mxu1  ;;  %v7343_v6 = vld [vmem:[%s8034_s2 + $0xac] ss:$16 sps:$4 sm:$0xff]   ;;  %v7355_v34 = vld [vmem:[%s8034_s2 + $0xa8] ss:$16 sps:$4 sm:$0xff]  }
0x12c4   : > { %v3065_v61 = vadd.f32 %v3018_v21, %v678_v12  ;;  %v3067_v7 = vadd.f32 %v3059_v22, %v851_v15  ;;  %v3020_v27 = vpop.f32.mrb[118].mxu0  ;;  %v3061_v39 = vpop.f32.mrb[134].mxu1  ;;  %v7367_v12 = vld [vmem:[%s8034_s2 + $0xcc] ss:$16 sps:$4 sm:$0xff]   ;;  %v7379_v15 = vld [vmem:[%s8034_s2 + $0xc8] ss:$16 sps:$4 sm:$0xff]  }
0x12c5   : > { %v4521_v38 = vmul.f32 -1.442695, %v3064_v19  ;;  %v3021_v30 = vpop.f32.mrb[119].mxu0  ;;  %v3062_v47 = vpop.f32.mrb[135].mxu1  ;;  %v7385_v16 = vld [vmem:[%s8034_s2 + $0xe4] ss:$16 sps:$4 sm:$0xff]  }
0x12c6   : > { %v4522_v43 = vmul.f32 -1.442695, %v3065_v61  ;;  %v4523_v36 = vmul.f32 -1.442695, %v3067_v7  ;;  %v7391_v17 = vld [vmem:[%s8034_s2 + $0xec] ss:$16 sps:$4 sm:$0xff]  }
0x12c7   : > { %4984 = vpow2.f32 %v4521_v38  ;;  %v7397_v19 = vld [vmem:[%s8034_s2 + $0xe0] ss:$16 sps:$4 sm:$0xff]   ;;  %v8203_v61 = vld [vmem:[#allocation81_spill] sm:$0xff]  ;;  %v8205_v38 = vld [vmem:[#allocation83_spill] sm:$0xff] }
0x12c8   : > { %4986 = vpow2.f32 %v4522_v43  ;;  %v8202_v21 = vld [vmem:[#allocation66_spill] sm:$0xff]  ;;  %v855_v7 = vadd.f32 %v8203_v61, %v6099_v41  ;;  %v8204_v27 = vld [vmem:[#allocation68_spill] sm:$0xff]  ;;  %v857_v30 = vadd.f32 %v8205_v38, %v6103_v23 }
0x12c9   : > { %4988 = vpow2.f32 %v4523_v36  ;;  %v682_v22 = vadd.f32 %v8202_v21, %v6061_v40  ;;  %v684_v39 = vadd.f32 %v8204_v27, %v6063_v13 }
0x12ca   : > { %4990 = vtanh.f32 %v3066_v20  ;;  %v7403_v20 = vld [vmem:[%s8034_s2 + $0xe8] ss:$16 sps:$4 sm:$0xff]  }
0x12d1   : > { %v4985_v50 = vpop.eup %4984 }
0x12d2   : > { %v4987_v31 = vpop.eup %4986  ;;  %v3071_v18 = vadd.f32 1.0, %v4985_v50 }
0x12d3   : > { %v3077_v2 = vadd.f32 1.0, %v4987_v31  ;;  %v4989_v58 = vpop.eup %4988 }
0x12d4   : > { %4992 = vrcp.f32 %v3071_v18  ;;  %v4991_v44 = vpop.eup %4990  ;;  %v3084_v54 = vadd.f32 1.0, %v4989_v58 }
0x12d5   : > { %4994 = vrcp.f32 %v3077_v2 }
0x12d6   : > { %4996 = vrcp.f32 %v3084_v54 }
0x12de   : > { %v4993_v24 = vpop.eup %4992 }
0x12df   : > { %v4995_v10 = vpop.eup %4994  ;;  %v3088_v45 = vmul.f32 %v4993_v24, %v4991_v44 }
0x12e0   : > { %v3087_v42 = vmul.f32 %v4995_v10, %v7170_v5  ;;  %v4997_v4 = vpop.eup %4996  ;;  %v7303_v5 = vld [vmem:[%s8034_s2 + $0x48] ss:$16 sps:$4 sm:$0xff]  }
0x12e2   : > { %v7281_v37 = vadd.f32 %v3088_v45, %v3087_v42 }
0x12e4   : > { %4998 = vtanh.f32 %v7281_v37 }
0x12ee   : > { %v4999_v51 = vpop.eup %4998 }
0x12ef   : > { %v3091_v28 = vmul.f32 %v4999_v51, %v4997_v4 }
0x12f1   : > { %v3092_v25 = vpack.c.bf16 %v3091_v28, %v3091_v28 }
0x12f3   : > { %3126 = vmatmul.mubr.bf16.vlgmr.msra.gmra.mrb[120].mxu0 %v3092_v25  ;;  %3167 = vmatmul.mubr.bf16.vlgmr.msra.gmra.mrb[136].mxu1 %v3092_v25 }
0x12f4   : > { %3205 = vmatpush1.bf16.msra.mxu0 %v7176_v62  ;;  %3246 = vmatpush1.bf16.msra.mxu1 %v7182_v8 }
0x12f5   : > { %3206 = vmatprep.subr.bf16.mxu0 %v7188_v35  ;;  %3247 = vmatprep.subr.bf16.mxu1 %v7194_v53 }
0x12f6   : > { %3236 = vmatprep.mubr.bf16.mxu0 %v8142_v32  ;;  %3277 = vmatprep.mubr.bf16.mxu1 %v8142_v32 }
0x12f8   : > { %3207 = vmatpush1.bf16.msra.mxu0 %v7202_v52  ;;  %3248 = vmatpush1.bf16.msra.mxu1 %v7208_v55 }
0x12f9   : > { %3208 = vmatprep.subr.bf16.mxu0 %v7214_v56  ;;  %3249 = vmatprep.subr.bf16.mxu1 %v7296_v26 }
0x12fc   : > { %3209 = vmatpush1.bf16.msra.mxu0 %v7221_v59  ;;  %3250 = vmatpush1.bf16.msra.mxu1 %v7303_v5 }
0x12fd   : > { %3210 = vmatprep.subr.bf16.mxu0 %v7228_v60  ;;  %3251 = vmatprep.subr.bf16.mxu1 %v7310_v11 }
0x1300   : > { %3211 = vmatpush1.bf16.msra.mxu0 %v7235_v29  ;;  %3252 = vmatpush1.bf16.msra.mxu1 %v7317_v0 }
0x1301   : > { %3212 = vmatprep.subr.bf16.mxu0 %v7242_v33  ;;  %3253 = vmatprep.subr.bf16.mxu1 %v7324_v49 }
0x1304   : > { %3213 = vmatpush1.bf16.msra.mxu0 %v7249_v63  ;;  %3254 = vmatpush1.bf16.msra.mxu1 %v7331_v9 }
0x1305   : > { %3214 = vmatprep.subr.bf16.mxu0 %v7337_v3  ;;  %3255 = vmatprep.subr.bf16.mxu1 %v7343_v6 }
0x1308   : > { %3215 = vmatpush1.bf16.msra.mxu0 %v7349_v48  ;;  %3256 = vmatpush1.bf16.msra.mxu1 %v7355_v34 }
0x1309   : > { %3216 = vmatprep.subr.bf16.mxu0 %v7361_v57  ;;  %3257 = vmatprep.subr.bf16.mxu1 %v7367_v12 }
0x130c   : > { %3217 = vmatpush1.bf16.msra.mxu0 %v7373_v14  ;;  %3258 = vmatpush1.bf16.msra.mxu1 %v7379_v15 }
0x130d   : > { %3218 = vmatprep.subr.bf16.mxu0 %v7385_v16  ;;  %3259 = vmatprep.subr.bf16.mxu1 %v7391_v17 }
0x1310   : > { %3219 = vmatpush1.bf16.msra.mxu0 %v7397_v19  ;;  %3260 = vmatpush1.bf16.msra.mxu1 %v7403_v20 }
0x1311   : > { %3315 = vmatprep.subr.bf16.mxu0 %v7157_v46  ;;  %3356 = vmatprep.subr.bf16.mxu1 %v7269_v1 }
0x13c6   : > { %v3127_v47 = vpop.f32.mrb[120].mxu0  ;;  %v3168_v43 = vpop.f32.mrb[136].mxu1 }
0x13c7   : > { %v3175_v36 = vadd.f32 %v3127_v47, %v682_v22  ;;  %v3177_v50 = vadd.f32 %v3168_v43, %v855_v7  ;;  %v3129_v31 = vpop.f32.mrb[121].mxu0  ;;  %v3170_v18 = vpop.f32.mrb[137].mxu1 }
0x13c8   : > { %v3176_v2 = vadd.f32 %v3129_v31, %v684_v39  ;;  %v3178_v58 = vadd.f32 %v3170_v18, %v857_v30  ;;  %v3131_v44 = vpop.f32.mrb[122].mxu0  ;;  %v3172_v24 = vpop.f32.mrb[138].mxu1 }
0x13c9   : > { %v4524_v10 = vmul.f32 -1.442695, %v3175_v36  ;;  %v3132_v45 = vpop.f32.mrb[123].mxu0  ;;  %v3173_v54 = vpop.f32.mrb[139].mxu1  ;;  %v8208_v44 = vld [vmem:[#allocation72_spill] sm:$0xff] }
0x13ca   : > { %v4525_v42 = vmul.f32 -1.442695, %v3176_v2  ;;  %v4526_v4 = vmul.f32 -1.442695, %v3178_v58  ;;  %v8207_v2 = vld [vmem:[#allocation85_spill] sm:$0xff]  ;;  %v688_v24 = vadd.f32 %v8208_v44, %v6063_v13 }
0x13cb   : > { %5000 = vpow2.f32 %v4524_v10  ;;  %v859_v58 = vadd.f32 %v8207_v2, %v6099_v41  ;;  %v8209_v10 = vld [vmem:[#allocation87_spill] sm:$0xff] }
0x13cc   : > { %5002 = vpow2.f32 %v4525_v42  ;;  %v861_v45 = vadd.f32 %v8209_v10, %v6103_v23 }
0x13cd   : > { %5004 = vpow2.f32 %v4526_v4 }
0x13ce   : > { %5006 = vtanh.f32 %v3177_v50 }
0x13d5   : > { %v5001_v51 = vpop.eup %5000 }
0x13d6   : > { %v5003_v28 = vpop.eup %5002  ;;  %v3182_v25 = vadd.f32 1.0, %v5001_v51 }
0x13d7   : > { %v3188_v21 = vadd.f32 1.0, %v5003_v28  ;;  %v5005_v22 = vpop.eup %5004 }
0x13d8   : > { %5008 = vrcp.f32 %v3182_v25  ;;  %v5007_v61 = vpop.eup %5006  ;;  %v3195_v38 = vadd.f32 1.0, %v5005_v22 }
0x13d9   : > { %5010 = vrcp.f32 %v3188_v21 }
0x13da   : > { %5012 = vrcp.f32 %v3195_v38 }
0x13e2   : > { %v5009_v7 = vpop.eup %5008 }
0x13e3   : > { %v5011_v27 = vpop.eup %5010  ;;  %v3199_v39 = vmul.f32 %v5009_v7, %v5007_v61 }
0x13e4   : > { %v3198_v30 = vmul.f32 %v5011_v27, %v7281_v37  ;;  %v5013_v43 = vpop.eup %5012  ;;  %v8206_v37 = vld [vmem:[#allocation70_spill] sm:$0xff] }
0x13e5   : > { %v686_v18 = vadd.f32 %v8206_v37, %v6061_v40 }
0x13e6   : > { %v7417_v47 = vadd.f32 %v3199_v39, %v3198_v30 }
0x13e8   : > { %5014 = vtanh.f32 %v7417_v47 }
0x13f2   : > { %v5015_v36 = vpop.eup %5014 }
0x13f3   : > { %v3202_v31 = vmul.f32 %v5015_v36, %v5013_v43 }
0x13f5   : > { %v3203_v50 = vpack.c.bf16 %v3202_v31, %v3202_v31 }
0x13f7   : > { %3237 = vmatmul.mubr.bf16.vlgmr.msra.gmra.mrb[124].mxu0 %v3203_v50  ;;  %3278 = vmatmul.mubr.bf16.vlgmr.msra.gmra.mrb[140].mxu1 %v3203_v50 }
0x13f8   : > { %3316 = vmatpush1.bf16.msra.mxu0 %v7176_v62  ;;  %3357 = vmatpush1.bf16.msra.mxu1 %v7182_v8 }
0x13f9   : > { %3317 = vmatprep.subr.bf16.mxu0 %v7188_v35  ;;  %3358 = vmatprep.subr.bf16.mxu1 %v7194_v53 }
0x13fa   : > { %3347 = vmatprep.mubr.bf16.mxu0 %v8142_v32  ;;  %3388 = vmatprep.mubr.bf16.mxu1 %v8142_v32 }
0x13fc   : > { %3318 = vmatpush1.bf16.msra.mxu0 %v7202_v52  ;;  %3359 = vmatpush1.bf16.msra.mxu1 %v7208_v55 }
0x13fd   : > { %3319 = vmatprep.subr.bf16.mxu0 %v7214_v56  ;;  %3360 = vmatprep.subr.bf16.mxu1 %v7296_v26 }
0x1400   : > { %3320 = vmatpush1.bf16.msra.mxu0 %v7221_v59  ;;  %3361 = vmatpush1.bf16.msra.mxu1 %v7303_v5 }
0x1401   : > { %3321 = vmatprep.subr.bf16.mxu0 %v7228_v60  ;;  %3362 = vmatprep.subr.bf16.mxu1 %v7310_v11 }
0x1404   : > { %3322 = vmatpush1.bf16.msra.mxu0 %v7235_v29  ;;  %3363 = vmatpush1.bf16.msra.mxu1 %v7317_v0 }
0x1405   : > { %3323 = vmatprep.subr.bf16.mxu0 %v7242_v33  ;;  %3364 = vmatprep.subr.bf16.mxu1 %v7324_v49 }
0x1408   : > { %3324 = vmatpush1.bf16.msra.mxu0 %v7249_v63  ;;  %3365 = vmatpush1.bf16.msra.mxu1 %v7331_v9 }
0x1409   : > { %3325 = vmatprep.subr.bf16.mxu0 %v7337_v3  ;;  %3366 = vmatprep.subr.bf16.mxu1 %v7343_v6 }
0x140c   : > { %3326 = vmatpush1.bf16.msra.mxu0 %v7349_v48  ;;  %3367 = vmatpush1.bf16.msra.mxu1 %v7355_v34 }
0x140d   : > { %3327 = vmatprep.subr.bf16.mxu0 %v7361_v57  ;;  %3368 = vmatprep.subr.bf16.mxu1 %v7367_v12 }
0x1410   : > { %3328 = vmatpush1.bf16.msra.mxu0 %v7373_v14  ;;  %3369 = vmatpush1.bf16.msra.mxu1 %v7379_v15 }
0x1411   : > { %3329 = vmatprep.subr.bf16.mxu0 %v7385_v16  ;;  %3370 = vmatprep.subr.bf16.mxu1 %v7391_v17 }
0x1414   : > { %3330 = vmatpush1.bf16.msra.mxu0 %v7397_v19  ;;  %3371 = vmatpush1.bf16.msra.mxu1 %v7403_v20 }
0x1415   : > { %3426 = vmatprep.subr.bf16.mxu0 %v7157_v46  ;;  %3467 = vmatprep.subr.bf16.mxu1 %v7269_v1 }
0x14ca   : > { %v3238_v54 = vpop.f32.mrb[124].mxu0  ;;  %v3279_v42 = vpop.f32.mrb[140].mxu1 }
0x14cb   : > { %v3286_v4 = vadd.f32 %v3238_v54, %v686_v18  ;;  %v3288_v51 = vadd.f32 %v3279_v42, %v859_v58  ;;  %v3240_v28 = vpop.f32.mrb[125].mxu0  ;;  %v3281_v25 = vpop.f32.mrb[141].mxu1 }
0x14cc   : > { %v3287_v21 = vadd.f32 %v3240_v28, %v688_v24  ;;  %v3289_v22 = vadd.f32 %v3281_v25, %v861_v45  ;;  %v3242_v61 = vpop.f32.mrb[126].mxu0  ;;  %v3283_v7 = vpop.f32.mrb[142].mxu1 }
0x14cd   : > { %v4527_v27 = vmul.f32 -1.442695, %v3286_v4  ;;  %v3243_v39 = vpop.f32.mrb[127].mxu0  ;;  %v3284_v38 = vpop.f32.mrb[143].mxu1  ;;  %v8212_v61 = vld [vmem:[#allocation76_spill] sm:$0xff] }
0x14ce   : > { %v4528_v30 = vmul.f32 -1.442695, %v3287_v21  ;;  %v4529_v43 = vmul.f32 -1.442695, %v3289_v22  ;;  %v8211_v21 = vld [vmem:[#allocation89_spill] sm:$0xff]  ;;  %v694_v7 = vadd.f32 %v8212_v61, %v6063_v13 }
0x14cf   : > { %5016 = vpow2.f32 %v4527_v27  ;;  %v865_v22 = vadd.f32 %v8211_v21, %v6099_v41  ;;  %v8213_v27 = vld [vmem:[#allocation90_spill] sm:$0xff] }
0x14d0   : > { %5018 = vpow2.f32 %v4528_v30  ;;  %v867_v39 = vadd.f32 %v8213_v27, %v6103_v23 }
0x14d1   : > { %5020 = vpow2.f32 %v4529_v43 }
0x14d2   : > { %5022 = vtanh.f32 %v3288_v51 }
0x14d9   : > { %v5017_v36 = vpop.eup %5016 }
0x14da   : > { %v5019_v31 = vpop.eup %5018  ;;  %v3293_v50 = vadd.f32 1.0, %v5017_v36 }
0x14db   : > { %v3299_v37 = vadd.f32 1.0, %v5019_v31  ;;  %v5021_v18 = vpop.eup %5020 }
0x14dc   : > { %5024 = vrcp.f32 %v3293_v50  ;;  %v5023_v2 = vpop.eup %5022  ;;  %v3306_v10 = vadd.f32 1.0, %v5021_v18 }
0x14dd   : > { %5026 = vrcp.f32 %v3299_v37 }
0x14de   : > { %5028 = vrcp.f32 %v3306_v10 }
0x14e6   : > { %v5025_v58 = vpop.eup %5024 }
0x14e7   : > { %v5027_v44 = vpop.eup %5026  ;;  %v3310_v24 = vmul.f32 %v5025_v58, %v5023_v2 }
0x14e8   : > { %v3309_v45 = vmul.f32 %v5027_v44, %v7417_v47  ;;  %v5029_v42 = vpop.eup %5028  ;;  %v8210_v47 = vld [vmem:[#allocation74_spill] sm:$0xff] }
0x14e9   : > { %v692_v25 = vadd.f32 %v8210_v47, %v6061_v40 }
0x14ea   : > { %v7463_v54 = vadd.f32 %v3310_v24, %v3309_v45 }
0x14ec   : > { %5030 = vtanh.f32 %v7463_v54 }
0x14f6   : > { %v5031_v4 = vpop.eup %5030 }
0x14f7   : > { %v3313_v28 = vmul.f32 %v5031_v4, %v5029_v42 }
0x14f9   : > { %v3314_v51 = vpack.c.bf16 %v3313_v28, %v3313_v28 }
0x14fb   : > { %3348 = vmatmul.mubr.bf16.vlgmr.msra.gmra.mrb[128].mxu0 %v3314_v51  ;;  %3389 = vmatmul.mubr.bf16.vlgmr.msra.gmra.mrb[144].mxu1 %v3314_v51 }
0x14fc   : > { %3427 = vmatpush1.bf16.msra.mxu0 %v7176_v62  ;;  %3468 = vmatpush1.bf16.msra.mxu1 %v7182_v8 }
0x14fd   : > { %3428 = vmatprep.subr.bf16.mxu0 %v7188_v35  ;;  %3469 = vmatprep.subr.bf16.mxu1 %v7194_v53 }
0x14fe   : > { %3458 = vmatprep.mubr.bf16.mxu0 %v8142_v32  ;;  %3499 = vmatprep.mubr.bf16.mxu1 %v8142_v32 }
0x1500   : > { %3429 = vmatpush1.bf16.msra.mxu0 %v7202_v52  ;;  %3470 = vmatpush1.bf16.msra.mxu1 %v7208_v55 }
0x1501   : > { %3430 = vmatprep.subr.bf16.mxu0 %v7214_v56  ;;  %3471 = vmatprep.subr.bf16.mxu1 %v7296_v26 }
0x1504   : > { %3431 = vmatpush1.bf16.msra.mxu0 %v7221_v59  ;;  %3472 = vmatpush1.bf16.msra.mxu1 %v7303_v5 }
0x1505   : > { %3432 = vmatprep.subr.bf16.mxu0 %v7228_v60  ;;  %3473 = vmatprep.subr.bf16.mxu1 %v7310_v11 }
0x1508   : > { %3433 = vmatpush1.bf16.msra.mxu0 %v7235_v29  ;;  %3474 = vmatpush1.bf16.msra.mxu1 %v7317_v0 }
0x1509   : > { %3434 = vmatprep.subr.bf16.mxu0 %v7242_v33  ;;  %3475 = vmatprep.subr.bf16.mxu1 %v7324_v49 }
0x150c   : > { %3435 = vmatpush1.bf16.msra.mxu0 %v7249_v63  ;;  %3476 = vmatpush1.bf16.msra.mxu1 %v7331_v9 }
0x150d   : > { %3436 = vmatprep.subr.bf16.mxu0 %v7337_v3  ;;  %3477 = vmatprep.subr.bf16.mxu1 %v7343_v6 }
0x1510   : > { %3437 = vmatpush1.bf16.msra.mxu0 %v7349_v48  ;;  %3478 = vmatpush1.bf16.msra.mxu1 %v7355_v34 }
0x1511   : > { %3438 = vmatprep.subr.bf16.mxu0 %v7361_v57  ;;  %3479 = vmatprep.subr.bf16.mxu1 %v7367_v12 }
0x1514   : > { %3439 = vmatpush1.bf16.msra.mxu0 %v7373_v14  ;;  %3480 = vmatpush1.bf16.msra.mxu1 %v7379_v15 }
0x1515   : > { %3440 = vmatprep.subr.bf16.mxu0 %v7385_v16  ;;  %3481 = vmatprep.subr.bf16.mxu1 %v7391_v17 }
0x1518   : > { %3441 = vmatpush1.bf16.msra.mxu0 %v7397_v19  ;;  %3482 = vmatpush1.bf16.msra.mxu1 %v7403_v20 }
0x1519   : > { %3537 = vmatprep.subr.bf16.mxu0 %v7157_v46  ;;  %3578 = vmatprep.subr.bf16.mxu1 %v7269_v1 }
0x15ce   : > { %v3349_v38 = vpop.f32.mrb[128].mxu0  ;;  %v3390_v30 = vpop.f32.mrb[144].mxu1 }
0x15cf   : > { %v3397_v43 = vadd.f32 %v3349_v38, %v692_v25  ;;  %v3399_v36 = vadd.f32 %v3390_v30, %v865_v22  ;;  %v3351_v31 = vpop.f32.mrb[129].mxu0  ;;  %v3392_v50 = vpop.f32.mrb[145].mxu1 }
0x15d0   : > { %v3398_v37 = vadd.f32 %v3351_v31, %v694_v7  ;;  %v3400_v18 = vadd.f32 %v3392_v50, %v867_v39  ;;  %v3353_v2 = vpop.f32.mrb[130].mxu0  ;;  %v3394_v58 = vpop.f32.mrb[146].mxu1 }
0x15d1   : > { %v4530_v44 = vmul.f32 -1.442695, %v3397_v43  ;;  %v3354_v24 = vpop.f32.mrb[131].mxu0  ;;  %v3395_v10 = vpop.f32.mrb[147].mxu1  ;;  %v8216_v2 = vld [vmem:[#allocation80_spill] sm:$0xff] }
0x15d2   : > { %v4531_v45 = vmul.f32 -1.442695, %v3398_v37  ;;  %v4532_v42 = vmul.f32 -1.442695, %v3400_v18  ;;  %v8215_v37 = vld [vmem:[#allocation91_spill] sm:$0xff]  ;;  %v698_v58 = vadd.f32 %v8216_v2, %v6063_v13 }
0x15d3   : > { %5032 = vpow2.f32 %v4530_v44  ;;  %v869_v18 = vadd.f32 %v8215_v37, %v6099_v41  ;;  %v8217_v44 = vld [vmem:[#allocation92_spill] sm:$0xff] }
0x15d4   : > { %5034 = vpow2.f32 %v4531_v45  ;;  %v871_v24 = vadd.f32 %v8217_v44, %v6103_v23 }
0x15d5   : > { %5036 = vpow2.f32 %v4532_v42 }
0x15d6   : > { %5038 = vtanh.f32 %v3399_v36 }
0x15dd   : > { %v5033_v4 = vpop.eup %5032 }
0x15de   : > { %v5035_v28 = vpop.eup %5034  ;;  %v3404_v51 = vadd.f32 1.0, %v5033_v4 }
0x15df   : > { %v3410_v47 = vadd.f32 1.0, %v5035_v28  ;;  %v5037_v25 = vpop.eup %5036 }
0x15e0   : > { %5040 = vrcp.f32 %v3404_v51  ;;  %v5039_v21 = vpop.eup %5038  ;;  %v3417_v27 = vadd.f32 1.0, %v5037_v25 }
0x15e1   : > { %5042 = vrcp.f32 %v3410_v47 }
0x15e2   : > { %5044 = vrcp.f32 %v3417_v27 }
0x15ea   : > { %v5041_v22 = vpop.eup %5040 }
0x15eb   : > { %v5043_v61 = vpop.eup %5042  ;;  %v3421_v7 = vmul.f32 %v5041_v22, %v5039_v21 }
0x15ec   : > { %v3420_v39 = vmul.f32 %v5043_v61, %v7463_v54  ;;  %v5045_v30 = vpop.eup %5044  ;;  %v8214_v54 = vld [vmem:[#allocation78_spill] sm:$0xff] }
0x15ed   : > { %v696_v50 = vadd.f32 %v8214_v54, %v6061_v40 }
0x15ee   : > { %v7509_v38 = vadd.f32 %v3421_v7, %v3420_v39 }
0x15f0   : > { %5046 = vtanh.f32 %v7509_v38 }
0x15fa   : > { %v5047_v43 = vpop.eup %5046 }
0x15fb   : > { %v3424_v31 = vmul.f32 %v5047_v43, %v5045_v30 }
0x15fd   : > { %v3425_v36 = vpack.c.bf16 %v3424_v31, %v3424_v31 }
0x15ff   : > { %3459 = vmatmul.mubr.bf16.vlgmr.msra.gmra.mrb[132].mxu0 %v3425_v36  ;;  %3500 = vmatmul.mubr.bf16.vlgmr.msra.gmra.mrb[148].mxu1 %v3425_v36 }
0x1600   : > { %3538 = vmatpush1.bf16.msra.mxu0 %v7176_v62  ;;  %3579 = vmatpush1.bf16.msra.mxu1 %v7182_v8 }
0x1601   : > { %3539 = vmatprep.subr.bf16.mxu0 %v7188_v35  ;;  %3580 = vmatprep.subr.bf16.mxu1 %v7194_v53 }
0x1602   : > { %3569 = vmatprep.mubr.bf16.mxu0 %v8142_v32  ;;  %3610 = vmatprep.mubr.bf16.mxu1 %v8142_v32 }
0x1604   : > { %3540 = vmatpush1.bf16.msra.mxu0 %v7202_v52  ;;  %3581 = vmatpush1.bf16.msra.mxu1 %v7208_v55 }
0x1605   : > { %3541 = vmatprep.subr.bf16.mxu0 %v7214_v56  ;;  %3582 = vmatprep.subr.bf16.mxu1 %v7296_v26 }
0x1608   : > { %3542 = vmatpush1.bf16.msra.mxu0 %v7221_v59  ;;  %3583 = vmatpush1.bf16.msra.mxu1 %v7303_v5 }
0x1609   : > { %3543 = vmatprep.subr.bf16.mxu0 %v7228_v60  ;;  %3584 = vmatprep.subr.bf16.mxu1 %v7310_v11 }
0x160c   : > { %3544 = vmatpush1.bf16.msra.mxu0 %v7235_v29  ;;  %3585 = vmatpush1.bf16.msra.mxu1 %v7317_v0 }
0x160d   : > { %3545 = vmatprep.subr.bf16.mxu0 %v7242_v33  ;;  %3586 = vmatprep.subr.bf16.mxu1 %v7324_v49 }
0x1610   : > { %3546 = vmatpush1.bf16.msra.mxu0 %v7249_v63  ;;  %3587 = vmatpush1.bf16.msra.mxu1 %v7331_v9 }
0x1611   : > { %3547 = vmatprep.subr.bf16.mxu0 %v7337_v3  ;;  %3588 = vmatprep.subr.bf16.mxu1 %v7343_v6 }
0x1614   : > { %3548 = vmatpush1.bf16.msra.mxu0 %v7349_v48  ;;  %3589 = vmatpush1.bf16.msra.mxu1 %v7355_v34 }
0x1615   : > { %3549 = vmatprep.subr.bf16.mxu0 %v7361_v57  ;;  %3590 = vmatprep.subr.bf16.mxu1 %v7367_v12 }
0x1618   : > { %3550 = vmatpush1.bf16.msra.mxu0 %v7373_v14  ;;  %3591 = vmatpush1.bf16.msra.mxu1 %v7379_v15 }
0x1619   : > { %3551 = vmatprep.subr.bf16.mxu0 %v7385_v16  ;;  %3592 = vmatprep.subr.bf16.mxu1 %v7391_v17 }
0x161c   : > { %3552 = vmatpush1.bf16.msra.mxu0 %v7397_v19  ;;  %3593 = vmatpush1.bf16.msra.mxu1 %v7403_v20 }
0x161d   : > { %3648 = vmatprep.subr.bf16.mxu0 %v7157_v46  ;;  %3689 = vmatprep.subr.bf16.mxu1 %v7269_v1 }
0x16d2   : > { %v3460_v10 = vpop.f32.mrb[132].mxu0  ;;  %v3501_v45 = vpop.f32.mrb[148].mxu1 }
0x16d3   : > { %v3508_v42 = vadd.f32 %v3460_v10, %v696_v50  ;;  %v3510_v4 = vadd.f32 %v3501_v45, %v869_v18  ;;  %v3462_v28 = vpop.f32.mrb[133].mxu0  ;;  %v3503_v51 = vpop.f32.mrb[149].mxu1 }
0x16d4   : > { %v3509_v47 = vadd.f32 %v3462_v28, %v698_v58  ;;  %v3511_v25 = vadd.f32 %v3503_v51, %v871_v24  ;;  %v3464_v21 = vpop.f32.mrb[134].mxu0  ;;  %v3505_v22 = vpop.f32.mrb[150].mxu1 }
0x16d5   : > { %v4533_v61 = vmul.f32 -1.442695, %v3508_v42  ;;  %v3465_v7 = vpop.f32.mrb[135].mxu0  ;;  %v3506_v27 = vpop.f32.mrb[151].mxu1  ;;  %v8220_v21 = vld [vmem:[#allocation84_spill] sm:$0xff] }
0x16d6   : > { %v4534_v39 = vmul.f32 -1.442695, %v3509_v47  ;;  %v4535_v30 = vmul.f32 -1.442695, %v3511_v25  ;;  %v8219_v47 = vld [vmem:[#allocation93_spill] sm:$0xff]  ;;  %v704_v22 = vadd.f32 %v8220_v21, %v6063_v13 }
0x16d7   : > { %5048 = vpow2.f32 %v4533_v61  ;;  %v875_v25 = vadd.f32 %v8219_v47, %v6099_v41  ;;  %v8221_v61 = vld [vmem:[#allocation94_spill] sm:$0xff] }
0x16d8   : > { %5050 = vpow2.f32 %v4534_v39  ;;  %v877_v7 = vadd.f32 %v8221_v61, %v6103_v23 }
0x16d9   : > { %5052 = vpow2.f32 %v4535_v30 }
0x16da   : > { %5054 = vtanh.f32 %v3510_v4 }
0x16e1   : > { %v5049_v43 = vpop.eup %5048 }
0x16e2   : > { %v5051_v31 = vpop.eup %5050  ;;  %v3515_v36 = vadd.f32 1.0, %v5049_v43 }
0x16e3   : > { %v3521_v54 = vadd.f32 1.0, %v5051_v31  ;;  %v5053_v50 = vpop.eup %5052 }
0x16e4   : > { %5056 = vrcp.f32 %v3515_v36  ;;  %v5055_v37 = vpop.eup %5054  ;;  %v3528_v44 = vadd.f32 1.0, %v5053_v50 }
0x16e5   : > { %5058 = vrcp.f32 %v3521_v54 }
0x16e6   : > { %5060 = vrcp.f32 %v3528_v44 }
0x16ee   : > { %v5057_v18 = vpop.eup %5056 }
0x16ef   : > { %v5059_v2 = vpop.eup %5058  ;;  %v3532_v58 = vmul.f32 %v5057_v18, %v5055_v37 }
0x16f0   : > { %v3531_v24 = vmul.f32 %v5059_v2, %v7509_v38  ;;  %v5061_v45 = vpop.eup %5060  ;;  %v8218_v38 = vld [vmem:[#allocation82_spill] sm:$0xff] }
0x16f1   : > { %v702_v51 = vadd.f32 %v8218_v38, %v6061_v40 }
0x16f2   : > { %v7555_v10 = vadd.f32 %v3532_v58, %v3531_v24 }
0x16f4   : > { %5062 = vtanh.f32 %v7555_v10 }
0x16fe   : > { %v5063_v42 = vpop.eup %5062 }
0x16ff   : > { %v3535_v28 = vmul.f32 %v5063_v42, %v5061_v45 }
0x1701   : > { %v3536_v4 = vpack.c.bf16 %v3535_v28, %v3535_v28 }
0x1703   : > { %3570 = vmatmul.mubr.bf16.vlgmr.msra.gmra.mrb[136].mxu0 %v3536_v4  ;;  %3611 = vmatmul.mubr.bf16.vlgmr.msra.gmra.mrb[152].mxu1 %v3536_v4 }
0x1704   : > { %3649 = vmatpush1.bf16.msra.mxu0 %v7176_v62  ;;  %3690 = vmatpush1.bf16.msra.mxu1 %v7182_v8 }
0x1705   : > { %3650 = vmatprep.subr.bf16.mxu0 %v7188_v35  ;;  %3691 = vmatprep.subr.bf16.mxu1 %v7194_v53 }
0x1706   : > { %3680 = vmatprep.mubr.bf16.mxu0 %v8142_v32  ;;  %3721 = vmatprep.mubr.bf16.mxu1 %v8142_v32 }
0x1708   : > { %3651 = vmatpush1.bf16.msra.mxu0 %v7202_v52  ;;  %3692 = vmatpush1.bf16.msra.mxu1 %v7208_v55 }
0x1709   : > { %3652 = vmatprep.subr.bf16.mxu0 %v7214_v56  ;;  %3693 = vmatprep.subr.bf16.mxu1 %v7296_v26 }
0x170c   : > { %3653 = vmatpush1.bf16.msra.mxu0 %v7221_v59  ;;  %3694 = vmatpush1.bf16.msra.mxu1 %v7303_v5 }
0x170d   : > { %3654 = vmatprep.subr.bf16.mxu0 %v7228_v60  ;;  %3695 = vmatprep.subr.bf16.mxu1 %v7310_v11 }
0x1710   : > { %3655 = vmatpush1.bf16.msra.mxu0 %v7235_v29  ;;  %3696 = vmatpush1.bf16.msra.mxu1 %v7317_v0 }
0x1711   : > { %3656 = vmatprep.subr.bf16.mxu0 %v7242_v33  ;;  %3697 = vmatprep.subr.bf16.mxu1 %v7324_v49 }
0x1714   : > { %3657 = vmatpush1.bf16.msra.mxu0 %v7249_v63  ;;  %3698 = vmatpush1.bf16.msra.mxu1 %v7331_v9 }
0x1715   : > { %3658 = vmatprep.subr.bf16.mxu0 %v7337_v3  ;;  %3699 = vmatprep.subr.bf16.mxu1 %v7343_v6 }
0x1718   : > { %3659 = vmatpush1.bf16.msra.mxu0 %v7349_v48  ;;  %3700 = vmatpush1.bf16.msra.mxu1 %v7355_v34 }
0x1719   : > { %3660 = vmatprep.subr.bf16.mxu0 %v7361_v57  ;;  %3701 = vmatprep.subr.bf16.mxu1 %v7367_v12 }
0x171c   : > { %3661 = vmatpush1.bf16.msra.mxu0 %v7373_v14  ;;  %3702 = vmatpush1.bf16.msra.mxu1 %v7379_v15 }
0x171d   : > { %3662 = vmatprep.subr.bf16.mxu0 %v7385_v16  ;;  %3703 = vmatprep.subr.bf16.mxu1 %v7391_v17 }
0x1720   : > { %3663 = vmatpush1.bf16.msra.mxu0 %v7397_v19  ;;  %3704 = vmatpush1.bf16.msra.mxu1 %v7403_v20 }
0x1721   : > { %3759 = vmatprep.subr.bf16.mxu0 %v7157_v46  ;;  %3800 = vmatprep.subr.bf16.mxu1 %v7269_v1 }
0x17d6   : > { %v3571_v27 = vpop.f32.mrb[136].mxu0  ;;  %v3612_v39 = vpop.f32.mrb[152].mxu1 }
0x17d7   : > { %v3619_v30 = vadd.f32 %v3571_v27, %v702_v51  ;;  %v3621_v43 = vadd.f32 %v3612_v39, %v875_v25  ;;  %v3573_v31 = vpop.f32.mrb[137].mxu0  ;;  %v3614_v46 = vpop.f32.mrb[153].mxu1 }
0x17d8   : > { %v3620_v36 = vadd.f32 %v3573_v31, %v704_v22  ;;  %v3622_v54 = vadd.f32 %v3614_v46, %v877_v7  ;;  %v3575_v50 = vpop.f32.mrb[138].mxu0  ;;  %v3616_v37 = vpop.f32.mrb[154].mxu1 }
0x17d9   : > { %v4536_v18 = vmul.f32 -1.442695, %v3619_v30  ;;  %v3576_v2 = vpop.f32.mrb[139].mxu0  ;;  %v3617_v58 = vpop.f32.mrb[155].mxu1 }
0x17da   : > { %v4537_v44 = vmul.f32 -1.442695, %v3620_v36  ;;  %v4538_v24 = vmul.f32 -1.442695, %v3622_v54 }
0x17db   : > { %5064 = vpow2.f32 %v4536_v18 }
0x17dc   : > { %5066 = vpow2.f32 %v4537_v44 }
0x17dd   : > { %5068 = vpow2.f32 %v4538_v24 }
0x17de   : > { %5070 = vtanh.f32 %v3621_v43 }
0x17e5   : > { %v5065_v45 = vpop.eup %5064 }
0x17e6   : > { %v5067_v42 = vpop.eup %5066  ;;  %v3626_v28 = vadd.f32 1.0, %v5065_v45 }
0x17e7   : > { %v3632_v4 = vadd.f32 1.0, %v5067_v42  ;;  %v5069_v38 = vpop.eup %5068 }
0x17e8   : > { %5072 = vrcp.f32 %v3626_v28  ;;  %v5071_v51 = vpop.eup %5070  ;;  %v3639_v22 = vadd.f32 1.0, %v5069_v38 }
0x17e9   : > { %5074 = vrcp.f32 %v3632_v4 }
0x17ea   : > { %5076 = vrcp.f32 %v3639_v22 }
0x17f2   : > { %v5073_v47 = vpop.eup %5072 }
0x17f3   : > { %v5075_v25 = vpop.eup %5074  ;;  %v3643_v21 = vmul.f32 %v5073_v47, %v5071_v51 }
0x17f4   : > { %v3642_v61 = vmul.f32 %v5075_v25, %v7555_v10  ;;  %v5077_v27 = vpop.eup %5076 }
0x17f6   : > { %v7601_v7 = vadd.f32 %v3643_v21, %v3642_v61 }
0x17f8   : > { %5078 = vtanh.f32 %v7601_v7 }
0x1802   : > { %v5079_v39 = vpop.eup %5078 }
0x1803   : > { %v3646_v30 = vmul.f32 %v5079_v39, %v5077_v27 }
0x1805   : > { %v3647_v43 = vpack.c.bf16 %v3646_v30, %v3646_v30 }
0x1807   : > { %3681 = vmatmul.mubr.bf16.vlgmr.msra.gmra.mrb[140].mxu0 %v3647_v43  ;;  %3722 = vmatmul.mubr.bf16.vlgmr.msra.gmra.mrb[156].mxu1 %v3647_v43 }
0x1808   : > { %3760 = vmatpush1.bf16.msra.mxu0 %v7176_v62  ;;  %3801 = vmatpush1.bf16.msra.mxu1 %v7182_v8  ;;  %v7639_v62 = vld [vmem:[%s8034_s2 + $0x4] ss:$16 sps:$4 sm:$0xff]  }
0x1809   : > { %3761 = vmatprep.subr.bf16.mxu0 %v7188_v35  ;;  %3802 = vmatprep.subr.bf16.mxu1 %v7194_v53  ;;  %v8222_v8 = vld [vmem:[#allocation86_spill] sm:$0xff]  ;;  %v8223_v53 = vld [vmem:[#allocation95_spill] sm:$0xff] }
0x180a   : > { %3791 = vmatprep.mubr.bf16.mxu0 %v8142_v32  ;;  %3832 = vmatprep.mubr.bf16.mxu1 %v8142_v32  ;;  %v706_v35 = vadd.f32 %v8222_v8, %v6061_v40  ;;  %v7658_v8 = vld [vmem:[%s8034_s2] ss:$16 sps:$4 sm:$0xff]  }
0x180c   : > { %3762 = vmatpush1.bf16.msra.mxu0 %v7202_v52  ;;  %3803 = vmatpush1.bf16.msra.mxu1 %v7208_v55  ;;  %v879_v52 = vadd.f32 %v8223_v53, %v6099_v41  ;;  %v8224_v55 = vld [vmem:[#allocation88_spill] sm:$0xff]  ;;  %v7676_v53 = vld [vmem:[%s8034_s2 + $0x2c] ss:$16 sps:$4 sm:$0xff]  }
0x180d   : > { %3763 = vmatprep.subr.bf16.mxu0 %v7214_v56  ;;  %3804 = vmatprep.subr.bf16.mxu1 %v7296_v26  ;;  %v708_v56 = vadd.f32 %v8224_v55, %v6063_v13  ;;  %v7690_v55 = vld [vmem:[%s8034_s2 + $0x28] ss:$16 sps:$4 sm:$0xff]  }
0x1810   : > { %3764 = vmatpush1.bf16.msra.mxu0 %v7221_v59  ;;  %3805 = vmatpush1.bf16.msra.mxu1 %v7303_v5  ;;  %v8225_v59 = vld [vmem:[#allocation96_spill] sm:$0xff] }
0x1811   : > { %3765 = vmatprep.subr.bf16.mxu0 %v7228_v60  ;;  %3806 = vmatprep.subr.bf16.mxu1 %v7310_v11  ;;  %v881_v60 = vadd.f32 %v8225_v59, %v6103_v23  ;;  %v7703_v59 = vld [vmem:[%s8034_s2 + $0x40] ss:$16 sps:$4 sm:$0xff]  }
0x1814   : > { %3766 = vmatpush1.bf16.msra.mxu0 %v7235_v29  ;;  %3807 = vmatpush1.bf16.msra.mxu1 %v7317_v0 }
0x1815   : > { %3767 = vmatprep.subr.bf16.mxu0 %v7242_v33  ;;  %3808 = vmatprep.subr.bf16.mxu1 %v7324_v49 }
0x1818   : > { %3768 = vmatpush1.bf16.msra.mxu0 %v7249_v63  ;;  %3809 = vmatpush1.bf16.msra.mxu1 %v7331_v9 }
0x1819   : > { %3769 = vmatprep.subr.bf16.mxu0 %v7337_v3  ;;  %3810 = vmatprep.subr.bf16.mxu1 %v7343_v6 }
0x181c   : > { %3770 = vmatpush1.bf16.msra.mxu0 %v7349_v48  ;;  %3811 = vmatpush1.bf16.msra.mxu1 %v7355_v34 }
0x181d   : > { %3771 = vmatprep.subr.bf16.mxu0 %v7361_v57  ;;  %3812 = vmatprep.subr.bf16.mxu1 %v7367_v12 }
0x1820   : > { %3772 = vmatpush1.bf16.msra.mxu0 %v7373_v14  ;;  %3813 = vmatpush1.bf16.msra.mxu1 %v7379_v15 }
0x1821   : > { %3773 = vmatprep.subr.bf16.mxu0 %v7385_v16  ;;  %3814 = vmatprep.subr.bf16.mxu1 %v7391_v17 }
0x1824   : > { %3774 = vmatpush1.bf16.msra.mxu0 %v7397_v19  ;;  %3815 = vmatpush1.bf16.msra.mxu1 %v7403_v20 }
0x1825   : > { %3870 = vmatprep.subr.bf16.mxu0 %v7639_v62  ;;  %3911 = vmatprep.subr.bf16.mxu1 %v7269_v1 }
0x18da   : > { %v3682_v29 = vpop.f32.mrb[140].mxu0  ;;  %v3723_v33 = vpop.f32.mrb[156].mxu1 }
0x18db   : > { %v3730_v63 = vadd.f32 %v3682_v29, %v706_v35  ;;  %v3732_v10 = vadd.f32 %v3723_v33, %v879_v52  ;;  %v3684_v31 = vpop.f32.mrb[141].mxu0  ;;  %v3725_v46 = vpop.f32.mrb[157].mxu1  ;;  %v7670_v35 = vld [vmem:[%s8034_s2 + $0x24] ss:$16 sps:$4 sm:$0xff]   ;;  %v7684_v52 = vld [vmem:[%s8034_s2 + $0x20] ss:$16 sps:$4 sm:$0xff]  }
0x18dc   : > { %v3731_v36 = vadd.f32 %v3684_v31, %v708_v56  ;;  %v3733_v1 = vadd.f32 %v3725_v46, %v881_v60  ;;  %v3686_v54 = vpop.f32.mrb[142].mxu0  ;;  %v3727_v50 = vpop.f32.mrb[158].mxu1  ;;  %v7696_v56 = vld [vmem:[%s8034_s2 + $0x44] ss:$16 sps:$4 sm:$0xff]  }
0x18dd   : > { %v4539_v37 = vmul.f32 -1.442695, %v3730_v63  ;;  %v3687_v18 = vpop.f32.mrb[143].mxu0  ;;  %v3728_v2 = vpop.f32.mrb[159].mxu1  ;;  %v7710_v60 = vld [vmem:[%s8034_s2 + $0x64] ss:$16 sps:$4 sm:$0xff]  }
0x18de   : > { %v4540_v58 = vmul.f32 -1.442695, %v3731_v36  ;;  %v4541_v44 = vmul.f32 -1.442695, %v3733_v1 }
0x18df   : > { %5080 = vpow2.f32 %v4539_v37 }
0x18e0   : > { %5082 = vpow2.f32 %v4540_v58 }
0x18e1   : > { %5084 = vpow2.f32 %v4541_v44 }
0x18e2   : > { %5086 = vtanh.f32 %v3732_v10 }
0x18e9   : > { %v5081_v24 = vpop.eup %5080 }
0x18ea   : > { %v5083_v45 = vpop.eup %5082  ;;  %v3737_v42 = vadd.f32 1.0, %v5081_v24 }
0x18eb   : > { %v3743_v28 = vadd.f32 1.0, %v5083_v45  ;;  %v5085_v4 = vpop.eup %5084 }
0x18ec   : > { %5088 = vrcp.f32 %v3737_v42  ;;  %v5087_v38 = vpop.eup %5086  ;;  %v3750_v21 = vadd.f32 1.0, %v5085_v4 }
0x18ed   : > { %5090 = vrcp.f32 %v3743_v28 }
0x18ee   : > { %5092 = vrcp.f32 %v3750_v21 }
0x18f6   : > { %v5089_v51 = vpop.eup %5088 }
0x18f7   : > { %v5091_v47 = vpop.eup %5090  ;;  %v3754_v25 = vmul.f32 %v5089_v51, %v5087_v38 }
0x18f8   : > { %v3753_v22 = vmul.f32 %v5091_v47, %v7601_v7  ;;  %v5093_v27 = vpop.eup %5092  ;;  %v7664_v7 = vld [vmem:[%s8034_s2 + $0x8] ss:$16 sps:$4 sm:$0xff]  }
0x18fa   : > { %v7652_v61 = vadd.f32 %v3754_v25, %v3753_v22  ;;  %v7778_v22 = vld [vmem:[%s8034_s2 + $0x4c] ss:$16 sps:$4 sm:$0xff]  }
0x18fc   : > { %5094 = vtanh.f32 %v7652_v61 }
0x1906   : > { %v5095_v39 = vpop.eup %5094 }
0x1907   : > { %v3757_v30 = vmul.f32 %v5095_v39, %v5093_v27  ;;  %v7792_v27 = vld [vmem:[%s8034_s2 + $0x6c] ss:$16 sps:$4 sm:$0xff]   ;;  %v7799_v39 = vld [vmem:[%s8034_s2 + $0x68] ss:$16 sps:$4 sm:$0xff]  }
0x1909   : > { %v3758_v43 = vpack.c.bf16 %v3757_v30, %v3757_v30  ;;  %v7806_v30 = vld [vmem:[%s8034_s2 + $0x8c] ss:$16 sps:$4 sm:$0xff]  }
0x190b   : > { %3792 = vmatmul.mubr.bf16.vlgmr.msra.gmra.mrb[144].mxu0 %v3758_v43  ;;  %3833 = vmatmul.mubr.bf16.vlgmr.msra.gmra.mrb[160].mxu1 %v3758_v43  ;;  %v7813_v43 = vld [vmem:[%s8034_s2 + $0x88] ss:$16 sps:$4 sm:$0xff]  }
0x190c   : > { %3871 = vmatpush1.bf16.msra.mxu0 %v7658_v8  ;;  %3912 = vmatpush1.bf16.msra.mxu1 %v7664_v7 }
0x190d   : > { %3872 = vmatprep.subr.bf16.mxu0 %v7670_v35  ;;  %3913 = vmatprep.subr.bf16.mxu1 %v7676_v53 }
0x190e   : > { %3902 = vmatprep.mubr.bf16.mxu0 %v8142_v32  ;;  %3943 = vmatprep.mubr.bf16.mxu1 %v8142_v32 }
0x1910   : > { %3873 = vmatpush1.bf16.msra.mxu0 %v7684_v52  ;;  %3914 = vmatpush1.bf16.msra.mxu1 %v7690_v55 }
0x1911   : > { %3874 = vmatprep.subr.bf16.mxu0 %v7696_v56  ;;  %3915 = vmatprep.subr.bf16.mxu1 %v7296_v26  ;;  %v7717_v26 = vld [vmem:[%s8034_s2 + $0x60] ss:$16 sps:$4 sm:$0xff]  }
0x1914   : > { %3875 = vmatpush1.bf16.msra.mxu0 %v7703_v59  ;;  %3916 = vmatpush1.bf16.msra.mxu1 %v7303_v5  ;;  %v7724_v5 = vld [vmem:[%s8034_s2 + $0x84] ss:$16 sps:$4 sm:$0xff]  }
0x1915   : > { %3876 = vmatprep.subr.bf16.mxu0 %v7710_v60  ;;  %3917 = vmatprep.subr.bf16.mxu1 %v7310_v11  ;;  %v7731_v11 = vld [vmem:[%s8034_s2 + $0x80] ss:$16 sps:$4 sm:$0xff]  }
0x1918   : > { %3877 = vmatpush1.bf16.msra.mxu0 %v7717_v26  ;;  %3918 = vmatpush1.bf16.msra.mxu1 %v7317_v0  ;;  %v7751_v0 = vld [vmem:[%s8034_s2 + $0xc] ss:$16 sps:$4 sm:$0xff]  }
0x1919   : > { %3878 = vmatprep.subr.bf16.mxu0 %v7724_v5  ;;  %3919 = vmatprep.subr.bf16.mxu1 %v7324_v49  ;;  %v8226_v49 = vld [vmem:[#allocation6_spill] sm:$0xff] }
0x191c   : > { %3879 = vmatpush1.bf16.msra.mxu0 %v7731_v11  ;;  %3920 = vmatpush1.bf16.msra.mxu1 %v7331_v9  ;;  %v712_v9 = vadd.f32 %v8226_v49, %v6061_v40  ;;  %v7819_v49 = vld [vmem:[%s8034_s2 + $0xa4] ss:$16 sps:$4 sm:$0xff]  }
0x191d   : > { %3880 = vmatprep.subr.bf16.mxu0 %v7337_v3  ;;  %3921 = vmatprep.subr.bf16.mxu1 %v7343_v6  ;;  %v8227_v3 = vld [vmem:[#allocation97_spill] sm:$0xff] }
0x191e   : > { %v885_v6 = vadd.f32 %v8227_v3, %v6099_v41  ;;  %v7831_v3 = vld [vmem:[%s8034_s2 + $0xa0] ss:$16 sps:$4 sm:$0xff]  }
0x1920   : > { %3881 = vmatpush1.bf16.msra.mxu0 %v7349_v48  ;;  %3922 = vmatpush1.bf16.msra.mxu1 %v7355_v34  ;;  %v8228_v48 = vld [vmem:[#allocation7_spill] sm:$0xff] }
0x1921   : > { %3882 = vmatprep.subr.bf16.mxu0 %v7361_v57  ;;  %3923 = vmatprep.subr.bf16.mxu1 %v7367_v12  ;;  %v714_v34 = vadd.f32 %v8228_v48, %v6063_v13  ;;  %v8229_v57 = vld [vmem:[#allocation98_spill] sm:$0xff] }
0x1922   : > { %v887_v12 = vadd.f32 %v8229_v57, %v6103_v23  ;;  %v7843_v48 = vld [vmem:[%s8034_s2 + $0xc4] ss:$16 sps:$4 sm:$0xff]   ;;  %v7855_v57 = vld [vmem:[%s8034_s2 + $0xc0] ss:$16 sps:$4 sm:$0xff]  }
0x1924   : > { %3883 = vmatpush1.bf16.msra.mxu0 %v7373_v14  ;;  %3924 = vmatpush1.bf16.msra.mxu1 %v7379_v15 }
0x1925   : > { %3884 = vmatprep.subr.bf16.mxu0 %v7385_v16  ;;  %3925 = vmatprep.subr.bf16.mxu1 %v7391_v17 }
0x1928   : > { %3885 = vmatpush1.bf16.msra.mxu0 %v7397_v19  ;;  %3926 = vmatpush1.bf16.msra.mxu1 %v7403_v20 }
0x1929   : > { %3981 = vmatprep.subr.bf16.mxu0 %v7639_v62  ;;  %4022 = vmatprep.subr.bf16.mxu1 %v7751_v0 }
0x19de   : > { %v3793_v14 = vpop.f32.mrb[144].mxu0  ;;  %v3834_v15 = vpop.f32.mrb[160].mxu1 }
0x19df   : > { %v3841_v16 = vadd.f32 %v3793_v14, %v712_v9  ;;  %v3843_v17 = vadd.f32 %v3834_v15, %v885_v6  ;;  %v3795_v19 = vpop.f32.mrb[145].mxu0  ;;  %v3836_v20 = vpop.f32.mrb[161].mxu1  ;;  %v7825_v9 = vld [vmem:[%s8034_s2 + $0xac] ss:$16 sps:$4 sm:$0xff]   ;;  %v7837_v6 = vld [vmem:[%s8034_s2 + $0xa8] ss:$16 sps:$4 sm:$0xff]  }
0x19e0   : > { %v3842_v29 = vadd.f32 %v3795_v19, %v714_v34  ;;  %v3844_v33 = vadd.f32 %v3836_v20, %v887_v12  ;;  %v3797_v63 = vpop.f32.mrb[146].mxu0  ;;  %v3838_v10 = vpop.f32.mrb[162].mxu1  ;;  %v7849_v34 = vld [vmem:[%s8034_s2 + $0xcc] ss:$16 sps:$4 sm:$0xff]   ;;  %v7861_v12 = vld [vmem:[%s8034_s2 + $0xc8] ss:$16 sps:$4 sm:$0xff]  }
0x19e1   : > { %v4542_v31 = vmul.f32 -1.442695, %v3841_v16  ;;  %v3798_v46 = vpop.f32.mrb[147].mxu0  ;;  %v3839_v36 = vpop.f32.mrb[163].mxu1  ;;  %v7867_v14 = vld [vmem:[%s8034_s2 + $0xe4] ss:$16 sps:$4 sm:$0xff]  }
0x19e2   : > { %v4543_v1 = vmul.f32 -1.442695, %v3842_v29  ;;  %v4544_v54 = vmul.f32 -1.442695, %v3844_v33  ;;  %v7873_v15 = vld [vmem:[%s8034_s2 + $0xec] ss:$16 sps:$4 sm:$0xff]  }
0x19e3   : > { %5096 = vpow2.f32 %v4542_v31  ;;  %v7879_v16 = vld [vmem:[%s8034_s2 + $0xe0] ss:$16 sps:$4 sm:$0xff]   ;;  %v8231_v29 = vld [vmem:[#allocation99_spill] sm:$0xff]  ;;  %v8232_v63 = vld [vmem:[#allocation9_spill] sm:$0xff] }
0x19e4   : > { %5098 = vpow2.f32 %v4543_v1  ;;  %v8230_v19 = vld [vmem:[#allocation8_spill] sm:$0xff]  ;;  %v889_v33 = vadd.f32 %v8231_v29, %v6099_v41  ;;  %v718_v10 = vadd.f32 %v8232_v63, %v6063_v13 }
0x19e5   : > { %5100 = vpow2.f32 %v4544_v54  ;;  %v716_v20 = vadd.f32 %v8230_v19, %v6061_v40  ;;  %v8233_v31 = vld [vmem:[#allocation100_spill] sm:$0xff] }
0x19e6   : > { %5102 = vtanh.f32 %v3843_v17  ;;  %v7885_v17 = vld [vmem:[%s8034_s2 + $0xe8] ss:$16 sps:$4 sm:$0xff]   ;;  %v891_v46 = vadd.f32 %v8233_v31, %v6103_v23 }
0x19ed   : > { %v5097_v50 = vpop.eup %5096 }
0x19ee   : > { %v5099_v37 = vpop.eup %5098  ;;  %v3848_v18 = vadd.f32 1.0, %v5097_v50 }
0x19ef   : > { %v3854_v2 = vadd.f32 1.0, %v5099_v37  ;;  %v5101_v58 = vpop.eup %5100 }
0x19f0   : > { %5104 = vrcp.f32 %v3848_v18  ;;  %v5103_v44 = vpop.eup %5102  ;;  %v3861_v28 = vadd.f32 1.0, %v5101_v58 }
0x19f1   : > { %5106 = vrcp.f32 %v3854_v2 }
0x19f2   : > { %5108 = vrcp.f32 %v3861_v28 }
0x19fa   : > { %v5105_v24 = vpop.eup %5104 }
0x19fb   : > { %v5107_v45 = vpop.eup %5106  ;;  %v3865_v42 = vmul.f32 %v5105_v24, %v5103_v44 }
0x19fc   : > { %v3864_v4 = vmul.f32 %v5107_v45, %v7652_v61  ;;  %v5109_v51 = vpop.eup %5108  ;;  %v7785_v61 = vld [vmem:[%s8034_s2 + $0x48] ss:$16 sps:$4 sm:$0xff]  }
0x19fe   : > { %v7763_v38 = vadd.f32 %v3865_v42, %v3864_v4 }
0x1a00   : > { %5110 = vtanh.f32 %v7763_v38 }
0x1a0a   : > { %v5111_v47 = vpop.eup %5110 }
0x1a0b   : > { %v3868_v25 = vmul.f32 %v5111_v47, %v5109_v51 }
0x1a0d   : > { %v3869_v21 = vpack.c.bf16 %v3868_v25, %v3868_v25 }
0x1a0f   : > { %3903 = vmatmul.mubr.bf16.vlgmr.msra.gmra.mrb[148].mxu0 %v3869_v21  ;;  %3944 = vmatmul.mubr.bf16.vlgmr.msra.gmra.mrb[164].mxu1 %v3869_v21 }
0x1a10   : > { %3982 = vmatpush1.bf16.msra.mxu0 %v7658_v8  ;;  %4023 = vmatpush1.bf16.msra.mxu1 %v7664_v7 }
0x1a11   : > { %3983 = vmatprep.subr.bf16.mxu0 %v7670_v35  ;;  %4024 = vmatprep.subr.bf16.mxu1 %v7676_v53 }
0x1a12   : > { %4013 = vmatprep.mubr.bf16.mxu0 %v8142_v32  ;;  %4054 = vmatprep.mubr.bf16.mxu1 %v8142_v32 }
0x1a14   : > { %3984 = vmatpush1.bf16.msra.mxu0 %v7684_v52  ;;  %4025 = vmatpush1.bf16.msra.mxu1 %v7690_v55 }
0x1a15   : > { %3985 = vmatprep.subr.bf16.mxu0 %v7696_v56  ;;  %4026 = vmatprep.subr.bf16.mxu1 %v7778_v22 }
0x1a18   : > { %3986 = vmatpush1.bf16.msra.mxu0 %v7703_v59  ;;  %4027 = vmatpush1.bf16.msra.mxu1 %v7785_v61 }
0x1a19   : > { %3987 = vmatprep.subr.bf16.mxu0 %v7710_v60  ;;  %4028 = vmatprep.subr.bf16.mxu1 %v7792_v27 }
0x1a1c   : > { %3988 = vmatpush1.bf16.msra.mxu0 %v7717_v26  ;;  %4029 = vmatpush1.bf16.msra.mxu1 %v7799_v39 }
0x1a1d   : > { %3989 = vmatprep.subr.bf16.mxu0 %v7724_v5  ;;  %4030 = vmatprep.subr.bf16.mxu1 %v7806_v30 }
0x1a20   : > { %3990 = vmatpush1.bf16.msra.mxu0 %v7731_v11  ;;  %4031 = vmatpush1.bf16.msra.mxu1 %v7813_v43 }
0x1a21   : > { %3991 = vmatprep.subr.bf16.mxu0 %v7819_v49  ;;  %4032 = vmatprep.subr.bf16.mxu1 %v7825_v9 }
0x1a24   : > { %3992 = vmatpush1.bf16.msra.mxu0 %v7831_v3  ;;  %4033 = vmatpush1.bf16.msra.mxu1 %v7837_v6 }
0x1a25   : > { %3993 = vmatprep.subr.bf16.mxu0 %v7843_v48  ;;  %4034 = vmatprep.subr.bf16.mxu1 %v7849_v34 }
0x1a28   : > { %3994 = vmatpush1.bf16.msra.mxu0 %v7855_v57  ;;  %4035 = vmatpush1.bf16.msra.mxu1 %v7861_v12 }
0x1a29   : > { %3995 = vmatprep.subr.bf16.mxu0 %v7867_v14  ;;  %4036 = vmatprep.subr.bf16.mxu1 %v7873_v15 }
0x1a2c   : > { %3996 = vmatpush1.bf16.msra.mxu0 %v7879_v16  ;;  %4037 = vmatpush1.bf16.msra.mxu1 %v7885_v17 }
0x1a2d   : > { %4092 = vmatprep.subr.bf16.mxu0 %v7639_v62  ;;  %4133 = vmatprep.subr.bf16.mxu1 %v7751_v0 }
0x1ae2   : > { %v3904_v36 = vpop.f32.mrb[148].mxu0  ;;  %v3945_v1 = vpop.f32.mrb[164].mxu1 }
0x1ae3   : > { %v3952_v54 = vadd.f32 %v3904_v36, %v716_v20  ;;  %v3954_v50 = vadd.f32 %v3945_v1, %v889_v33  ;;  %v3906_v37 = vpop.f32.mrb[149].mxu0  ;;  %v3947_v62 = vpop.f32.mrb[165].mxu1 }
0x1ae4   : > { %v3953_v18 = vadd.f32 %v3906_v37, %v718_v10  ;;  %v3955_v0 = vadd.f32 %v3947_v62, %v891_v46  ;;  %v3908_v2 = vpop.f32.mrb[150].mxu0  ;;  %v3949_v58 = vpop.f32.mrb[166].mxu1 }
0x1ae5   : > { %v4545_v44 = vmul.f32 -1.442695, %v3952_v54  ;;  %v3909_v24 = vpop.f32.mrb[151].mxu0  ;;  %v3950_v45 = vpop.f32.mrb[167].mxu1 }
0x1ae6   : > { %v4546_v42 = vmul.f32 -1.442695, %v3953_v18  ;;  %v4547_v28 = vmul.f32 -1.442695, %v3955_v0  ;;  %v5353_v24 = vmov 0.0   ;;  %v4705_v45 = vld [vmem:[%s8036_s4 + $0x8] sm:$0xff]  }
0x1ae7   : > { %5112 = vpow2.f32 %v4545_v44  ;;  %v4704_v44 = vld [vmem:[%s8036_s4] sm:$0xff]  }
0x1ae8   : > { %5114 = vpow2.f32 %v4546_v42  ;;  %v4706_v42 = vld [vmem:[%s8036_s4 + $0x10] sm:$0xff]  }
0x1ae9   : > { %5116 = vpow2.f32 %v4547_v28  ;;  %v4707_v28 = vld [vmem:[%s8036_s4 + $0x18] sm:$0xff]  }
0x1aea   : > { %5118 = vtanh.f32 %v3954_v50 }
0x1af1   : > { %v5113_v4 = vpop.eup %5112 }
0x1af2   : > { %v5115_v51 = vpop.eup %5114  ;;  %v3959_v47 = vadd.f32 1.0, %v5113_v4  ;;  %v4708_v4 = vld [vmem:[%s8036_s4 + $0x20] sm:$0xff]  }
0x1af3   : > { %v3965_v25 = vadd.f32 1.0, %v5115_v51  ;;  %v5117_v21 = vpop.eup %5116  ;;  %v4709_v51 = vld [vmem:[%s8036_s4 + $0x28] sm:$0xff]  }
0x1af4   : > { %5120 = vrcp.f32 %v3959_v47  ;;  %v5119_v19 = vpop.eup %5118  ;;  %v3972_v63 = vadd.f32 1.0, %v5117_v21  ;;  %v4710_v47 = vld [vmem:[%s8036_s4 + $0x30] sm:$0xff]   ;;  %v8238_v21 = vld [vmem:[#allocation12_spill] sm:$0xff] }
0x1af5   : > { %5122 = vrcp.f32 %v3965_v25  ;;  %v4711_v25 = vld [vmem:[%s8036_s4 + $0x38] sm:$0xff]  }
0x1af6   : > { %5124 = vrcp.f32 %v3972_v63 }
0x1afe   : > { %v5121_v20 = vpop.eup %5120 }
0x1aff   : > { %v5123_v29 = vpop.eup %5122  ;;  %v3976_v33 = vmul.f32 %v5121_v20, %v5119_v19  ;;  %v726_v19 = vadd.f32 %v8238_v21, %v6061_v40  ;;  %v8239_v20 = vld [vmem:[#allocation103_spill] sm:$0xff] }
0x1b00   : > { %v3975_v10 = vmul.f32 %v5123_v29, %v7763_v38  ;;  %v5125_v46 = vpop.eup %5124  ;;  %v899_v29 = vadd.f32 %v8239_v20, %v6099_v41 }
0x1b02   : > { %v7899_v31 = vadd.f32 %v3976_v33, %v3975_v10  ;;  %v8240_v33 = vld [vmem:[#allocation13_spill] sm:$0xff]  ;;  %v8241_v10 = vld [vmem:[#allocation104_spill] sm:$0xff] }
0x1b03   : > { %v728_v63 = vadd.f32 %v8240_v33, %v6063_v13 }
0x1b04   : > { %5126 = vtanh.f32 %v7899_v31 }
0x1b0e   : > { %v5127_v36 = vpop.eup %5126 }
0x1b0f   : > { %v3979_v1 = vmul.f32 %v5127_v36, %v5125_v46 }
0x1b11   : > { %v3980_v54 = vpack.c.bf16 %v3979_v1, %v3979_v1 }
0x1b13   : > { %4014 = vmatmul.mubr.bf16.vlgmr.msra.gmra.mrb[152].mxu0 %v3980_v54  ;;  %4055 = vmatmul.mubr.bf16.vlgmr.msra.gmra.mrb[168].mxu1 %v3980_v54 }
0x1b14   : > { %4093 = vmatpush1.bf16.msra.mxu0 %v7658_v8  ;;  %4134 = vmatpush1.bf16.msra.mxu1 %v7664_v7  ;;  %v8235_v7 = vld [vmem:[#allocation101_spill] sm:$0xff] }
0x1b15   : > { %4094 = vmatprep.subr.bf16.mxu0 %v7670_v35  ;;  %4135 = vmatprep.subr.bf16.mxu1 %v7676_v53  ;;  %v895_v35 = vadd.f32 %v8235_v7, %v6099_v41  ;;  %v8236_v53 = vld [vmem:[#allocation11_spill] sm:$0xff] }
0x1b16   : > { %4124 = vmatprep.mubr.bf16.mxu0 %v8142_v32  ;;  %4165 = vmatprep.mubr.bf16.mxu1 %v8142_v32  ;;  %v8234_v32 = vld [vmem:[#allocation10_spill] sm:$0xff] }
0x1b17   : > { %v722_v8 = vadd.f32 %v8234_v32, %v6061_v40 }
0x1b18   : > { %4095 = vmatpush1.bf16.msra.mxu0 %v7684_v52  ;;  %4136 = vmatpush1.bf16.msra.mxu1 %v7690_v55  ;;  %v724_v52 = vadd.f32 %v8236_v53, %v6063_v13  ;;  %v8237_v55 = vld [vmem:[#allocation102_spill] sm:$0xff] }
0x1b19   : > { %4096 = vmatprep.subr.bf16.mxu0 %v7696_v56  ;;  %4137 = vmatprep.subr.bf16.mxu1 %v7778_v22  ;;  %v897_v56 = vadd.f32 %v8237_v55, %v6103_v23 }
0x1b1c   : > { %4097 = vmatpush1.bf16.msra.mxu0 %v7703_v59  ;;  %4138 = vmatpush1.bf16.msra.mxu1 %v7785_v61 }
0x1b1d   : > { %4098 = vmatprep.subr.bf16.mxu0 %v7710_v60  ;;  %4139 = vmatprep.subr.bf16.mxu1 %v7792_v27 }
0x1b20   : > { %4099 = vmatpush1.bf16.msra.mxu0 %v7717_v26  ;;  %4140 = vmatpush1.bf16.msra.mxu1 %v7799_v39 }
0x1b21   : > { %4100 = vmatprep.subr.bf16.mxu0 %v7724_v5  ;;  %4141 = vmatprep.subr.bf16.mxu1 %v7806_v30 }
0x1b24   : > { %4101 = vmatpush1.bf16.msra.mxu0 %v7731_v11  ;;  %4142 = vmatpush1.bf16.msra.mxu1 %v7813_v43 }
0x1b25   : > { %4102 = vmatprep.subr.bf16.mxu0 %v7819_v49  ;;  %4143 = vmatprep.subr.bf16.mxu1 %v7825_v9 }
0x1b28   : > { %4103 = vmatpush1.bf16.msra.mxu0 %v7831_v3  ;;  %4144 = vmatpush1.bf16.msra.mxu1 %v7837_v6 }
0x1b29   : > { %4104 = vmatprep.subr.bf16.mxu0 %v7843_v48  ;;  %4145 = vmatprep.subr.bf16.mxu1 %v7849_v34 }
0x1b2c   : > { %4105 = vmatpush1.bf16.msra.mxu0 %v7855_v57  ;;  %4146 = vmatpush1.bf16.msra.mxu1 %v7861_v12 }
0x1b2d   : > { %4106 = vmatprep.subr.bf16.mxu0 %v7867_v14  ;;  %4147 = vmatprep.subr.bf16.mxu1 %v7873_v15 }
0x1b30   : > { %4107 = vmatpush1.bf16.msra.mxu0 %v7879_v16  ;;  %4148 = vmatpush1.bf16.msra.mxu1 %v7885_v17 }
0x1b31   : > { %4576 = vmatprep.subr.bf16.mxu0 %v5353_v24 }
0x1be6   : > { %v4015_v59 = vpop.f32.mrb[152].mxu0  ;;  %v4056_v60 = vpop.f32.mrb[168].mxu1 }
0x1be7   : > { %v4063_v26 = vadd.f32 %v4015_v59, %v722_v8  ;;  %v4065_v5 = vadd.f32 %v4056_v60, %v895_v35  ;;  %v4017_v11 = vpop.f32.mrb[153].mxu0  ;;  %v4058_v38 = vpop.f32.mrb[169].mxu1 }
0x1be8   : > { %v4064_v22 = vadd.f32 %v4017_v11, %v724_v52  ;;  %v4066_v61 = vadd.f32 %v4058_v38, %v897_v56  ;;  %v4019_v27 = vpop.f32.mrb[154].mxu0  ;;  %v4060_v39 = vpop.f32.mrb[170].mxu1 }
0x1be9   : > { %v4548_v30 = vmul.f32 -1.442695, %v4063_v26  ;;  %v4020_v43 = vpop.f32.mrb[155].mxu0  ;;  %v4061_v49 = vpop.f32.mrb[171].mxu1 }
0x1bea   : > { %v4549_v9 = vmul.f32 -1.442695, %v4064_v22  ;;  %v4550_v3 = vmul.f32 -1.442695, %v4066_v61 }
0x1beb   : > { %5128 = vpow2.f32 %v4548_v30 }
0x1bec   : > { %5130 = vpow2.f32 %v4549_v9 }
0x1bed   : > { %5132 = vpow2.f32 %v4550_v3 }
0x1bee   : > { %5134 = vtanh.f32 %v4065_v5 }
0x1bf5   : > { %v5129_v6 = vpop.eup %5128 }
0x1bf6   : > { %v5131_v48 = vpop.eup %5130  ;;  %v4070_v34 = vadd.f32 1.0, %v5129_v6  ;;  %v4554_v6 = vld [vmem:[%s8037_s5] ss:$0 sm:$0xff] }
0x1bf7   : > { %v4076_v57 = vadd.f32 1.0, %v5131_v48  ;;  %v5133_v12 = vpop.eup %5132 }
0x1bf8   : > { %5136 = vrcp.f32 %v4070_v34  ;;  %v5135_v14 = vpop.eup %5134  ;;  %v4083_v50 = vadd.f32 1.0, %v5133_v12 }
0x1bf9   : > { %5138 = vrcp.f32 %v4076_v57 }
0x1bfa   : > { %5140 = vrcp.f32 %v4083_v50 }
0x1c02   : > { %v5137_v15 = vpop.eup %5136 }
0x1c03   : > { %v5139_v16 = vpop.eup %5138  ;;  %v4087_v17 = vmul.f32 %v5137_v15, %v5135_v14 }
0x1c04   : > { %v4086_v37 = vmul.f32 %v5139_v16, %v7899_v31  ;;  %v5141_v18 = vpop.eup %5140  ;;  %v901_v31 = vadd.f32 %v8241_v10, %v6103_v23 }
0x1c06   : > { %v7943_v62 = vadd.f32 %v4087_v17, %v4086_v37 }
0x1c08   : > { %5142 = vtanh.f32 %v7943_v62 }
0x1c12   : > { %v5143_v0 = vpop.eup %5142 }
0x1c13   : > { %v4090_v2 = vmul.f32 %v5143_v0, %v5141_v18 }
0x1c15   : > { %v4091_v58 = vpack.c.bf16 %v4090_v2, %v4090_v2 }
0x1c17   : > { %4125 = vmatmul.mubr.bf16.vlgmr.msra.gmra.mrb[156].mxu0 %v4091_v58  ;;  %4166 = vmatmul.mubr.bf16.vlgmr.msra.gmra.mrb[172].mxu1 %v4091_v58 }
0x1c18   : > { %4577 = vmatpush3.bf16.msra.mxu0 %v4704_v44  ;;  %4592 = vmatprep.mubr.msk.bf16.mxu0 %vm5354_vm2, %v5353_v24 }
0x1c19   : > { %4578 = vmatprep.subr.bf16.mxu0 %v5353_v24 }
0x1c1c   : > { %4579 = vmatpush3.bf16.msra.mxu0 %v4705_v45 }
0x1c1d   : > { %4580 = vmatprep.subr.bf16.mxu0 %v5353_v24 }
0x1c20   : > { %4581 = vmatpush3.bf16.msra.mxu0 %v4706_v42 }
0x1c21   : > { %4582 = vmatprep.subr.bf16.mxu0 %v5353_v24 }
0x1c24   : > { %4583 = vmatpush3.bf16.msra.mxu0 %v4707_v28 }
0x1c25   : > { %4584 = vmatprep.subr.bf16.mxu0 %v5353_v24 }
0x1c28   : > { %4585 = vmatpush3.bf16.msra.mxu0 %v4708_v4 }
0x1c29   : > { %4586 = vmatprep.subr.bf16.mxu0 %v5353_v24 }
0x1c2c   : > { %4587 = vmatpush3.bf16.msra.mxu0 %v4709_v51 }
0x1c2d   : > { %4588 = vmatprep.subr.bf16.mxu0 %v5353_v24 }
0x1c30   : > { %4589 = vmatpush3.bf16.msra.mxu0 %v4710_v47 }
0x1c31   : > { %4590 = vmatprep.subr.bf16.mxu0 %v5353_v24 }
0x1c34   : > { %4591 = vmatpush3.bf16.msra.mxu0 %v4711_v25 }
0x1cea   : > { %v4126_v46 = vpop.f32.mrb[156].mxu0  ;;  %v4167_v36 = vpop.f32.mrb[172].mxu1 }
0x1ceb   : > { %v4174_v1 = vadd.f32 %v4126_v46, %v726_v19  ;;  %v4176_v54 = vadd.f32 %v4167_v36, %v899_v29  ;;  %v4128_v32 = vpop.f32.mrb[157].mxu0  ;;  %v4169_v8 = vpop.f32.mrb[173].mxu1 }
0x1cec   : > { %v4175_v7 = vadd.f32 %v4128_v32, %v728_v63  ;;  %v4177_v35 = vadd.f32 %v4169_v8, %v901_v31  ;;  %v4130_v53 = vpop.f32.mrb[158].mxu0  ;;  %v4171_v52 = vpop.f32.mrb[174].mxu1 }
0x1ced   : > { %v4551_v40 = vmul.f32 -1.442695, %v4174_v1  ;;  %v4131_v55 = vpop.f32.mrb[159].mxu0  ;;  %v4172_v56 = vpop.f32.mrb[175].mxu1 }
0x1cee   : > { %v4552_v41 = vmul.f32 -1.442695, %v4175_v7  ;;  %v4553_v13 = vmul.f32 -1.442695, %v4177_v35 }
0x1cef   : > { %5144 = vpow2.f32 %v4551_v40 }
0x1cf0   : > { %5146 = vpow2.f32 %v4552_v41 }
0x1cf1   : > { %5148 = vpow2.f32 %v4553_v13 }
0x1cf2   : > { %5150 = vtanh.f32 %v4176_v54 }
0x1cf9   : > { %v5145_v59 = vpop.eup %5144 }
0x1cfa   : > { %v5147_v60 = vpop.eup %5146  ;;  %v4181_v23 = vadd.f32 1.0, %v5145_v59 }
0x1cfb   : > { %v4187_v26 = vadd.f32 1.0, %v5147_v60  ;;  %v5149_v5 = vpop.eup %5148 }
0x1cfc   : > { %5152 = vrcp.f32 %v4181_v23  ;;  %v5151_v11 = vpop.eup %5150  ;;  %v4194_v27 = vadd.f32 1.0, %v5149_v5 }
0x1cfd   : > { %5154 = vrcp.f32 %v4187_v26 }
0x1cfe   : > { %5156 = vrcp.f32 %v4194_v27 }
0x1d06   : > { %v5153_v38 = vpop.eup %5152 }
0x1d07   : > { %v5155_v22 = vpop.eup %5154  ;;  %v4198_v61 = vmul.f32 %v5153_v38, %v5151_v11 }
0x1d08   : > { %v4197_v39 = vmul.f32 %v5155_v22, %v7943_v62  ;;  %v5157_v43 = vpop.eup %5156 }
0x1d0a   : > { %v4199_v30 = vadd.f32 %v4198_v61, %v4197_v39 }
0x1d0c   : > { %5158 = vtanh.f32 %v4199_v30 }
0x1d16   : > { %v5159_v49 = vpop.eup %5158 }
0x1d17   : > { %v4201_v9 = vmul.f32 %v5159_v49, %v5157_v43 }
0x1d19   : > { %v4202_v3 = vpack.c.bf16 %v4201_v9, %v4201_v9 }
0x1d1b   : > { %4593 = vmatmul.mubr.bf16.vlgmr.msra.gmra.mrb[160].mxu0 %v4202_v3 }
0x1dee   : > { %v4308_v48 = vpop.f32.mrb[160].mxu0 }
0x1def   : > { %v4309_v34 = vadd.f32 %v4554_v6, %v4308_v48  ;;  %v4594_v57 = vpop.f32.mrb[161].mxu0 }
0x1df0   : > { %v4311_v12 = vpop.f32.mrb[162].mxu0 }
0x1df1   : > { %4314 = vst [vmem:[%s391_s17] sm:$0xff] %v4309_v34  ;;  %v4595_v14 = vpop.f32.mrb[163].mxu0 }
0x1df2   : > { %5301 = shalt.err (!%p5298_p5)
}
0x1df3   : > { %s5302_s20 = scalar_lea.hbm %s7988_s26, 128  ;;  %s5306_s14 = scalar_lea.hbm %s8038_s6, 256 }
0x1df4   : > { %p5303_p7 = scmp.ne.s32.totalorder %s7988_s26, %s5302_s20  ;;  %p5307_p12 = scmp.lt.u32.totalorder %s7988_s26, %s8038_s6 }
0x1df5   : > { %p5308_p13 = scmp.lt.u32.totalorder %s5306_s14, %s5302_s20  ;;  %p5310_p1 = scmp.lt.u32.totalorder %s5302_s20, %s7988_s26 }
0x1df6   : > { %p5304_p10 = pnand %p5303_p7, %p5429_p6 }
0x1df7   : > { %p5309_p0 = por %p5308_p13, %p5307_p12 }
0x1df8   : > { %p5305_p11 = pneg %p5304_p10 }
0x1df9   : > { %p5311_p2 = por %p5310_p1, %p5309_p0 }
0x1dfb   : > { %p5312_p3 = pnand %p5311_p2, %p5305_p11 }
0x1dfd   : > { %5315 = shalt.err (!%p5312_p3)
}
0x1dfe   : > { %4602 = dma.vmem_to_hbm [thread:$0]  (%p5429_p6), %s7990_s18, 128, %s7988_s26, %s4316_s28  }
0x1dff PF: > { %s4341_s17 = sand.u32 1, %s5338_s21   ;;  %p4605_p4 = pnand %p4396_p9, %p5433_p8 }
0x1e00   : > { %s4342_s13 = scalar_lea.sflag [#allocation4], %s4341_s17 }
0x1e01   : > { %5333 = dma.done.wait (!%p4605_p4), %s4342_s13, 128  }
0x1e02   : > { %5335 = vsyncadd (!%p4605_p4), %s4342_s13, 4294967168  ;;  %p16_p5 = scmp.ge.s32.totalorder %s5414_s27, 4   ;;  %s8242_s21 = smov %s5342_s22 }
0x1e03   : > { %s8243_s22 = smov %s5346_s23  ;;  %s8244_s23 = smov %s5427_s30 }
0x1e04   : > { %s8245_s24 = smov %s5414_s27  ;;  %18 = sbr.rel (!%p16_p5) target bundleno = 3 (0x3), region = 122 }
0x1e0b   :  { %4347 = vsyncpa [#allocation4], 1 }
0x1e0c   :  { %4349 = vsyncpa [#allocation4 + $0x1], 1 }

</bundles_post_ra>
